<compile_context>
chip_gen: v7x
topology: tpu7x:2x2x1
jax: 0.10.0
libtpu: 0.0.40
codegen_flags: <defaults>
</compile_context>

<pallas_src>
import jax
import jax.numpy as jnp
from jax.experimental import pallas as pl
from jax.experimental.pallas import tpu as pltpu

C_FEAT = 1920    # DenseNet201 feature channels feeding Linear(1920, nb_classes)
POOL_HW = 7      # AvgPool2d(kernel_size=7, stride=1) on a 7x7 map -> 1x1 output
LANE = 128       # TPU lane width; classifier output is padded to a multiple of this
MIB = 1024 * 1024


def _veri_head_kernel(x_ref, w_ref, b_ref, f_ref, y_ref):
    """x_ref: (TB, 49, 1920) backbone dtype; w_ref: (1920, nc_pad); b_ref: (1, nc_pad) f32.

    Per batch tile:
      f = AvgPool2d(7, stride=1)(x).view(TB, -1)   == mean over the 49 positions
      y = f @ W^T + b                              (torch.nn.Linear)
    """
    x = x_ref[...].astype(jnp.float32)               # upcast in-kernel (f32 accumulation)
    # Channels-last: reduce over the 49 spatial positions (sublane axis); C on lanes.
    f = jnp.mean(x, axis=1)                          # (TB, C) f32, MXU-LHS layout
    f_ref[...] = f
    y_ref[...] = (
        jnp.dot(f.astype(w_ref.dtype), w_ref[...],
                preferred_element_type=jnp.float32)
        + b_ref[...]
    )


def _vmem_capacity_bytes():
    try:
        cap = int(pltpu.get_tpu_info().vmem_capacity_bytes)
        if cap > 0:
            return cap
    except Exception:
        pass
    return 64 * MIB   # conservative fallback: v7x per-TensorCore VMEM


def densenet_veri_head(feat_nchw, w_t, bias, *, tb=None, matmul_dtype=jnp.float32):
    """feat_nchw: [B, 1920, 7, 7] backbone output (NCHW), any float dtype (bf16 ok).
    w_t: [1920, nb_classes] (transposed Linear weight).  bias: [nb_classes].
    Returns (f, logits) matching the PyTorch module's (f, x) outputs (f32).
    """
    B, C, H, W = feat_nchw.shape
    assert C == C_FEAT and H == POOL_HW and W == POOL_HW
    nc = w_t.shape[1]
    hw = H * W

    # One-time NCHW -> channels-last (B, HW, C). Keeps the backbone dtype (no upcast).
    x = jnp.transpose(feat_nchw, (0, 2, 3, 1)).reshape(B, hw, C)

    # Lane-dense classifier: pad nb_classes up to a multiple of 128.
    nc_pad = LANE * pl.cdiv(nc, LANE)
    w_p = w_t.astype(matmul_dtype)
    b_p = bias.astype(jnp.float32)
    if nc_pad != nc:
        w_p = jnp.pad(w_p, ((0, 0), (0, nc_pad - nc)))
        b_p = jnp.pad(b_p, ((0, nc_pad - nc),))
    b2 = b_p.reshape(1, nc_pad)

    # ---- per-generation tile sizing ------------------------------------------------
    x_itemsize = jnp.dtype(x.dtype).itemsize
    w_itemsize = jnp.dtype(matmul_dtype).itemsize
    vmem_cap = _vmem_capacity_bytes()
    # Pipelined-VMEM budget: ~48 MiB on 64-MiB parts (v7x per-TC), ~96 MiB on 128-MiB
    # parts (v5e/v6e), leaving headroom for compiler scratch.
    budget = 48 * MIB if vmem_cap <= 64 * MIB else 96 * MIB

    # Resident weight/bias (constant index_map) are still double-buffered by default.
    resident = 2 * (C * nc_pad * w_itemsize + nc_pad * 4)
    hw_pad = 8 * pl.cdiv(hw, 8)                      # 49 -> 56 sublanes
    per_row = 2 * (hw_pad * C * x_itemsize           # x tile (double-buffered)
                   + C * 4                           # f output tile
                   + nc_pad * 4)                     # y output tile
    tb_budget = max(8, int((budget - resident) // per_row) // 8 * 8)

    if tb is None:
        tb = tb_budget
    tb = max(8, (int(tb) // 8) * 8)                  # sublane-aligned output tiles
    tb = min(tb, 64)                                 # beyond this the step is DMA-bound
    # Keep >=2 grid steps for larger batches so the "parallel" batch axis actually
    # lands on both v7x TensorCores (tiny B clamps to the minimum tile of 8).
    tb = min(tb, max(8, 8 * pl.cdiv(pl.cdiv(B, 2), 8)))

    n_tiles = pl.cdiv(B, tb)
    bp = n_tiles * tb
    if bp != B:
        x = jnp.pad(x, ((0, bp - B), (0, 0), (0, 0)))

    vmem_limit = int(min(budget + 16 * MIB, vmem_cap - 8 * MIB))
    # ---------------------------------------------------------------------------------

    f, y = pl.pallas_call(
        _veri_head_kernel,
        out_shape=(
            jax.ShapeDtypeStruct((bp, C), jnp.float32),       # pooled features f
            jax.ShapeDtypeStruct((bp, nc_pad), jnp.float32),  # classifier logits
        ),
        grid=(n_tiles,),
        in_specs=[
            # Streamed, double-buffered batch tiles of the channels-last feature map.
            pl.BlockSpec((tb, hw, C), lambda i: (i, 0, 0)),
            # Weight / bias: constant index_map -> VMEM-resident across steps.
            # (For very large nb_classes, add an nc grid axis and stream (C, tn) tiles.)
            pl.BlockSpec((C, nc_pad), lambda i: (0, 0)),
            pl.BlockSpec((1, nc_pad), lambda i: (0, 0)),
        ],
        out_specs=(
            pl.BlockSpec((tb, C), lambda i: (i, 0)),
            pl.BlockSpec((tb, nc_pad), lambda i: (i, 0)),
        ),
        compiler_params=pltpu.CompilerParams(
            dimension_semantics=("parallel",),   # batch tiles shard across TCs (v7x)
            vmem_limit_bytes=vmem_limit,
        ),
    )(x, w_p, b2)

    # Drop batch padding and classifier lane padding.
    return f[:B], y[:B, :nc]


if __name__ == "__main__":
    key = jax.random.PRNGKey(0)
    k_feat, k_w, k_b = jax.random.split(key, 3)

    B = 2
    nb_classes = 16

    # Synthetic backbone output (what old_model.features would produce for a
    # 224x224 image): [B, 1920, 7, 7], NCHW.
    feat = jax.random.normal(k_feat, (B, C_FEAT, POOL_HW, POOL_HW), jnp.float32)

    # torch.nn.Linear(1920, nb_classes): weight [nb_classes, 1920], bias [nb_classes]
    w = jax.random.normal(k_w, (nb_classes, C_FEAT), jnp.float32) * 0.02
    b = jax.random.normal(k_b, (nb_classes,), jnp.float32) * 0.02

    # Pure-JAX reference of the PyTorch forward (mixer -> view -> classifier), f32.
    f_ref = jnp.mean(feat.reshape(B, C_FEAT, -1), axis=-1)               # [B, 1920]
    y_ref = jnp.dot(f_ref, w.T, precision=jax.lax.Precision.HIGHEST) + b  # [B, nc]

    # --- f32 path: strict parity with the PyTorch module (f32 nn.Linear) ---
    f, logits = densenet_veri_head(feat, w.T, b)
    jax.block_until_ready((f, logits))
    assert f.shape == (B, C_FEAT) and logits.shape == (B, nb_classes)
    assert jnp.allclose(f, f_ref, atol=1e-5, rtol=1e-5)
    assert jnp.allclose(logits, y_ref, atol=1e-3, rtol=1e-3)

    # --- bf16 backbone-output path (halves the dominant HBM stream) ---
    f16, logits16 = densenet_veri_head(
        feat.astype(jnp.bfloat16), w.T, b, matmul_dtype=jnp.bfloat16)
    jax.block_until_ready((f16, logits16))
    assert jnp.allclose(f16, f_ref, atol=1e-2, rtol=1e-2)
    assert jnp.allclose(logits16, y_ref, atol=1e-2, rtol=1e-2)

    print("KERNEL_OK")
</pallas_src>

<mosaic_0001>
module attributes {stable_mosaic.version = 11 : i64} {
  func.func @_veri_head_kernel(%arg0: i32, %arg1: memref<8x49x1920xf32, #tpu.memory_space<vmem>>, %arg2: memref<1920x128xf32, #tpu.memory_space<vmem>>, %arg3: memref<1x128xf32, #tpu.memory_space<vmem>>, %arg4: memref<8x1920xf32, #tpu.memory_space<vmem>>, %arg5: memref<8x128xf32, #tpu.memory_space<vmem>>) attributes {dimension_semantics = [#tpu.dimension_semantics<parallel>], iteration_bounds = array<i64: 1>, scalar_prefetch = 0 : i64, scratch_operands = 0 : i64, tpu.core_type = #tpu.core_type<tc>, window_params = [{transform_indices = @transform_0, window_bounds = array<i64: 8, 49, 1920>}, {pipeline_mode = #tpu.pipeline_mode<synchronous>, transform_indices = @transform_1, window_bounds = array<i64: 1920, 128>}, {pipeline_mode = #tpu.pipeline_mode<synchronous>, transform_indices = @transform_2, window_bounds = array<i64: 1, 128>}, {transform_indices = @transform_3, window_bounds = array<i64: 8, 1920>}, {transform_indices = @transform_4, window_bounds = array<i64: 8, 128>}]} {
    %c0 = arith.constant 0 : index
    %c0_0 = arith.constant 0 : index
    %c0_1 = arith.constant 0 : index
    %0 = vector.load %arg1[%c0, %c0_0, %c0_1] : memref<8x49x1920xf32, #tpu.memory_space<vmem>>, vector<8x49x1920xf32>
    %cst = arith.constant dense<0.000000e+00> : vector<8x1920xf32>
    %1 = vector.multi_reduction <add>, %0, %cst [1] : vector<8x49x1920xf32> to vector<8x1920xf32>
    %cst_2 = arith.constant 4.900000e+01 : f32
    %2 = vector.broadcast %cst_2 : f32 to vector<8x1920xf32>
    %3 = arith.divf %1, %2 : vector<8x1920xf32>
    %c0_3 = arith.constant 0 : index
    %c0_4 = arith.constant 0 : index
    %4 = vector.load %arg4[%c0_3, %c0_4] : memref<8x1920xf32, #tpu.memory_space<vmem>>, vector<8x1920xf32>
    tpu.vector_store %arg4[%c0_3, %c0_4], %3 {strides = array<i32>} : memref<8x1920xf32, #tpu.memory_space<vmem>>, vector<8x1920xf32>,
    %c0_5 = arith.constant 0 : index
    %c0_6 = arith.constant 0 : index
    %5 = vector.load %arg2[%c0_5, %c0_6] : memref<1920x128xf32, #tpu.memory_space<vmem>>, vector<1920x128xf32>
    %cst_7 = arith.constant dense<0.000000e+00> : vector<8x128xf32>
    %6 = tpu.matmul %3, %5, %cst_7 {dimension_numbers = #tpu.dot_dimension_numbers<[1], [0], [0], [1], [0, 0, 1, 1], [], []>} : vector<8x1920xf32>, vector<1920x128xf32>, vector<8x128xf32> -> vector<8x128xf32>
    %c0_8 = arith.constant 0 : index
    %c0_9 = arith.constant 0 : index
    %7 = vector.load %arg3[%c0_8, %c0_9] : memref<1x128xf32, #tpu.memory_space<vmem>>, vector<1x128xf32>
    %8 = vector.broadcast %7 : vector<1x128xf32> to vector<8x128xf32>
    %9 = arith.addf %6, %8 : vector<8x128xf32>
    %c0_10 = arith.constant 0 : index
    %c0_11 = arith.constant 0 : index
    %10 = vector.load %arg5[%c0_10, %c0_11] : memref<8x128xf32, #tpu.memory_space<vmem>>, vector<8x128xf32>
    tpu.vector_store %arg5[%c0_10, %c0_11], %9 {strides = array<i32>} : memref<8x128xf32, #tpu.memory_space<vmem>>, vector<8x128xf32>,
    return
  }
  func.func @transform_0(%arg0: i32) -> (i32, i32, i32) {
    %c0_i32 = arith.constant 0 : i32
    %c0_i32_0 = arith.constant 0 : i32
    %c0_i32_1 = arith.constant 0 : i32
    return %arg0, %c0_i32, %c0_i32_0 : i32, i32, i32
  }
  func.func @transform_1(%arg0: i32) -> (i32, i32) {
    %c0_i32 = arith.constant 0 : i32
    %c0_i32_0 = arith.constant 0 : i32
    %c0_i32_1 = arith.constant 0 : i32
    return %c0_i32, %c0_i32_0 : i32, i32
  }
  func.func @transform_2(%arg0: i32) -> (i32, i32) {
    %c0_i32 = arith.constant 0 : i32
    %c0_i32_0 = arith.constant 0 : i32
    %c0_i32_1 = arith.constant 0 : i32
    return %c0_i32, %c0_i32_0 : i32, i32
  }
  func.func @transform_3(%arg0: i32) -> (i32, i32) {
    %c0_i32 = arith.constant 0 : i32
    %c0_i32_0 = arith.constant 0 : i32
    return %arg0, %c0_i32 : i32, i32
  }
  func.func @transform_4(%arg0: i32) -> (i32, i32) {
    %c0_i32 = arith.constant 0 : i32
    %c0_i32_0 = arith.constant 0 : i32
    return %arg0, %c0_i32 : i32, i32
  }
}

</mosaic_0001>

<bundles_post_ra>
// kernel: tpu_custom_call.1
= control target key start
LH: loop header
LB: loop body
LE: loop exit
PB: predicated region body
PF: predicated region fallthrough
CT: control target
= control target key end

     0   :  { %10 = vsyncpa [#allocation3], 0  ;;  %vm863_vm0 = vcmask 1040384   ;;  %vm2660_vm1 = vcmask 1041409   ;;  %vm2662_vm2 = vcmask 1042434   ;;  %vm2664_vm3 = vcmask 1043459   ;;  %s8493_s0 = inlined_call_operand.vmem [shape: f32[8,49,1920], index: 0, kind: input, shape index: {}]   ;;  %s8494_s1 = inlined_call_operand.vmem [shape: f32[1920,128], index: 1, kind: input, shape index: {}]   ;;  %s8495_s2 = inlined_call_operand.vmem [shape: f32[1,128], index: 2, kind: input, shape index: {}]   ;;  %s8496_s3 = inlined_call_operand.hbm [shape: f32[8,1920], index: 3, kind: output, shape index: {0}]   ;;  %s8497_s4 = inlined_call_operand.hbm [shape: f32[8,128], index: 4, kind: output, shape index: {1}]  }
   0x1   :  { %v2818_v0 = vld [vmem:[%s8494_s1 + $0x80] sm:$0xff]  ;;  %v2819_v1 = vld [vmem:[%s8494_s1 + $0x88] sm:$0xff]  ;;  %v2820_v11 = vld [vmem:[%s8494_s1 + $0x90] sm:$0xff]  ;;  %vm2666_vm4 = vcmask 1044484   ;;  %vm2668_vm5 = vcmask 1045509   ;;  %vm2670_vm6 = vcmask 1046534  }
   0x2   :  { %v2802_v2 = vld [vmem:[%s8494_s1] sm:$0xff]  ;;  %v3936_v3 = vpack.c.bf16 %v2819_v1, %v2818_v0  ;;  %v2803_v4 = vld [vmem:[%s8494_s1 + $0x8] sm:$0xff]  ;;  %v2821_v13 = vld [vmem:[%s8494_s1 + $0x98] sm:$0xff]  ;;  %vm2672_vm7 = vcmask 1047559  }
   0x3   :  { %v2850_v5 = vld [vmem:[%s8494_s1 + $0x180] sm:$0xff]  ;;  %v2851_v6 = vld [vmem:[%s8494_s1 + $0x188] sm:$0xff]  ;;  %v3938_v7 = vpack.c.bf16 %v2803_v4, %v2802_v2  ;;  %v2804_v14 = vld [vmem:[%s8494_s1 + $0x10] sm:$0xff]  ;;  %v3940_v16 = vpack.c.bf16 %v2821_v13, %v2820_v11 }
   0x4   :  { %v3968_v8 = vpack.c.bf16 %v2851_v6, %v2850_v5  ;;  %v2834_v9 = vld [vmem:[%s8494_s1 + $0x100] sm:$0xff]  ;;  %v2835_v10 = vld [vmem:[%s8494_s1 + $0x108] sm:$0xff]  ;;  %3937 = vmatprep.subr.bf16.mxu0 %v3936_v3  ;;  %v2805_v15 = vld [vmem:[%s8494_s1 + $0x18] sm:$0xff] }
   0x5   :  { %v3970_v12 = vpack.c.bf16 %v2835_v10, %v2834_v9  ;;  %3939 = vmatpush3.bf16.msra.mxu0 %v3938_v7  ;;  %v3942_v17 = vpack.c.bf16 %v2805_v15, %v2804_v14  ;;  %v2852_v18 = vld [vmem:[%s8494_s1 + $0x190] sm:$0xff]  ;;  %v2853_v19 = vld [vmem:[%s8494_s1 + $0x198] sm:$0xff]  ;;  %v2822_v23 = vld [vmem:[%s8494_s1 + $0xa0] sm:$0xff] }
   0x6   :  { %3969 = vmatprep.subr.bf16.mxu1 %v3968_v8  ;;  %v2836_v20 = vld [vmem:[%s8494_s1 + $0x110] sm:$0xff]  ;;  %v3972_v21 = vpack.c.bf16 %v2853_v19, %v2852_v18  ;;  %v2837_v22 = vld [vmem:[%s8494_s1 + $0x118] sm:$0xff]  ;;  %v2823_v24 = vld [vmem:[%s8494_s1 + $0xa8] sm:$0xff]  ;;  %3941 = vmatprep.subr.bf16.mxu0 %v3940_v16 }
   0x7   :  { %3971 = vmatpush3.bf16.msra.mxu1 %v3970_v12  ;;  %v3974_v25 = vpack.c.bf16 %v2837_v22, %v2836_v20  ;;  %v3944_v26 = vpack.c.bf16 %v2823_v24, %v2822_v23  ;;  %v2806_v27 = vld [vmem:[%s8494_s1 + $0x20] sm:$0xff]  ;;  %v2807_v28 = vld [vmem:[%s8494_s1 + $0x28] sm:$0xff]  ;;  %v2824_v35 = vld [vmem:[%s8494_s1 + $0xb0] sm:$0xff] }
   0x8   :  { %v2854_v29 = vld [vmem:[%s8494_s1 + $0x1a0] sm:$0xff]  ;;  %3973 = vmatprep.subr.bf16.mxu1 %v3972_v21  ;;  %v2855_v30 = vld [vmem:[%s8494_s1 + $0x1a8] sm:$0xff]  ;;  %v3946_v33 = vpack.c.bf16 %v2807_v28, %v2806_v27  ;;  %v2825_v36 = vld [vmem:[%s8494_s1 + $0xb8] sm:$0xff] }
   0x9   :  { %v2838_v31 = vld [vmem:[%s8494_s1 + $0x120] sm:$0xff]  ;;  %v2839_v32 = vld [vmem:[%s8494_s1 + $0x128] sm:$0xff]  ;;  %3943 = vmatpush3.bf16.msra.mxu0 %v3942_v17  ;;  %v3976_v34 = vpack.c.bf16 %v2855_v30, %v2854_v29  ;;  %v2808_v37 = vld [vmem:[%s8494_s1 + $0x30] sm:$0xff]  ;;  %v3948_v39 = vpack.c.bf16 %v2825_v36, %v2824_v35 }
   0xa   :  { %3945 = vmatprep.subr.bf16.mxu0 %v3944_v26  ;;  %v3978_v38 = vpack.c.bf16 %v2839_v32, %v2838_v31  ;;  %v2809_v40 = vld [vmem:[%s8494_s1 + $0x38] sm:$0xff]  ;;  %v2856_v41 = vld [vmem:[%s8494_s1 + $0x1b0] sm:$0xff]  ;;  %v2826_v46 = vld [vmem:[%s8494_s1 + $0xc0] sm:$0xff] }
   0xb   :  { %3975 = vmatpush3.bf16.msra.mxu1 %v3974_v25  ;;  %v2857_v42 = vld [vmem:[%s8494_s1 + $0x1b8] sm:$0xff]  ;;  %v2840_v44 = vld [vmem:[%s8494_s1 + $0x130] sm:$0xff]  ;;  %v2827_v47 = vld [vmem:[%s8494_s1 + $0xc8] sm:$0xff]  ;;  %v3950_v48 = vpack.c.bf16 %v2809_v40, %v2808_v37 }
   0xc   :  { %3977 = vmatprep.subr.bf16.mxu1 %v3976_v34  ;;  %v3980_v43 = vpack.c.bf16 %v2857_v42, %v2856_v41  ;;  %v2841_v45 = vld [vmem:[%s8494_s1 + $0x138] sm:$0xff]  ;;  %v2858_v49 = vld [vmem:[%s8494_s1 + $0x1c0] sm:$0xff]  ;;  %v2859_v50 = vld [vmem:[%s8494_s1 + $0x1c8] sm:$0xff]  ;;  %v3952_v52 = vpack.c.bf16 %v2827_v47, %v2826_v46 }
   0xd   :  { %3947 = vmatpush3.bf16.msra.mxu0 %v3946_v33  ;;  %v3982_v51 = vpack.c.bf16 %v2841_v45, %v2840_v44  ;;  %v2810_v53 = vld [vmem:[%s8494_s1 + $0x40] sm:$0xff]  ;;  %v2811_v54 = vld [vmem:[%s8494_s1 + $0x48] sm:$0xff]  ;;  %v3984_v56 = vpack.c.bf16 %v2859_v50, %v2858_v49  ;;  %v2828_v58 = vld [vmem:[%s8494_s1 + $0xd0] sm:$0xff] }
   0xe   :  { %3949 = vmatprep.subr.bf16.mxu0 %v3948_v39  ;;  %v2842_v55 = vld [vmem:[%s8494_s1 + $0x140] sm:$0xff]  ;;  %v2843_v57 = vld [vmem:[%s8494_s1 + $0x148] sm:$0xff]  ;;  %v2829_v59 = vld [vmem:[%s8494_s1 + $0xd8] sm:$0xff]  ;;  %v3954_v62 = vpack.c.bf16 %v2811_v54, %v2810_v53 }
   0xf   :  { %3979 = vmatpush3.bf16.msra.mxu1 %v3978_v38  ;;  %v2860_v60 = vld [vmem:[%s8494_s1 + $0x1d0] sm:$0xff]  ;;  %v2861_v61 = vld [vmem:[%s8494_s1 + $0x1d8] sm:$0xff]  ;;  %v3986_v63 = vpack.c.bf16 %v2843_v57, %v2842_v55  ;;  %v3956_v0 = vpack.c.bf16 %v2829_v59, %v2828_v58  ;;  %v2830_v6 = vld [vmem:[%s8494_s1 + $0xe0] sm:$0xff] }
  0x10   :  { %3981 = vmatprep.subr.bf16.mxu1 %v3980_v43  ;;  %v2812_v1 = vld [vmem:[%s8494_s1 + $0x50] sm:$0xff]  ;;  %v2813_v2 = vld [vmem:[%s8494_s1 + $0x58] sm:$0xff]  ;;  %v3988_v4 = vpack.c.bf16 %v2861_v61, %v2860_v60  ;;  %v2831_v7 = vld [vmem:[%s8494_s1 + $0xe8] sm:$0xff] }
  0x11   :  { %3951 = vmatpush3.bf16.msra.mxu0 %v3950_v48  ;;  %v2844_v3 = vld [vmem:[%s8494_s1 + $0x150] sm:$0xff]  ;;  %v2845_v5 = vld [vmem:[%s8494_s1 + $0x158] sm:$0xff]  ;;  %v2814_v8 = vld [vmem:[%s8494_s1 + $0x60] sm:$0xff]  ;;  %v3958_v12 = vpack.c.bf16 %v2813_v2, %v2812_v1  ;;  %v3960_v18 = vpack.c.bf16 %v2831_v7, %v2830_v6 }
  0x12   :  { %3953 = vmatprep.subr.bf16.mxu0 %v3952_v52  ;;  %v2815_v9 = vld [vmem:[%s8494_s1 + $0x68] sm:$0xff]  ;;  %v2862_v10 = vld [vmem:[%s8494_s1 + $0x1e0] sm:$0xff]  ;;  %v2832_v15 = vld [vmem:[%s8494_s1 + $0xf0] sm:$0xff]  ;;  %v3990_v17 = vpack.c.bf16 %v2845_v5, %v2844_v3 }
  0x13   :  { %3983 = vmatpush3.bf16.msra.mxu1 %v3982_v51  ;;  %v2863_v11 = vld [vmem:[%s8494_s1 + $0x1e8] sm:$0xff]  ;;  %v2846_v13 = vld [vmem:[%s8494_s1 + $0x160] sm:$0xff]  ;;  %v2833_v19 = vld [vmem:[%s8494_s1 + $0xf8] sm:$0xff]  ;;  %v3962_v30 = vpack.c.bf16 %v2815_v9, %v2814_v8 }
  0x14   :  { %3985 = vmatprep.subr.bf16.mxu1 %v3984_v56  ;;  %v2847_v14 = vld [vmem:[%s8494_s1 + $0x168] sm:$0xff]  ;;  %v34_v20 = vld [vmem:[%s8493_s0 + $0x80] sm:$0xff]  ;;  %v49_v21 = vld [vmem:[%s8493_s0 + $0xf8] sm:$0xff]  ;;  %v3992_v22 = vpack.c.bf16 %v2863_v11, %v2862_v10  ;;  %v3964_v37 = vpack.c.bf16 %v2833_v19, %v2832_v15 }
  0x15   :  { %3955 = vmatpush3.bf16.msra.mxu0 %v3954_v62  ;;  %v19_v16 = vld [vmem:[%s8493_s0 + $0x8] sm:$0xff]  ;;  %v2864_v23 = vld [vmem:[%s8494_s1 + $0x1f0] sm:$0xff]  ;;  %v2865_v24 = vld [vmem:[%s8494_s1 + $0x1f8] sm:$0xff]  ;;  %v3994_v36 = vpack.c.bf16 %v2847_v14, %v2846_v13 }
  0x16   :  { %3957 = vmatprep.subr.bf16.mxu0 %v3956_v0  ;;  %v64_v25 = vld [vmem:[%s8493_s0 + $0x170] sm:$0xff]  ;;  %v872_v26 = vadd.f32 %v34_v20, %v19_v16  ;;  %v139_v28 = vld [vmem:[%s8493_s0 + $0x3c8] sm:$0xff]  ;;  %v154_v29 = vld [vmem:[%s8493_s0 + $0x440] sm:$0xff]  ;;  %v3996_v42 = vpack.c.bf16 %v2865_v24, %v2864_v23 }
  0x17   :  { %3987 = vmatpush3.bf16.msra.mxu1 %v3986_v63  ;;  %v124_v27 = vld [vmem:[%s8493_s0 + $0x350] sm:$0xff]  ;;  %v2817_v32 = vld [vmem:[%s8494_s1 + $0x78] sm:$0xff]  ;;  %v79_v33 = vld [vmem:[%s8493_s0 + $0x1e8] sm:$0xff] }
  0x18   :  { %3989 = vmatprep.subr.bf16.mxu1 %v3988_v4  ;;  %v2816_v31 = vld [vmem:[%s8494_s1 + $0x70] sm:$0xff]  ;;  %v873_v34 = vadd.f32 %v872_v26, %v49_v21  ;;  %v1067_v35 = vadd.f32 %v139_v28, %v124_v27  ;;  %v94_v38 = vld [vmem:[%s8493_s0 + $0x260] sm:$0xff]  ;;  %v169_v39 = vld [vmem:[%s8493_s0 + $0x4b8] sm:$0xff] }
  0x19   :  { %3959 = vmatpush3.bf16.msra.mxu0 %v3958_v12  ;;  %v229_v40 = vld [vmem:[%s8493_s0 + $0x698] sm:$0xff]  ;;  %v244_v41 = vld [vmem:[%s8493_s0 + $0x710] sm:$0xff]  ;;  %v259_v45 = vld [vmem:[%s8493_s0 + $0x788] sm:$0xff]  ;;  %v3966_v53 = vpack.c.bf16 %v2817_v32, %v2816_v31 }
  0x1a   :  { %3961 = vmatprep.subr.bf16.mxu0 %v3960_v18  ;;  %v109_v43 = vld [vmem:[%s8493_s0 + $0x2d8] sm:$0x1]  ;;  %v184_v44 = vld [vmem:[%s8493_s0 + $0x530] sm:$0xff]  ;;  %v874_v46 = vadd.f32 %v873_v34, %v64_v25  ;;  %v1068_v47 = vadd.f32 %v1067_v35, %v154_v29  ;;  %v1262_v48 = vadd.f32 %v244_v41, %v229_v40  ;;  %v199_v49 = vld [vmem:[%s8493_s0 + $0x5a8] sm:$0xff] }
  0x1b   :  { %3991 = vmatpush3.bf16.msra.mxu1 %v3990_v17  ;;  %v214_v50 = vld [vmem:[%s8493_s0 + $0x620] sm:$0x1]  ;;  %v289_v54 = vld [vmem:[%s8493_s0 + $0x878] sm:$0xff]  ;;  %v364_v56 = vld [vmem:[%s8493_s0 + $0xad0] sm:$0xff]  ;;  %v877_v63 = vsel %vm863_vm0, %v109_v43, 0.0 }
  0x1c   :  { %3993 = vmatprep.subr.bf16.mxu1 %v3992_v22  ;;  %v274_v51 = vld [vmem:[%s8493_s0 + $0x800] sm:$0xff]  ;;  %v349_v55 = vld [vmem:[%s8493_s0 + $0xa58] sm:$0xff]  ;;  %v875_v57 = vadd.f32 %v874_v46, %v79_v33  ;;  %v1069_v58 = vadd.f32 %v1068_v47, %v169_v39  ;;  %v1263_v59 = vadd.f32 %v1262_v48, %v259_v45  ;;  %v319_v60 = vld [vmem:[%s8493_s0 + $0x968] sm:$0x1]  ;;  %v1072_v10 = vsel %vm863_vm0, %v214_v50, 0.0 }
  0x1d   :  { %v334_v52 = vld [vmem:[%s8493_s0 + $0x9e0] sm:$0xff]  ;;  %3963 = vmatpush3.bf16.msra.mxu0 %v3962_v30  ;;  %v379_v61 = vld [vmem:[%s8493_s0 + $0xb48] sm:$0xff]  ;;  %v424_v62 = vld [vmem:[%s8493_s0 + $0xcb0] sm:$0x1]  ;;  %v1267_v19 = vsel %vm863_vm0, %v319_v60, 0.0 }
  0x1e   :  { %3965 = vmatprep.subr.bf16.mxu0 %v3964_v37  ;;  %v1457_v0 = vadd.f32 %v349_v55, %v334_v52  ;;  %v439_v1 = vld [vmem:[%s8493_s0 + $0xd28] sm:$0xff]  ;;  %v454_v2 = vld [vmem:[%s8493_s0 + $0xda0] sm:$0xff]  ;;  %v469_v3 = vld [vmem:[%s8493_s0 + $0xe18] sm:$0xff]  ;;  %v876_v4 = vadd.f32 %v875_v57, %v94_v38  ;;  %v1070_v5 = vadd.f32 %v1069_v58, %v184_v44  ;;  %v1264_v6 = vadd.f32 %v1263_v59, %v274_v51 }
  0x1f   :  { %3995 = vmatpush3.bf16.msra.mxu1 %v3994_v36  ;;  %v304_v7 = vld [vmem:[%s8493_s0 + $0x8f0] sm:$0xff]  ;;  %v394_v8 = vld [vmem:[%s8493_s0 + $0xbc0] sm:$0xff]  ;;  %v1652_v12 = vadd.f32 %v454_v2, %v439_v1  ;;  %v529_v13 = vld [vmem:[%s8493_s0 + $0xff8] sm:$0x1]  ;;  %v1462_v24 = vsel %vm863_vm0, %v424_v62, 0.0 }
  0x20   :  { %3997 = vmatprep.subr.bf16.mxu1 %v3996_v42  ;;  %v484_v9 = vld [vmem:[%s8493_s0 + $0xe90] sm:$0xff]  ;;  %v1458_v11 = vadd.f32 %v1457_v0, %v364_v56  ;;  %v559_v15 = vld [vmem:[%s8493_s0 + $0x10e8] sm:$0xff]  ;;  %v878_v16 = vadd.f32 %v877_v63, %v876_v4  ;;  %v1071_v17 = vadd.f32 %v1070_v5, %v199_v49  ;;  %v1265_v18 = vadd.f32 %v1264_v6, %v289_v54  ;;  %v409_v20 = vld [vmem:[%s8493_s0 + $0xc38] sm:$0xff] }
  0x21   :  { %3967 = vmatpush3.bf16.msra.mxu0 %v3966_v53  ;;  %v544_v14 = vld [vmem:[%s8493_s0 + $0x1070] sm:$0xff]  ;;  %v499_v21 = vld [vmem:[%s8493_s0 + $0xf08] sm:$0xff]  ;;  %v574_v22 = vld [vmem:[%s8493_s0 + $0x1160] sm:$0xff]  ;;  %v1653_v25 = vadd.f32 %v1652_v12, %v469_v3  ;;  %v1657_v33 = vsel %vm863_vm0, %v529_v13, 0.0 }
  0x22   :  { %v1459_v23 = vadd.f32 %v1458_v11, %v379_v61  ;;  %v1847_v26 = vadd.f32 %v559_v15, %v544_v14  ;;  %v589_v27 = vld [vmem:[%s8493_s0 + $0x11d8] sm:$0xff]  ;;  %v634_v28 = vld [vmem:[%s8493_s0 + $0x1340] sm:$0x1]  ;;  %v879_v30 = vrot.slane %v878_v16, 4  ;;  %v1073_v31 = vadd.f32 %v1072_v10, %v1071_v17  ;;  %v664_v34 = vld [vmem:[%s8493_s0 + $0x1430] sm:$0xff] }
  0x23   :  { %v649_v29 = vld [vmem:[%s8493_s0 + $0x13b8] sm:$0xff]  ;;  %v1266_v32 = vadd.f32 %v1265_v18, %v304_v7  ;;  %v679_v35 = vld [vmem:[%s8493_s0 + $0x14a8] sm:$0xff]  ;;  %v1654_v37 = vadd.f32 %v1653_v25, %v484_v9  ;;  %v1852_v39 = vsel %vm863_vm0, %v634_v28, 0.0  ;;  %v514_v40 = vld [vmem:[%s8493_s0 + $0xf80] sm:$0xff] }
  0x24   :  { %v1460_v36 = vadd.f32 %v1459_v23, %v394_v8  ;;  %v1848_v38 = vadd.f32 %v1847_v26, %v574_v22  ;;  %v604_v41 = vld [vmem:[%s8493_s0 + $0x1250] sm:$0xff]  ;;  %v739_v42 = vld [vmem:[%s8493_s0 + $0x1688] sm:$0x1]  ;;  %v880_v43 = vadd.f32 %v879_v30, %v878_v16  ;;  %v1074_v44 = vrot.slane %v1073_v31, 4  ;;  %v694_v47 = vld [vmem:[%s8493_s0 + $0x1520] sm:$0xff] }
  0x25   :  { %v1268_v45 = vadd.f32 %v1267_v19, %v1266_v32  ;;  %v2042_v46 = vadd.f32 %v664_v34, %v649_v29  ;;  %v754_v48 = vld [vmem:[%s8493_s0 + $0x1700] sm:$0xff]  ;;  %v769_v49 = vld [vmem:[%s8493_s0 + $0x1778] sm:$0xff]  ;;  %v1655_v51 = vadd.f32 %v1654_v37, %v499_v21  ;;  %v2047_v53 = vsel %vm863_vm0, %v739_v42, 0.0  ;;  %v619_v54 = vld [vmem:[%s8493_s0 + $0x12c8] sm:$0xff] }
  0x26   :  { %v1461_v50 = vadd.f32 %v1460_v36, %v409_v20  ;;  %v1849_v52 = vadd.f32 %v1848_v38, %v589_v27  ;;  %v784_v55 = vld [vmem:[%s8493_s0 + $0x17f0] sm:$0xff]  ;;  %v881_v56 = vrot.slane %v880_v43, 2  ;;  %v1075_v57 = vadd.f32 %v1074_v44, %v1073_v31  ;;  %v709_v60 = vld [vmem:[%s8493_s0 + $0x1598] sm:$0xff]  ;;  %v799_v1 = vld [vmem:[%s8493_s0 + $0x1868] sm:$0xff] }
  0x27   :  { %v1269_v58 = vrot.slane %v1268_v45, 4  ;;  %v2043_v59 = vadd.f32 %v2042_v46, %v679_v35  ;;  %v1656_v62 = vadd.f32 %v1655_v51, %v514_v40  ;;  %v2237_v0 = vadd.f32 %v769_v49, %v754_v48  ;;  %v724_v6 = vld [vmem:[%s8493_s0 + $0x1610] sm:$0xff]  ;;  %v814_v11 = vld [vmem:[%s8493_s0 + $0x18e0] sm:$0xff]  ;;  %v829_v21 = vld [vmem:[%s8493_s0 + $0x1958] sm:$0xff] }
  0x28   :  { %v1463_v61 = vadd.f32 %v1462_v24, %v1461_v50  ;;  %v1850_v63 = vadd.f32 %v1849_v52, %v604_v41  ;;  %v882_v2 = vadd.f32 %v881_v56, %v880_v43  ;;  %v1076_v3 = vrot.slane %v1075_v57, 2  ;;  %v844_v16 = vld [vmem:[%s8493_s0 + $0x19d0] sm:$0x1]  ;;  %v18_v48 = vld [vmem:[%s8493_s0] sm:$0xff]  ;;  %v33_v49 = vld [vmem:[%s8493_s0 + $0x78] sm:$0xff] }
  0x29   :  { %v1270_v4 = vadd.f32 %v1269_v58, %v1268_v45  ;;  %v2044_v5 = vadd.f32 %v2043_v59, %v694_v47  ;;  %v1658_v8 = vadd.f32 %v1657_v33, %v1656_v62  ;;  %v2238_v10 = vadd.f32 %v2237_v0, %v784_v55  ;;  %v2848_v38 = vld [vmem:[%s8494_s1 + $0x170] sm:$0xff]  ;;  %v213_v62 = vld [vmem:[%s8493_s0 + $0x618] sm:$0x1] }
  0x2a   :  { %v1464_v7 = vrot.slane %v1463_v61, 4  ;;  %v1851_v9 = vadd.f32 %v1850_v63, %v619_v54  ;;  %v883_v12 = vrot.slane %v882_v2, 1  ;;  %v1077_v13 = vadd.f32 %v1076_v3, %v1075_v57  ;;  %v108_v50 = vld [vmem:[%s8493_s0 + $0x2d0] sm:$0x1] }
  0x2b   :  { %v1271_v14 = vrot.slane %v1270_v4, 2  ;;  %v2045_v15 = vadd.f32 %v2044_v5, %v709_v60  ;;  %v1659_v18 = vrot.slane %v1658_v8, 4  ;;  %v2239_v20 = vadd.f32 %v2238_v10, %v799_v1  ;;  %v48_v55 = vld [vmem:[%s8493_s0 + $0xf0] sm:$0xff]  ;;  %v123_v60 = vld [vmem:[%s8493_s0 + $0x348] sm:$0xff] }
  0x2c   :  { %v1465_v17 = vadd.f32 %v1464_v7, %v1463_v61  ;;  %v1853_v19 = vadd.f32 %v1852_v39, %v1851_v9  ;;  %v884_v22 = vadd.f32 %v883_v12, %v882_v2  ;;  %v1078_v23 = vrot.slane %v1077_v13, 1  ;;  %v2849_v39 = vld [vmem:[%s8494_s1 + $0x178] sm:$0xff]  ;;  %v138_v61 = vld [vmem:[%s8493_s0 + $0x3c0] sm:$0xff]  ;;  %v63_v1 = vld [vmem:[%s8493_s0 + $0x168] sm:$0xff] }
  0x2d   :  { %v1272_v24 = vadd.f32 %v1271_v14, %v1270_v4  ;;  %v2046_v25 = vadd.f32 %v2045_v15, %v724_v6  ;;  %v1660_v27 = vadd.f32 %v1659_v18, %v1658_v8  ;;  %v2240_v29 = vadd.f32 %v2239_v20, %v814_v11  ;;  %v153_v8 = vld [vmem:[%s8493_s0 + $0x438] sm:$0xff]  ;;  %v228_v9 = vld [vmem:[%s8493_s0 + $0x690] sm:$0xff]  ;;  %v243_v10 = vld [vmem:[%s8493_s0 + $0x708] sm:$0xff] }
  0x2e   :  { %v1466_v26 = vrot.slane %v1465_v17, 2  ;;  %v1854_v28 = vrot.slane %v1853_v19, 4  ;;  %v1079_v30 = vadd.f32 %v1078_v23, %v1077_v13  ;;  %v2242_v33 = vsel %vm863_vm0, %v844_v16, 0.0  ;;  %v78_v12 = vld [vmem:[%s8493_s0 + $0x1e0] sm:$0xff] }
  0x2f   :  { %v1273_v31 = vrot.slane %v1272_v24, 1  ;;  %v2048_v32 = vadd.f32 %v2047_v53, %v2046_v25  ;;  %v1661_v35 = vrot.slane %v1660_v27, 2  ;;  %v2241_v37 = vadd.f32 %v2240_v29, %v829_v21  ;;  %v318_v13 = vld [vmem:[%s8493_s0 + $0x960] sm:$0x1]  ;;  %v93_v21 = vld [vmem:[%s8493_s0 + $0x258] sm:$0xff] }
  0x30   :  { %v1467_v34 = vadd.f32 %v1466_v26, %v1465_v17  ;;  %v1855_v36 = vadd.f32 %v1854_v28, %v1853_v19  ;;  %v2421_v42 = vmul.f32 0.020408163, %v884_v22  ;;  %v2436_v43 = vmul.f32 0.020408163, %v1079_v30  ;;  %v168_v22 = vld [vmem:[%s8493_s0 + $0x4b0] sm:$0xff]  ;;  %v258_v23 = vld [vmem:[%s8493_s0 + $0x780] sm:$0xff] }
  0x31   :  { %v1274_v40 = vadd.f32 %v1273_v31, %v1272_v24  ;;  %v2049_v41 = vrot.slane %v2048_v32, 4  ;;  %v1662_v45 = vadd.f32 %v1661_v35, %v1660_v27  ;;  %v2243_v47 = vadd.f32 %v2242_v33, %v2241_v37  ;;  %v333_v25 = vld [vmem:[%s8493_s0 + $0x9d8] sm:$0xff]  ;;  %v348_v26 = vld [vmem:[%s8493_s0 + $0xa50] sm:$0xff]  ;;  %v423_v27 = vld [vmem:[%s8493_s0 + $0xca8] sm:$0x1] }
  0x32   :  { %v1468_v44 = vrot.slane %v1467_v34, 1  ;;  %v1856_v46 = vrot.slane %v1855_v36, 2  ;;  %v2674_v53 = vsel %vm2660_vm1, %v2436_v43, %v2421_v42  ;;  %v3998_v54 = vpack.c.bf16 %v2849_v39, %v2848_v38  ;;  %v273_v35 = vld [vmem:[%s8493_s0 + $0x7f8] sm:$0xff]  ;;  %v438_v39 = vld [vmem:[%s8493_s0 + $0xd20] sm:$0xff] }
  0x33   :  { %v2050_v51 = vadd.f32 %v2049_v41, %v2048_v32  ;;  %v2451_v52 = vmul.f32 0.020408163, %v1274_v40  ;;  %v1663_v57 = vrot.slane %v1662_v45, 1  ;;  %v2244_v59 = vrot.slane %v2243_v47, 4  ;;  %v453_v40 = vld [vmem:[%s8493_s0 + $0xd98] sm:$0xff] }
  0x34   :  { %v1469_v56 = vadd.f32 %v1468_v44, %v1467_v34  ;;  %v1857_v58 = vadd.f32 %v1856_v46, %v1855_v36  ;;  %3999 = vmatpush3.bf16.msra.mxu1 %v3998_v54  ;;  %v858_v2 = vadd.f32 %v33_v49, %v18_v48  ;;  %v4662_v3 = vsel %vm863_vm0, %v108_v50, 0.0  ;;  %v183_v34 = vld [vmem:[%s8493_s0 + $0x528] sm:$0xff]  ;;  %v528_v41 = vld [vmem:[%s8493_s0 + $0xff0] sm:$0x1]  ;;  %v378_v49 = vld [vmem:[%s8493_s0 + $0xb40] sm:$0xff] }
  0x35   :  { %v2051_v63 = vrot.slane %v2050_v51, 2  ;;  %v2675_v0 = vsel %vm2662_vm2, %v2451_v52, %v2674_v53  ;;  %v1664_v4 = vadd.f32 %v1663_v57, %v1662_v45  ;;  %v2245_v6 = vadd.f32 %v2244_v59, %v2243_v47  ;;  %v363_v36 = vld [vmem:[%s8493_s0 + $0xac8] sm:$0xff]  ;;  %v198_v47 = vld [vmem:[%s8493_s0 + $0x5a0] sm:$0xff]  ;;  %v288_v48 = vld [vmem:[%s8493_s0 + $0x870] sm:$0xff] }
  0x36   :  { %v1858_v5 = vrot.slane %v1857_v58, 1  ;;  %v2466_v7 = vmul.f32 0.020408163, %v1469_v56  ;;  %v859_v14 = vadd.f32 %v858_v2, %v48_v55  ;;  %v1054_v15 = vadd.f32 %v138_v61, %v123_v60  ;;  %v468_v53 = vld [vmem:[%s8493_s0 + $0xe10] sm:$0xff]  ;;  %v543_v54 = vld [vmem:[%s8493_s0 + $0x1068] sm:$0xff]  ;;  %v558_v55 = vld [vmem:[%s8493_s0 + $0x10e0] sm:$0xff] }
  0x37   :  { %v2052_v11 = vadd.f32 %v2051_v63, %v2050_v51  ;;  %v4680_v16 = vsel %vm863_vm0, %v213_v62, 0.0  ;;  %v2246_v18 = vrot.slane %v2245_v6, 2  ;;  %v2481_v19 = vmul.f32 0.020408163, %v1664_v4  ;;  %v303_v60 = vld [vmem:[%s8493_s0 + $0x8e8] sm:$0xff]  ;;  %v393_v2 = vld [vmem:[%s8493_s0 + $0xbb8] sm:$0xff] }
  0x38   :  { %v1859_v17 = vadd.f32 %v1858_v5, %v1857_v58  ;;  %v2676_v20 = vsel %vm2664_vm3, %v2466_v7, %v2675_v0  ;;  %v860_v28 = vadd.f32 %v859_v14, %v63_v1  ;;  %v1055_v29 = vadd.f32 %v1054_v15, %v153_v8  ;;  %v633_v61 = vld [vmem:[%s8493_s0 + $0x1338] sm:$0x1]  ;;  %v483_v4 = vld [vmem:[%s8493_s0 + $0xe88] sm:$0xff] }
  0x39   :  { %v2053_v24 = vrot.slane %v2052_v11, 1  ;;  %v1249_v30 = vadd.f32 %v243_v10, %v228_v9  ;;  %v2247_v31 = vadd.f32 %v2246_v18, %v2245_v6  ;;  %v2677_v33 = vsel %vm2666_vm4, %v2481_v19, %v2676_v20  ;;  %v573_v5 = vld [vmem:[%s8493_s0 + $0x1158] sm:$0xff]  ;;  %v408_v10 = vld [vmem:[%s8493_s0 + $0xc30] sm:$0xff]  ;;  %v738_v18 = vld [vmem:[%s8493_s0 + $0x1680] sm:$0x1] }
  0x3a   :  { %v2496_v32 = vmul.f32 0.020408163, %v1859_v17  ;;  %v1254_v37 = vsel %vm863_vm0, %v318_v13, 0.0  ;;  %v861_v42 = vadd.f32 %v860_v28, %v78_v12  ;;  %v1056_v43 = vadd.f32 %v1055_v29, %v168_v22  ;;  %v663_v12 = vld [vmem:[%s8493_s0 + $0x1428] sm:$0xff]  ;;  %v588_v17 = vld [vmem:[%s8493_s0 + $0x11d0] sm:$0xff]  ;;  %v753_v29 = vld [vmem:[%s8493_s0 + $0x16f8] sm:$0xff] }
  0x3b   :  { %v2054_v38 = vadd.f32 %v2053_v24, %v2052_v11  ;;  %v1250_v44 = vadd.f32 %v1249_v30, %v258_v23  ;;  %v2248_v45 = vrot.slane %v2247_v31, 1  ;;  %v1444_v50 = vadd.f32 %v348_v26, %v333_v25  ;;  %v648_v11 = vld [vmem:[%s8493_s0 + $0x13b0] sm:$0xff]  ;;  %v513_v24 = vld [vmem:[%s8493_s0 + $0xf78] sm:$0xff]  ;;  %v678_v25 = vld [vmem:[%s8493_s0 + $0x14a0] sm:$0xff] }
  0x3c   :  { %v2678_v46 = vsel %vm2668_vm5, %v2496_v32, %v2677_v33  ;;  %v1449_v51 = vsel %vm863_vm0, %v423_v27, 0.0  ;;  %v862_v56 = vadd.f32 %v861_v42, %v93_v21  ;;  %v1057_v57 = vadd.f32 %v1056_v43, %v183_v34  ;;  %v768_v30 = vld [vmem:[%s8493_s0 + $0x1770] sm:$0xff]  ;;  %v783_v42 = vld [vmem:[%s8493_s0 + $0x17e8] sm:$0xff] }
  0x3d   :  { %v2511_v52 = vmul.f32 0.020408163, %v2054_v38  ;;  %v1251_v58 = vadd.f32 %v1250_v44, %v273_v35  ;;  %v2249_v59 = vadd.f32 %v2248_v45, %v2247_v31  ;;  %v1445_v62 = vadd.f32 %v1444_v50, %v363_v36  ;;  %v693_v35 = vld [vmem:[%s8493_s0 + $0x1518] sm:$0xff] }
  0x3e   :  { %v1639_v63 = vadd.f32 %v453_v40, %v438_v39  ;;  %v1644_v0 = vsel %vm863_vm0, %v528_v41, 0.0  ;;  %v865_v6 = vadd.f32 %v4662_v3, %v862_v56  ;;  %v1058_v7 = vadd.f32 %v1057_v57, %v198_v47  ;;  %v498_v3 = vld [vmem:[%s8493_s0 + $0xf00] sm:$0xff]  ;;  %v723_v57 = vld [vmem:[%s8493_s0 + $0x1608] sm:$0xff] }
  0x3f   :  { %v2679_v1 = vsel %vm2670_vm6, %v2511_v52, %v2678_v46  ;;  %v1252_v8 = vadd.f32 %v1251_v58, %v288_v48  ;;  %v2526_v9 = vmul.f32 0.020408163, %v2249_v59  ;;  %v1446_v13 = vadd.f32 %v1445_v62, %v378_v49  ;;  %v618_v41 = vld [vmem:[%s8493_s0 + $0x12c0] sm:$0xff]  ;;  %v708_v46 = vld [vmem:[%s8493_s0 + $0x1590] sm:$0xff] }
  0x40   :  { %v1640_v14 = vadd.f32 %v1639_v63, %v468_v53  ;;  %v1834_v15 = vadd.f32 %v558_v55, %v543_v54  ;;  %v866_v19 = vrot.slane %v865_v6, 4  ;;  %v1060_v20 = vadd.f32 %v4680_v16, %v1058_v7  ;;  %v603_v16 = vld [vmem:[%s8493_s0 + $0x1248] sm:$0xff]  ;;  %v798_v52 = vld [vmem:[%s8493_s0 + $0x1860] sm:$0xff] }
  0x41   :  { %v1253_v21 = vadd.f32 %v1252_v8, %v303_v60  ;;  %v1839_v22 = vsel %vm863_vm0, %v633_v61, 0.0  ;;  %v2680_v23 = vsel %vm2672_vm7, %v2526_v9, %v2679_v1  ;;  %v1447_v26 = vadd.f32 %v1446_v13, %v393_v2 }
  0x42   :  { %v1641_v27 = vadd.f32 %v1640_v14, %v483_v4  ;;  %v1835_v28 = vadd.f32 %v1834_v15, %v573_v5  ;;  %2788 = vst [vmem:[#allocation2 + $0x8] sm:$0xff] %v2680_v23  ;;  %3113 = vmatprep.mubr.f32.mxu0 %v2680_v23  ;;  %v867_v31 = vadd.f32 %v866_v19, %v865_v6  ;;  %v1061_v32 = vrot.slane %v1060_v20, 4  ;;  %v843_v4 = vld [vmem:[%s8493_s0 + $0x19c8] sm:$0x1] }
  0x43   :  { %v1255_v33 = vadd.f32 %v1254_v37, %v1253_v21  ;;  %v2029_v34 = vadd.f32 %v663_v12, %v648_v11  ;;  %v1448_v36 = vadd.f32 %v1447_v26, %v408_v10  ;;  %v2034_v40 = vsel %vm863_vm0, %v738_v18, 0.0  ;;  %v2883_v26 = vld [vmem:[%s8494_s1 + $0x288] sm:$0xff] }
  0x44   :  { %v1642_v38 = vadd.f32 %v1641_v27, %v498_v3  ;;  %v1836_v39 = vadd.f32 %v1835_v28, %v588_v17  ;;  %v868_v43 = vrot.slane %v867_v31, 2  ;;  %v1062_v37 = vadd.f32 %v1061_v32, %v1060_v20 }
  0x45   :  { %v1256_v44 = vrot.slane %v1255_v33, 4  ;;  %v2030_v45 = vadd.f32 %v2029_v34, %v678_v25  ;;  %v1450_v47 = vadd.f32 %v1449_v51, %v1448_v36  ;;  %v2224_v50 = vadd.f32 %v768_v30, %v753_v29  ;;  %v813_v51 = vld [vmem:[%s8493_s0 + $0x18d8] sm:$0xff]  ;;  %v2882_v25 = vld [vmem:[%s8494_s1 + $0x280] sm:$0xff]  ;;  %v111_v36 = vld [vmem:[%s8493_s0 + $0x2e8] sm:$0x1] }
  0x46   :  { %v1643_v48 = vadd.f32 %v1642_v38, %v513_v24  ;;  %v1837_v49 = vadd.f32 %v1836_v39, %v603_v16  ;;  %v869_v53 = vadd.f32 %v868_v43, %v867_v31  ;;  %v1063_v54 = vrot.slane %v1062_v37, 2  ;;  %v21_v34 = vld [vmem:[%s8493_s0 + $0x18] sm:$0xff] }
  0x47   :  { %v1257_v55 = vadd.f32 %v1256_v44, %v1255_v33  ;;  %v2031_v56 = vadd.f32 %v2030_v45, %v693_v35  ;;  %v1451_v58 = vrot.slane %v1450_v47, 4  ;;  %v2225_v61 = vadd.f32 %v2224_v50, %v783_v42  ;;  %v36_v35 = vld [vmem:[%s8493_s0 + $0x90] sm:$0xff]  ;;  %v51_v42 = vld [vmem:[%s8493_s0 + $0x108] sm:$0xff] }
  0x48   :  { %v1645_v59 = vadd.f32 %v1644_v0, %v1643_v48  ;;  %v1838_v60 = vadd.f32 %v1837_v49, %v618_v41  ;;  %v870_v62 = vrot.slane %v869_v53, 1  ;;  %v1064_v63 = vadd.f32 %v1063_v54, %v1062_v37  ;;  %v828_v0 = vld [vmem:[%s8493_s0 + $0x1950] sm:$0xff] }
  0x49   :  { %v1258_v1 = vrot.slane %v1257_v55, 2  ;;  %v2032_v2 = vadd.f32 %v2031_v56, %v708_v46  ;;  %v1452_v5 = vadd.f32 %v1451_v58, %v1450_v47  ;;  %v2226_v8 = vadd.f32 %v2225_v61, %v798_v52  ;;  %v126_v46 = vld [vmem:[%s8493_s0 + $0x360] sm:$0xff]  ;;  %v141_v47 = vld [vmem:[%s8493_s0 + $0x3d8] sm:$0xff]  ;;  %v216_v48 = vld [vmem:[%s8493_s0 + $0x630] sm:$0x1] }
  0x4a   :  { %v1646_v6 = vrot.slane %v1645_v59, 4  ;;  %v1840_v7 = vadd.f32 %v1839_v22, %v1838_v60  ;;  %v871_v9 = vadd.f32 %v870_v62, %v869_v53  ;;  %v1065_v10 = vrot.slane %v1064_v63, 1  ;;  %v66_v52 = vld [vmem:[%s8493_s0 + $0x180] sm:$0xff]  ;;  %v231_v60 = vld [vmem:[%s8493_s0 + $0x6a8] sm:$0xff]  ;;  %v81_v62 = vld [vmem:[%s8493_s0 + $0x1f8] sm:$0xff] }
  0x4b   :  { %v1259_v11 = vadd.f32 %v1258_v1, %v1257_v55  ;;  %v2033_v12 = vadd.f32 %v2032_v2, %v723_v57  ;;  %v1453_v13 = vrot.slane %v1452_v5, 2  ;;  %v2227_v3 = vadd.f32 %v2226_v8, %v813_v51  ;;  %v246_v61 = vld [vmem:[%s8493_s0 + $0x720] sm:$0xff] }
  0x4c   :  { %v1647_v14 = vadd.f32 %v1646_v6, %v1645_v59  ;;  %v1841_v15 = vrot.slane %v1840_v7, 4  ;;  %v1066_v17 = vadd.f32 %v1065_v10, %v1064_v63  ;;  %v2229_v20 = vsel %vm863_vm0, %v843_v4, 0.0  ;;  %v156_v59 = vld [vmem:[%s8493_s0 + $0x450] sm:$0xff]  ;;  %v321_v63 = vld [vmem:[%s8493_s0 + $0x978] sm:$0x1] }
  0x4d   :  { %v1260_v18 = vrot.slane %v1259_v11, 1  ;;  %v2035_v19 = vadd.f32 %v2034_v40, %v2033_v12  ;;  %v1454_v21 = vadd.f32 %v1453_v13, %v1452_v5  ;;  %v2228_v24 = vadd.f32 %v2227_v3, %v828_v0  ;;  %v96_v0 = vld [vmem:[%s8493_s0 + $0x270] sm:$0xff]  ;;  %v261_v10 = vld [vmem:[%s8493_s0 + $0x798] sm:$0xff]  ;;  %v351_v13 = vld [vmem:[%s8493_s0 + $0xa68] sm:$0xff] }
  0x4e   :  { %v1648_v22 = vrot.slane %v1647_v14, 2  ;;  %v1842_v23 = vadd.f32 %v1841_v15, %v1840_v7  ;;  %v2420_v16 = vmul.f32 0.020408163, %v871_v9  ;;  %v2435_v29 = vmul.f32 0.020408163, %v1066_v17  ;;  %v171_v9 = vld [vmem:[%s8493_s0 + $0x4c8] sm:$0xff] }
  0x4f   :  { %v1261_v27 = vadd.f32 %v1260_v18, %v1259_v11  ;;  %v2036_v28 = vrot.slane %v2035_v19, 4  ;;  %v1455_v30 = vrot.slane %v1454_v21, 1  ;;  %v2230_v33 = vadd.f32 %v2229_v20, %v2228_v24  ;;  %v336_v12 = vld [vmem:[%s8493_s0 + $0x9f0] sm:$0xff] }
  0x50   :  { %v1649_v31 = vadd.f32 %v1648_v22, %v1647_v14  ;;  %v1843_v32 = vrot.slane %v1842_v23, 2  ;;  %v2661_v40 = vsel %vm2660_vm1, %v2435_v29, %v2420_v16  ;;  %v4000_v41 = vpack.c.bf16 %v2883_v26, %v2882_v25  ;;  %v426_v14 = vld [vmem:[%s8493_s0 + $0xcc0] sm:$0x1]  ;;  %v276_v22 = vld [vmem:[%s8493_s0 + $0x810] sm:$0xff]  ;;  %v441_v26 = vld [vmem:[%s8493_s0 + $0xd38] sm:$0xff] }
  0x51   :  { %v2037_v38 = vadd.f32 %v2036_v28, %v2035_v19  ;;  %v2450_v39 = vmul.f32 0.020408163, %v1261_v27  ;;  %v1456_v43 = vadd.f32 %v1455_v30, %v1454_v21  ;;  %v2231_v45 = vrot.slane %v2230_v33, 4  ;;  %v186_v21 = vld [vmem:[%s8493_s0 + $0x540] sm:$0xff]  ;;  %v456_v27 = vld [vmem:[%s8493_s0 + $0xdb0] sm:$0xff] }
  0x52   :  { %v1650_v37 = vrot.slane %v1649_v31, 1  ;;  %v1844_v44 = vadd.f32 %v1843_v32, %v1842_v23  ;;  %4001 = vmatprep.subr.bf16.mxu0 %v4000_v41  ;;  %v898_v53 = vadd.f32 %v36_v35, %v21_v34  ;;  %v4857_v54 = vsel %vm863_vm0, %v111_v36, 0.0  ;;  %v366_v23 = vld [vmem:[%s8493_s0 + $0xae0] sm:$0xff]  ;;  %v531_v28 = vld [vmem:[%s8493_s0 + $0x1008] sm:$0x1]  ;;  %v381_v35 = vld [vmem:[%s8493_s0 + $0xb58] sm:$0xff] }
  0x53   :  { %v2038_v49 = vrot.slane %v2037_v38, 2  ;;  %v2663_v50 = vsel %vm2662_vm2, %v2450_v39, %v2661_v40  ;;  %v2232_v57 = vadd.f32 %v2231_v45, %v2230_v33  ;;  %v2465_v58 = vmul.f32 0.020408163, %v1456_v43  ;;  %v201_v33 = vld [vmem:[%s8493_s0 + $0x5b8] sm:$0xff]  ;;  %v291_v34 = vld [vmem:[%s8493_s0 + $0x888] sm:$0xff]  ;;  %v546_v41 = vld [vmem:[%s8493_s0 + $0x1080] sm:$0xff] }
  0x54   :  { %v1651_v55 = vadd.f32 %v1650_v37, %v1649_v31  ;;  %v1845_v56 = vrot.slane %v1844_v44, 1  ;;  %v899_v1 = vadd.f32 %v898_v53, %v51_v42  ;;  %v1093_v2 = vadd.f32 %v141_v47, %v126_v46  ;;  %v471_v40 = vld [vmem:[%s8493_s0 + $0xe28] sm:$0xff]  ;;  %v561_v42 = vld [vmem:[%s8493_s0 + $0x10f8] sm:$0xff]  ;;  %v306_v46 = vld [vmem:[%s8493_s0 + $0x900] sm:$0xff] }
  0x55   :  { %v2039_v51 = vadd.f32 %v2038_v49, %v2037_v38  ;;  %v4875_v4 = vsel %vm863_vm0, %v216_v48, 0.0  ;;  %v2233_v6 = vrot.slane %v2232_v57, 2  ;;  %v2665_v8 = vsel %vm2664_vm3, %v2465_v58, %v2663_v50  ;;  %v636_v47 = vld [vmem:[%s8493_s0 + $0x1350] sm:$0x1] }
  0x56   :  { %v1846_v5 = vadd.f32 %v1845_v56, %v1844_v44  ;;  %v2480_v7 = vmul.f32 0.020408163, %v1651_v55  ;;  %v900_v15 = vadd.f32 %v899_v1, %v66_v52  ;;  %v1094_v3 = vadd.f32 %v1093_v2, %v156_v59  ;;  %v396_v53 = vld [vmem:[%s8493_s0 + $0xbd0] sm:$0xff]  ;;  %v486_v55 = vld [vmem:[%s8493_s0 + $0xea0] sm:$0xff] }
  0x57   :  { %v2040_v11 = vrot.slane %v2039_v51, 1  ;;  %v1288_v17 = vadd.f32 %v246_v61, %v231_v60  ;;  %v2234_v18 = vadd.f32 %v2233_v6, %v2232_v57  ;;  %v1293_v24 = vsel %vm863_vm0, %v321_v63, 0.0  ;;  %v576_v56 = vld [vmem:[%s8493_s0 + $0x1170] sm:$0xff]  ;;  %v411_v61 = vld [vmem:[%s8493_s0 + $0xc48] sm:$0xff]  ;;  %v741_v6 = vld [vmem:[%s8493_s0 + $0x1698] sm:$0x1] }
  0x58   :  { %v2495_v19 = vmul.f32 0.020408163, %v1846_v5  ;;  %v2667_v20 = vsel %vm2666_vm4, %v2480_v7, %v2665_v8  ;;  %v901_v16 = vadd.f32 %v900_v15, %v81_v62  ;;  %v1095_v29 = vadd.f32 %v1094_v3, %v171_v9  ;;  %v666_v62 = vld [vmem:[%s8493_s0 + $0x1440] sm:$0xff]  ;;  %v591_v5 = vld [vmem:[%s8493_s0 + $0x11e8] sm:$0xff]  ;;  %v756_v3 = vld [vmem:[%s8493_s0 + $0x1710] sm:$0xff] }
  0x59   :  { %v2041_v25 = vadd.f32 %v2040_v11, %v2039_v51  ;;  %v1289_v30 = vadd.f32 %v1288_v17, %v261_v10  ;;  %v2235_v31 = vrot.slane %v2234_v18, 1  ;;  %v1483_v36 = vadd.f32 %v351_v13, %v336_v12  ;;  %v651_v51 = vld [vmem:[%s8493_s0 + $0x13c8] sm:$0xff]  ;;  %v516_v11 = vld [vmem:[%s8493_s0 + $0xf90] sm:$0xff]  ;;  %v681_v12 = vld [vmem:[%s8493_s0 + $0x14b8] sm:$0xff] }
  0x5a   :  { %v2669_v32 = vsel %vm2668_vm5, %v2495_v19, %v2667_v20  ;;  %v1488_v38 = vsel %vm863_vm0, %v426_v14, 0.0  ;;  %v902_v43 = vadd.f32 %v901_v16, %v96_v0  ;;  %v1096_v37 = vadd.f32 %v1095_v29, %v186_v21  ;;  %v771_v17 = vld [vmem:[%s8493_s0 + $0x1788] sm:$0xff]  ;;  %v786_v16 = vld [vmem:[%s8493_s0 + $0x1800] sm:$0xff] }
  0x5b   :  { %v2510_v39 = vmul.f32 0.020408163, %v2041_v25  ;;  %v1290_v44 = vadd.f32 %v1289_v30, %v276_v22  ;;  %v2236_v45 = vadd.f32 %v2235_v31, %v2234_v18  ;;  %v1484_v48 = vadd.f32 %v1483_v36, %v366_v23  ;;  %v696_v22 = vld [vmem:[%s8493_s0 + $0x1530] sm:$0xff] }
  0x5c   :  { %v1678_v49 = vadd.f32 %v456_v27, %v441_v26  ;;  %v1683_v50 = vsel %vm863_vm0, %v531_v28, 0.0  ;;  %v904_v57 = vadd.f32 %v4857_v54, %v902_v43  ;;  %v1097_v58 = vadd.f32 %v1096_v37, %v201_v33  ;;  %v501_v54 = vld [vmem:[%s8493_s0 + $0xf18] sm:$0xff]  ;;  %v726_v37 = vld [vmem:[%s8493_s0 + $0x1620] sm:$0xff] }
  0x5d   :  { %v2671_v52 = vsel %vm2670_vm6, %v2510_v39, %v2669_v32  ;;  %v1291_v59 = vadd.f32 %v1290_v44, %v291_v34  ;;  %v2525_v60 = vmul.f32 0.020408163, %v2236_v45  ;;  %v1485_v63 = vadd.f32 %v1484_v48, %v381_v35  ;;  %v621_v28 = vld [vmem:[%s8493_s0 + $0x12d8] sm:$0xff]  ;;  %v711_v32 = vld [vmem:[%s8493_s0 + $0x15a8] sm:$0xff] }
  0x5e   :  { %v1679_v1 = vadd.f32 %v1678_v49, %v471_v40  ;;  %v1873_v2 = vadd.f32 %v561_v42, %v546_v41  ;;  %v905_v7 = vrot.slane %v904_v57, 4  ;;  %v1099_v8 = vadd.f32 %v4875_v4, %v1097_v58  ;;  %v606_v4 = vld [vmem:[%s8493_s0 + $0x1260] sm:$0xff]  ;;  %v801_v39 = vld [vmem:[%s8493_s0 + $0x1878] sm:$0xff] }
  0x5f   :  { %v1292_v0 = vadd.f32 %v1291_v59, %v306_v46  ;;  %v1878_v9 = vsel %vm863_vm0, %v636_v47, 0.0  ;;  %v2673_v10 = vsel %vm2672_vm7, %v2525_v60, %v2671_v52  ;;  %v1486_v13 = vadd.f32 %v1485_v63, %v396_v53 }
  0x60   :  { %v1680_v14 = vadd.f32 %v1679_v1, %v486_v55  ;;  %v1874_v15 = vadd.f32 %v1873_v2, %v576_v56  ;;  %2787 = vst [vmem:[#allocation2] sm:$0xff] %v2673_v10  ;;  %3114 = vmatmul.mubr.f32.vlgmr.msra.gmra.mrb[0].mxu0 %v2673_v10  ;;  %v906_v18 = vadd.f32 %v905_v7, %v904_v57  ;;  %v1100_v19 = vrot.slane %v1099_v8, 4  ;;  %v846_v55 = vld [vmem:[%s8493_s0 + $0x19e0] sm:$0x1] }
  0x61   :  { %v1294_v20 = vadd.f32 %v1293_v24, %v1292_v0  ;;  %v2068_v21 = vadd.f32 %v666_v62, %v651_v51  ;;  %v1487_v23 = vadd.f32 %v1486_v13, %v411_v61  ;;  %v2073_v27 = vsel %vm863_vm0, %v741_v6, 0.0  ;;  %v2867_v13 = vld [vmem:[%s8494_s1 + $0x208] sm:$0xff] }
  0x62   :  { %v1681_v25 = vadd.f32 %v1680_v14, %v501_v54  ;;  %v1875_v26 = vadd.f32 %v1874_v15, %v591_v5  ;;  %v907_v29 = vrot.slane %v906_v18, 2  ;;  %v1101_v24 = vadd.f32 %v1100_v19, %v1099_v8 }
  0x63   :  { %v1295_v30 = vrot.slane %v1294_v20, 4  ;;  %v2069_v31 = vadd.f32 %v2068_v21, %v681_v12  ;;  %v1489_v33 = vadd.f32 %v1488_v38, %v1487_v23  ;;  %v2263_v36 = vadd.f32 %v771_v17, %v756_v3  ;;  %v816_v38 = vld [vmem:[%s8493_s0 + $0x18f0] sm:$0xff]  ;;  %v2866_v12 = vld [vmem:[%s8494_s1 + $0x200] sm:$0xff] }
  0x64   :  { %v1682_v34 = vadd.f32 %v1681_v25, %v516_v11  ;;  %v1876_v35 = vadd.f32 %v1875_v26, %v606_v4  ;;  %v908_v40 = vadd.f32 %v907_v29, %v906_v18  ;;  %v1102_v41 = vrot.slane %v1101_v24, 2  ;;  %v20_v21 = vld [vmem:[%s8493_s0 + $0x10] sm:$0xff]  ;;  %v110_v23 = vld [vmem:[%s8493_s0 + $0x2e0] sm:$0x1] }
  0x65   :  { %v1296_v42 = vadd.f32 %v1295_v30, %v1294_v20  ;;  %v2070_v43 = vadd.f32 %v2069_v31, %v696_v22  ;;  %v1490_v44 = vrot.slane %v1489_v33, 4  ;;  %v2264_v47 = vadd.f32 %v2263_v36, %v786_v16  ;;  %v35_v22 = vld [vmem:[%s8493_s0 + $0x88] sm:$0xff]  ;;  %v50_v16 = vld [vmem:[%s8493_s0 + $0x100] sm:$0xff] }
  0x66   :  { %v1684_v45 = vadd.f32 %v1683_v50, %v1682_v34  ;;  %v1877_v46 = vadd.f32 %v1876_v35, %v621_v28  ;;  %v909_v48 = vrot.slane %v908_v40, 1  ;;  %v1103_v49 = vadd.f32 %v1102_v41, %v1101_v24  ;;  %v831_v50 = vld [vmem:[%s8493_s0 + $0x1968] sm:$0xff] }
  0x67   :  { %v1297_v52 = vrot.slane %v1296_v42, 2  ;;  %v2071_v53 = vadd.f32 %v2070_v43, %v711_v32  ;;  %v1491_v56 = vadd.f32 %v1490_v44, %v1489_v33  ;;  %v2265_v59 = vadd.f32 %v2264_v47, %v801_v39  ;;  %v125_v32 = vld [vmem:[%s8493_s0 + $0x358] sm:$0xff]  ;;  %v140_v33 = vld [vmem:[%s8493_s0 + $0x3d0] sm:$0xff]  ;;  %v215_v34 = vld [vmem:[%s8493_s0 + $0x628] sm:$0x1] }
  0x68   :  { %v1685_v57 = vrot.slane %v1684_v45, 4  ;;  %v1879_v58 = vadd.f32 %v1878_v9, %v1877_v46  ;;  %v910_v60 = vadd.f32 %v909_v48, %v908_v40  ;;  %v1104_v61 = vrot.slane %v1103_v49, 1  ;;  %v65_v39 = vld [vmem:[%s8493_s0 + $0x178] sm:$0xff]  ;;  %v230_v46 = vld [vmem:[%s8493_s0 + $0x6a0] sm:$0xff]  ;;  %v80_v48 = vld [vmem:[%s8493_s0 + $0x1f0] sm:$0xff] }
  0x69   :  { %v1298_v51 = vadd.f32 %v1297_v52, %v1296_v42  ;;  %v2072_v62 = vadd.f32 %v2071_v53, %v726_v37  ;;  %v1492_v63 = vrot.slane %v1491_v56, 2  ;;  %v2266_v54 = vadd.f32 %v2265_v59, %v816_v38  ;;  %v245_v47 = vld [vmem:[%s8493_s0 + $0x718] sm:$0xff] }
  0x6a   :  { %v1686_v1 = vadd.f32 %v1685_v57, %v1684_v45  ;;  %v1880_v2 = vrot.slane %v1879_v58, 4  ;;  %v1105_v5 = vadd.f32 %v1104_v61, %v1103_v49  ;;  %v2268_v8 = vsel %vm863_vm0, %v846_v55, 0.0  ;;  %v155_v45 = vld [vmem:[%s8493_s0 + $0x448] sm:$0xff]  ;;  %v320_v49 = vld [vmem:[%s8493_s0 + $0x970] sm:$0x1] }
  0x6b   :  { %v1299_v6 = vrot.slane %v1298_v51, 1  ;;  %v2074_v7 = vadd.f32 %v2073_v27, %v2072_v62  ;;  %v1493_v0 = vadd.f32 %v1492_v63, %v1491_v56  ;;  %v2267_v11 = vadd.f32 %v2266_v54, %v831_v50  ;;  %v95_v50 = vld [vmem:[%s8493_s0 + $0x268] sm:$0xff]  ;;  %v260_v61 = vld [vmem:[%s8493_s0 + $0x790] sm:$0xff]  ;;  %v350_v63 = vld [vmem:[%s8493_s0 + $0xa60] sm:$0xff] }
  0x6c   :  { %v1687_v9 = vrot.slane %v1686_v1, 2  ;;  %v1881_v10 = vadd.f32 %v1880_v2, %v1879_v58  ;;  %v2423_v4 = vmul.f32 0.020408163, %v910_v60  ;;  %v2438_v3 = vmul.f32 0.020408163, %v1105_v5  ;;  %v170_v60 = vld [vmem:[%s8493_s0 + $0x4c0] sm:$0xff] }
  0x6d   :  { %v1300_v14 = vadd.f32 %v1299_v6, %v1298_v51  ;;  %v2075_v15 = vrot.slane %v2074_v7, 4  ;;  %v1494_v17 = vrot.slane %v1493_v0, 1  ;;  %v2269_v20 = vadd.f32 %v2268_v8, %v2267_v11  ;;  %v335_v62 = vld [vmem:[%s8493_s0 + $0x9e8] sm:$0xff] }
  0x6e   :  { %v1688_v18 = vadd.f32 %v1687_v9, %v1686_v1  ;;  %v1882_v19 = vrot.slane %v1881_v10, 2  ;;  %v2688_v27 = vsel %vm2660_vm1, %v2438_v3, %v2423_v4  ;;  %v4002_v28 = vpack.c.bf16 %v2867_v13, %v2866_v12  ;;  %v425_v1 = vld [vmem:[%s8493_s0 + $0xcb8] sm:$0x1]  ;;  %v275_v9 = vld [vmem:[%s8493_s0 + $0x808] sm:$0xff]  ;;  %v440_v13 = vld [vmem:[%s8493_s0 + $0xd30] sm:$0xff] }
  0x6f   :  { %v2076_v25 = vadd.f32 %v2075_v15, %v2074_v7  ;;  %v2453_v26 = vmul.f32 0.020408163, %v1300_v14  ;;  %v1495_v29 = vadd.f32 %v1494_v17, %v1493_v0  ;;  %v2270_v31 = vrot.slane %v2269_v20, 4  ;;  %v185_v0 = vld [vmem:[%s8493_s0 + $0x538] sm:$0xff]  ;;  %v455_v14 = vld [vmem:[%s8493_s0 + $0xda8] sm:$0xff] }
  0x70   :  { %v1689_v24 = vrot.slane %v1688_v18, 1  ;;  %v1883_v30 = vadd.f32 %v1882_v19, %v1881_v10  ;;  %4003 = vmatpush3.bf16.msra.mxu0 %v4002_v28  ;;  %v885_v40 = vadd.f32 %v35_v22, %v20_v21  ;;  %v5052_v41 = vsel %vm863_vm0, %v110_v23, 0.0  ;;  %v365_v10 = vld [vmem:[%s8493_s0 + $0xad8] sm:$0xff]  ;;  %v530_v15 = vld [vmem:[%s8493_s0 + $0x1000] sm:$0x1]  ;;  %v380_v22 = vld [vmem:[%s8493_s0 + $0xb50] sm:$0xff] }
  0x71   :  { %v2077_v35 = vrot.slane %v2076_v25, 2  ;;  %v2689_v36 = vsel %vm2662_vm2, %v2453_v26, %v2688_v27  ;;  %v2271_v37 = vadd.f32 %v2270_v31, %v2269_v20  ;;  %v2468_v44 = vmul.f32 0.020408163, %v1495_v29  ;;  %v200_v20 = vld [vmem:[%s8493_s0 + $0x5b0] sm:$0xff]  ;;  %v290_v21 = vld [vmem:[%s8493_s0 + $0x880] sm:$0xff]  ;;  %v545_v28 = vld [vmem:[%s8493_s0 + $0x1078] sm:$0xff] }
  0x72   :  { %v1690_v42 = vadd.f32 %v1689_v24, %v1688_v18  ;;  %v1884_v43 = vrot.slane %v1883_v30, 1  ;;  %v886_v52 = vadd.f32 %v885_v40, %v50_v16  ;;  %v1080_v53 = vadd.f32 %v140_v33, %v125_v32  ;;  %v470_v27 = vld [vmem:[%s8493_s0 + $0xe20] sm:$0xff]  ;;  %v560_v16 = vld [vmem:[%s8493_s0 + $0x10f0] sm:$0xff]  ;;  %v305_v32 = vld [vmem:[%s8493_s0 + $0x8f8] sm:$0xff] }
  0x73   :  { %v2078_v38 = vadd.f32 %v2077_v35, %v2076_v25  ;;  %v5070_v55 = vsel %vm863_vm0, %v215_v34, 0.0  ;;  %v2272_v57 = vrot.slane %v2271_v37, 2  ;;  %v2690_v59 = vsel %vm2664_vm3, %v2468_v44, %v2689_v36  ;;  %v635_v33 = vld [vmem:[%s8493_s0 + $0x1348] sm:$0x1] }
  0x74   :  { %v1885_v56 = vadd.f32 %v1884_v43, %v1883_v30  ;;  %v2483_v58 = vmul.f32 0.020408163, %v1690_v42  ;;  %v887_v2 = vadd.f32 %v886_v52, %v65_v39  ;;  %v1081_v54 = vadd.f32 %v1080_v53, %v155_v45  ;;  %v395_v40 = vld [vmem:[%s8493_s0 + $0xbc8] sm:$0xff]  ;;  %v485_v42 = vld [vmem:[%s8493_s0 + $0xe98] sm:$0xff] }
  0x75   :  { %v2079_v51 = vrot.slane %v2078_v38, 1  ;;  %v1275_v5 = vadd.f32 %v245_v47, %v230_v46  ;;  %v2273_v6 = vadd.f32 %v2272_v57, %v2271_v37  ;;  %v1280_v11 = vsel %vm863_vm0, %v320_v49, 0.0  ;;  %v575_v43 = vld [vmem:[%s8493_s0 + $0x1168] sm:$0xff]  ;;  %v410_v47 = vld [vmem:[%s8493_s0 + $0xc40] sm:$0xff]  ;;  %v740_v57 = vld [vmem:[%s8493_s0 + $0x1690] sm:$0x1] }
  0x76   :  { %v2498_v7 = vmul.f32 0.020408163, %v1885_v56  ;;  %v2691_v8 = vsel %vm2666_vm4, %v2483_v58, %v2690_v59  ;;  %v888_v4 = vadd.f32 %v887_v2, %v80_v48  ;;  %v1082_v3 = vadd.f32 %v1081_v54, %v170_v60  ;;  %v665_v48 = vld [vmem:[%s8493_s0 + $0x1438] sm:$0xff]  ;;  %v590_v56 = vld [vmem:[%s8493_s0 + $0x11e0] sm:$0xff]  ;;  %v755_v54 = vld [vmem:[%s8493_s0 + $0x1708] sm:$0xff] }
  0x77   :  { %v2080_v12 = vadd.f32 %v2079_v51, %v2078_v38  ;;  %v1276_v17 = vadd.f32 %v1275_v5, %v260_v61  ;;  %v2274_v18 = vrot.slane %v2273_v6, 1  ;;  %v1470_v23 = vadd.f32 %v350_v63, %v335_v62  ;;  %v650_v38 = vld [vmem:[%s8493_s0 + $0x13c0] sm:$0xff]  ;;  %v515_v51 = vld [vmem:[%s8493_s0 + $0xf88] sm:$0xff]  ;;  %v680_v62 = vld [vmem:[%s8493_s0 + $0x14b0] sm:$0xff] }
  0x78   :  { %v2692_v19 = vsel %vm2668_vm5, %v2498_v7, %v2691_v8  ;;  %v1475_v25 = vsel %vm863_vm0, %v425_v1, 0.0  ;;  %v889_v29 = vadd.f32 %v888_v4, %v95_v50  ;;  %v1083_v24 = vadd.f32 %v1082_v3, %v185_v0  ;;  %v770_v5 = vld [vmem:[%s8493_s0 + $0x1780] sm:$0xff]  ;;  %v785_v4 = vld [vmem:[%s8493_s0 + $0x17f8] sm:$0xff] }
  0x79   :  { %v2513_v26 = vmul.f32 0.020408163, %v2080_v12  ;;  %v1277_v30 = vadd.f32 %v1276_v17, %v275_v9  ;;  %v2275_v31 = vadd.f32 %v2274_v18, %v2273_v6  ;;  %v1471_v34 = vadd.f32 %v1470_v23, %v365_v10  ;;  %v695_v9 = vld [vmem:[%s8493_s0 + $0x1528] sm:$0xff] }
  0x7a   :  { %v1665_v35 = vadd.f32 %v455_v14, %v440_v13  ;;  %v1670_v36 = vsel %vm863_vm0, %v530_v15, 0.0  ;;  %v891_v37 = vadd.f32 %v5052_v41, %v889_v29  ;;  %v1084_v44 = vadd.f32 %v1083_v24, %v200_v20  ;;  %v500_v41 = vld [vmem:[%s8493_s0 + $0xf10] sm:$0xff]  ;;  %v725_v24 = vld [vmem:[%s8493_s0 + $0x1618] sm:$0xff] }
  0x7b   :  { %v2693_v39 = vsel %vm2670_vm6, %v2513_v26, %v2692_v19  ;;  %v1278_v45 = vadd.f32 %v1277_v30, %v290_v21  ;;  %v2528_v46 = vmul.f32 0.020408163, %v2275_v31  ;;  %v1472_v49 = vadd.f32 %v1471_v34, %v380_v22  ;;  %v620_v15 = vld [vmem:[%s8493_s0 + $0x12d0] sm:$0xff]  ;;  %v710_v19 = vld [vmem:[%s8493_s0 + $0x15a0] sm:$0xff] }
  0x7c   :  { %v1666_v52 = vadd.f32 %v1665_v35, %v470_v27  ;;  %v1860_v53 = vadd.f32 %v560_v16, %v545_v28  ;;  %v892_v58 = vrot.slane %v891_v37, 4  ;;  %v1086_v59 = vadd.f32 %v5070_v55, %v1084_v44  ;;  %v605_v55 = vld [vmem:[%s8493_s0 + $0x1258] sm:$0xff]  ;;  %v800_v26 = vld [vmem:[%s8493_s0 + $0x1870] sm:$0xff] }
  0x7d   :  { %v1279_v50 = vadd.f32 %v1278_v45, %v305_v32  ;;  %v1865_v60 = vsel %vm863_vm0, %v635_v33, 0.0  ;;  %v2694_v61 = vsel %vm2672_vm7, %v2528_v46, %v2693_v39  ;;  %v1473_v63 = vadd.f32 %v1472_v49, %v395_v40 }
  0x7e   :  { %v1667_v1 = vadd.f32 %v1666_v52, %v485_v42  ;;  %v1861_v2 = vadd.f32 %v1860_v53, %v575_v43  ;;  %2790 = vst [vmem:[#allocation2 + $0x18] sm:$0xff] %v2694_v61  ;;  %3183 = vmatprep.mubr.f32.mxu1 %v2694_v61  ;;  %v893_v6 = vadd.f32 %v892_v58, %v891_v37  ;;  %v1087_v7 = vrot.slane %v1086_v59, 4  ;;  %v845_v42 = vld [vmem:[%s8493_s0 + $0x19d8] sm:$0x1] }
  0x7f   :  { %v1281_v8 = vadd.f32 %v1280_v11, %v1279_v50  ;;  %v2055_v0 = vadd.f32 %v665_v48, %v650_v38  ;;  %v1474_v10 = vadd.f32 %v1473_v63, %v410_v47  ;;  %v2060_v14 = vsel %vm863_vm0, %v740_v57, 0.0  ;;  %v2914_v50 = vld [vmem:[%s8494_s1 + $0x380] sm:$0xff] }
  0x80   :  { %v1668_v12 = vadd.f32 %v1667_v1, %v500_v41  ;;  %v1862_v13 = vadd.f32 %v1861_v2, %v590_v56  ;;  %v894_v3 = vrot.slane %v893_v6, 2  ;;  %v1088_v11 = vadd.f32 %v1087_v7, %v1086_v59  ;;  %v5223_v1 = vld [vmem:[%s8494_s1 + $0x300] sm:$0xff]  ;;  %v5228_v2 = vld [vmem:[%s8494_s1 + $0x308] sm:$0xff] }
  0x81   :  { %v1282_v17 = vrot.slane %v1281_v8, 4  ;;  %v2056_v18 = vadd.f32 %v2055_v0, %v680_v62  ;;  %v1476_v20 = vadd.f32 %v1475_v25, %v1474_v10  ;;  %v2250_v23 = vadd.f32 %v770_v5, %v755_v54  ;;  %v815_v25 = vld [vmem:[%s8493_s0 + $0x18e8] sm:$0xff] }
  0x82   :  { %v1669_v21 = vadd.f32 %v1668_v12, %v515_v51  ;;  %v1863_v22 = vadd.f32 %v1862_v13, %v605_v55  ;;  %v895_v27 = vadd.f32 %v894_v3, %v893_v6  ;;  %v1089_v28 = vrot.slane %v1088_v11, 2  ;;  %v2884_v55 = vld [vmem:[%s8494_s1 + $0x290] sm:$0xff] }
  0x83   :  { %v1283_v16 = vadd.f32 %v1282_v17, %v1281_v8  ;;  %v2057_v29 = vadd.f32 %v2056_v18, %v695_v9  ;;  %v1477_v30 = vrot.slane %v1476_v20, 4  ;;  %v2251_v33 = vadd.f32 %v2250_v23, %v785_v4  ;;  %v2885_v8 = vld [vmem:[%s8494_s1 + $0x298] sm:$0xff]  ;;  %v2868_v13 = vld [vmem:[%s8494_s1 + $0x210] sm:$0xff] }
  0x84   :  { %v1671_v31 = vadd.f32 %v1670_v36, %v1669_v21  ;;  %v1864_v32 = vadd.f32 %v1863_v22, %v620_v15  ;;  %v896_v34 = vrot.slane %v895_v27, 1  ;;  %v1090_v35 = vadd.f32 %v1089_v28, %v1088_v11  ;;  %v830_v36 = vld [vmem:[%s8493_s0 + $0x1960] sm:$0xff]  ;;  %v5245_v15 = vld [vmem:[%s8494_s1 + $0x390] sm:$0xff]  ;;  %v5251_v18 = vld [vmem:[%s8494_s1 + $0x398] sm:$0xff] }
  0x85   :  { %v1284_v39 = vrot.slane %v1283_v16, 2  ;;  %v2058_v40 = vadd.f32 %v2057_v29, %v710_v19  ;;  %v1478_v43 = vadd.f32 %v1477_v30, %v1476_v20  ;;  %v2252_v45 = vadd.f32 %v2251_v33, %v800_v26  ;;  %v5256_v19 = vld [vmem:[%s8494_s1 + $0x310] sm:$0xff]  ;;  %v5261_v20 = vld [vmem:[%s8494_s1 + $0x318] sm:$0xff]  ;;  %v5271_v28 = vld [vmem:[%s8494_s1 + $0x2a8] sm:$0xff] }
  0x86   :  { %v1672_v37 = vrot.slane %v1671_v31, 4  ;;  %v1866_v44 = vadd.f32 %v1865_v60, %v1864_v32  ;;  %v897_v46 = vadd.f32 %v896_v34, %v895_v27  ;;  %v1091_v47 = vrot.slane %v1090_v35, 1  ;;  %v2915_v60 = vld [vmem:[%s8494_s1 + $0x388] sm:$0xff]  ;;  %v5266_v27 = vld [vmem:[%s8494_s1 + $0x2a0] sm:$0xff]  ;;  %v68_v32 = vld [vmem:[%s8493_s0 + $0x190] sm:$0xff] }
  0x87   :  { %v1285_v38 = vadd.f32 %v1284_v39, %v1283_v16  ;;  %v2059_v48 = vadd.f32 %v2058_v40, %v725_v24  ;;  %v1479_v49 = vrot.slane %v1478_v43, 2  ;;  %v2253_v41 = vadd.f32 %v2252_v45, %v815_v25  ;;  %v5276_v16 = vld [vmem:[%s8494_s1 + $0x220] sm:$0xff]  ;;  %v5281_v29 = vld [vmem:[%s8494_s1 + $0x228] sm:$0xff]  ;;  %v5319_v45 = vld [vmem:[%s8494_s1 + $0x230] sm:$0xff] }
  0x88   :  { %v1673_v52 = vadd.f32 %v1672_v37, %v1671_v31  ;;  %v1867_v53 = vrot.slane %v1866_v44, 4  ;;  %v1092_v56 = vadd.f32 %v1091_v47, %v1090_v35  ;;  %v2255_v59 = vsel %vm863_vm0, %v845_v42, 0.0  ;;  %v5286_v24 = vld [vmem:[%s8494_s1 + $0x3a0] sm:$0xff]  ;;  %v5294_v25 = vld [vmem:[%s8494_s1 + $0x3a8] sm:$0xff]  ;;  %v5309_v37 = vld [vmem:[%s8494_s1 + $0x2b0] sm:$0xff] }
  0x89   :  { %v1286_v57 = vrot.slane %v1285_v38, 1  ;;  %v2061_v58 = vadd.f32 %v2060_v14, %v2059_v48  ;;  %v1480_v61 = vadd.f32 %v1479_v49, %v1478_v43  ;;  %v2254_v63 = vadd.f32 %v2253_v41, %v830_v36  ;;  %v2869_v14 = vld [vmem:[%s8494_s1 + $0x218] sm:$0xff]  ;;  %v5299_v34 = vld [vmem:[%s8494_s1 + $0x320] sm:$0xff]  ;;  %v5304_v35 = vld [vmem:[%s8494_s1 + $0x328] sm:$0xff] }
  0x8a   :  { %v1674_v51 = vrot.slane %v1673_v52, 2  ;;  %v1868_v62 = vadd.f32 %v1867_v53, %v1866_v44  ;;  %v2422_v6 = vmul.f32 0.020408163, %v897_v46  ;;  %v2437_v7 = vmul.f32 0.020408163, %v1092_v56  ;;  %v5314_v44 = vld [vmem:[%s8494_s1 + $0x2b8] sm:$0xff] }
  0x8b   :  { %v1287_v54 = vadd.f32 %v1286_v57, %v1285_v38  ;;  %v2062_v5 = vrot.slane %v2061_v58, 4  ;;  %v1481_v0 = vrot.slane %v1480_v61, 1  ;;  %v2256_v12 = vadd.f32 %v2255_v59, %v2254_v63  ;;  %v5324_v36 = vld [vmem:[%s8494_s1 + $0x238] sm:$0xff]  ;;  %v5329_v46 = vld [vmem:[%s8494_s1 + $0x3b0] sm:$0xff]  ;;  %v5353_v56 = vld [vmem:[%s8494_s1 + $0x2c0] sm:$0xff] }
  0x8c   :  { %v1675_v9 = vadd.f32 %v1674_v51, %v1673_v52  ;;  %v1869_v10 = vrot.slane %v1868_v62, 2  ;;  %v2681_v11 = vsel %vm2660_vm1, %v2437_v7, %v2422_v6  ;;  %v4032_v17 = vpack.c.bf16 %v2915_v60, %v2914_v50  ;;  %v5334_v47 = vld [vmem:[%s8494_s1 + $0x3b8] sm:$0xff]  ;;  %v5343_v53 = vld [vmem:[%s8494_s1 + $0x330] sm:$0xff]  ;;  %v5358_v57 = vld [vmem:[%s8494_s1 + $0x2c8] sm:$0xff] }
  0x8d   :  { %v2063_v4 = vadd.f32 %v2062_v5, %v2061_v58  ;;  %v2452_v3 = vmul.f32 0.020408163, %v1287_v54  ;;  %v1482_v21 = vadd.f32 %v1481_v0, %v1480_v61  ;;  %v2257_v26 = vrot.slane %v2256_v12, 4  ;;  %v5348_v41 = vld [vmem:[%s8494_s1 + $0x338] sm:$0xff]  ;;  %v5364_v61 = vld [vmem:[%s8494_s1 + $0x240] sm:$0xff]  ;;  %v5369_v51 = vld [vmem:[%s8494_s1 + $0x248] sm:$0xff] }
  0x8e   :  { %v1676_v22 = vrot.slane %v1675_v9, 1  ;;  %v1870_v23 = vadd.f32 %v1869_v10, %v1868_v62  ;;  %4033 = vmatprep.subr.bf16.mxu1 %v4032_v17  ;;  %v4004_v33 = vpack.c.bf16 %v2885_v8, %v2884_v55  ;;  %v4006_v48 = vpack.c.bf16 %v2869_v14, %v2868_v13  ;;  %v5374_v62 = vld [vmem:[%s8494_s1 + $0x3c0] sm:$0xff]  ;;  %v5379_v63 = vld [vmem:[%s8494_s1 + $0x3c8] sm:$0xff]  ;;  %v5400_v0 = vld [vmem:[%s8494_s1 + $0x2d0] sm:$0xff] }
  0x8f   :  { %v2064_v30 = vrot.slane %v2063_v4, 2  ;;  %v2682_v31 = vsel %vm2662_vm2, %v2452_v3, %v2681_v11  ;;  %v2258_v42 = vadd.f32 %v2257_v26, %v2256_v12  ;;  %v2467_v43 = vmul.f32 0.020408163, %v1482_v21  ;;  %v5384_v55 = vld [vmem:[%s8494_s1 + $0x340] sm:$0xff]  ;;  %v5389_v54 = vld [vmem:[%s8494_s1 + $0x348] sm:$0xff]  ;;  %v5410_v10 = vld [vmem:[%s8494_s1 + $0x250] sm:$0xff] }
  0x90   :  { %v1677_v39 = vadd.f32 %v1676_v22, %v1675_v9  ;;  %v1871_v40 = vrot.slane %v1870_v23, 1  ;;  %4005 = vmatprep.subr.bf16.mxu0 %v4004_v33  ;;  %8524 = vst [vmem:[#allocation8_spill] sm:$0xff] %v5384_v55  ;;  %8525 = vst [vmem:[#allocation9_spill] sm:$0xff] %v5389_v54  ;;  %v4008_v6 = vpack.c.bf16 %v5271_v28, %v5266_v27  ;;  %v5405_v9 = vld [vmem:[%s8494_s1 + $0x2d8] sm:$0xff]  ;;  %v5420_v13 = vld [vmem:[%s8494_s1 + $0x3d0] sm:$0xff] }
  0x91   :  { %v2065_v38 = vadd.f32 %v2064_v30, %v2063_v4  ;;  %v2259_v59 = vrot.slane %v2258_v42, 2  ;;  %v2683_v60 = vsel %vm2664_vm3, %v2467_v43, %v2682_v31  ;;  %4007 = vmatpush3.bf16.msra.mxu0 %v4006_v48  ;;  %v4010_v7 = vpack.c.bf16 %v5281_v29, %v5276_v16  ;;  %v5415_v12 = vld [vmem:[%s8494_s1 + $0x258] sm:$0xff]  ;;  %8526 = vst [vmem:[#allocation10_spill] sm:$0xff] %v5420_v13  ;;  %v5433_v21 = vld [vmem:[%s8494_s1 + $0x350] sm:$0xff]  ;;  %v5448_v26 = vld [vmem:[%s8494_s1 + $0x2e8] sm:$0xff] }
  0x92   :  { %v1872_v58 = vadd.f32 %v1871_v40, %v1870_v23  ;;  %v2482_v50 = vmul.f32 0.020408163, %v1677_v39  ;;  %v5425_v14 = vld [vmem:[%s8494_s1 + $0x3d8] sm:$0xff]  ;;  %8528 = vst [vmem:[#allocation12_spill] sm:$0xff] %v5433_v21  ;;  %v5443_v23 = vld [vmem:[%s8494_s1 + $0x2e0] sm:$0xff]  ;;  %v5458_v28 = vld [vmem:[%s8494_s1 + $0x268] sm:$0xff]  ;;  %4009 = vmatprep.subr.bf16.mxu0 %v4008_v6  ;;  %v4012_v29 = vpack.c.bf16 %v5314_v44, %v5309_v37  ;;  %v4014_v30 = vpack.c.bf16 %v5324_v36, %v5319_v45 }
  0x93   :  { %v2066_v5 = vrot.slane %v2065_v38, 1  ;;  %8527 = vst [vmem:[#allocation11_spill] sm:$0xff] %v5425_v14  ;;  %v2260_v4 = vadd.f32 %v2259_v59, %v2258_v42  ;;  %v5438_v22 = vld [vmem:[%s8494_s1 + $0x358] sm:$0xff]  ;;  %v5453_v27 = vld [vmem:[%s8494_s1 + $0x260] sm:$0xff]  ;;  %v5474_v39 = vld [vmem:[%s8494_s1 + $0x3e8] sm:$0xff]  ;;  %v8537_v55 = vpack.c.bf16 %v5228_v2, %v5223_v1 }
  0x94   :  { %v2497_v3 = vmul.f32 0.020408163, %v1872_v58  ;;  %v2684_v11 = vsel %vm2666_vm4, %v2482_v50, %v2683_v60  ;;  %8529 = vst [vmem:[#allocation13_spill] sm:$0xff] %v5438_v22  ;;  %v5469_v33 = vld [vmem:[%s8494_s1 + $0x3e0] sm:$0xff]  ;;  %8531 = vst [vmem:[#allocation15_spill] sm:$0xff] %v5474_v39  ;;  %v5484_v42 = vld [vmem:[%s8494_s1 + $0x368] sm:$0xff] }
  0x95   :  { %v2067_v16 = vadd.f32 %v2066_v5, %v2065_v38  ;;  %8530 = vst [vmem:[#allocation14_spill] sm:$0xff] %v5469_v33  ;;  %v5479_v40 = vld [vmem:[%s8494_s1 + $0x360] sm:$0xff]  ;;  %8533 = vst [vmem:[#allocation17_spill] sm:$0xff] %v5484_v42  ;;  %v5489_v43 = vld [vmem:[%s8494_s1 + $0x2f0] sm:$0xff]  ;;  %v2261_v44 = vrot.slane %v2260_v4, 1  ;;  %v4016_v38 = vpack.c.bf16 %v5358_v57, %v5353_v56  ;;  %4011 = vmatpush3.bf16.msra.mxu0 %v4010_v7 }
  0x96   :  { %8532 = vst [vmem:[#allocation16_spill] sm:$0xff] %v5479_v40  ;;  %v5494_v37 = vld [vmem:[%s8494_s1 + $0x2f8] sm:$0xff]  ;;  %v2685_v45 = vsel %vm2668_vm5, %v2497_v3, %v2684_v11  ;;  %v5504_v48 = vld [vmem:[%s8494_s1 + $0x270] sm:$0xff]  ;;  %v23_v56 = vld [vmem:[%s8493_s0 + $0x28] sm:$0xff]  ;;  %4013 = vmatprep.subr.bf16.mxu0 %v4012_v29 }
  0x97   :  { %8534 = vst [vmem:[#allocation18_spill] sm:$0xff] %v5504_v48  ;;  %v5509_v58 = vld [vmem:[%s8494_s1 + $0x278] sm:$0xff]  ;;  %v5514_v59 = vld [vmem:[%s8494_s1 + $0x3f0] sm:$0xff]  ;;  %v38_v57 = vld [vmem:[%s8493_s0 + $0xa0] sm:$0xff]  ;;  %v2512_v60 = vmul.f32 0.020408163, %v2067_v16  ;;  %v2262_v16 = vadd.f32 %v2261_v44, %v2260_v4 }
  0x98   :  { %8535 = vst [vmem:[#allocation19_spill] sm:$0xff] %v5514_v59  ;;  %v5519_v50 = vld [vmem:[%s8494_s1 + $0x3f8] sm:$0xff]  ;;  %v128_v36 = vld [vmem:[%s8493_s0 + $0x370] sm:$0xff]  ;;  %v143_v7 = vld [vmem:[%s8493_s0 + $0x3e8] sm:$0xff]  ;;  %v924_v3 = vadd.f32 %v38_v57, %v23_v56 }
  0x99   :  { %8536 = vst [vmem:[#allocation20_spill] sm:$0xff] %v5519_v50  ;;  %v113_v11 = vld [vmem:[%s8493_s0 + $0x2f8] sm:$0x1]  ;;  %v218_v8 = vld [vmem:[%s8493_s0 + $0x640] sm:$0x1]  ;;  %v248_v29 = vld [vmem:[%s8493_s0 + $0x730] sm:$0xff]  ;;  %v2686_v44 = vsel %vm2670_vm6, %v2512_v60, %v2685_v45  ;;  %4015 = vmatpush3.bf16.msra.mxu0 %v4014_v30  ;;  %v1119_v57 = vadd.f32 %v143_v7, %v128_v36 }
  0x9a   :  { %v53_v17 = vld [vmem:[%s8493_s0 + $0x118] sm:$0xff]  ;;  %v158_v6 = vld [vmem:[%s8493_s0 + $0x460] sm:$0xff]  ;;  %v263_v5 = vld [vmem:[%s8493_s0 + $0x7a8] sm:$0xff]  ;;  %v2527_v31 = vmul.f32 0.020408163, %v2262_v16  ;;  %v5617_v59 = vsel %vm863_vm0, %v113_v11, 0.0  ;;  %4017 = vmatprep.subr.bf16.mxu0 %v4016_v38 }
  0x9b   :  { %v233_v4 = vld [vmem:[%s8493_s0 + $0x6b8] sm:$0xff]  ;;  %v323_v45 = vld [vmem:[%s8493_s0 + $0x988] sm:$0x1]  ;;  %v338_v60 = vld [vmem:[%s8493_s0 + $0xa00] sm:$0xff] }
  0x9c   :  { %v353_v21 = vld [vmem:[%s8493_s0 + $0xa78] sm:$0xff]  ;;  %v368_v16 = vld [vmem:[%s8493_s0 + $0xaf0] sm:$0xff]  ;;  %v278_v42 = vld [vmem:[%s8493_s0 + $0x820] sm:$0xff]  ;;  %v2687_v50 = vsel %vm2672_vm7, %v2527_v31, %v2686_v44  ;;  %v5633_v31 = vsel %vm863_vm0, %v218_v8, 0.0  ;;  %v1314_v38 = vadd.f32 %v248_v29, %v233_v4  ;;  %v5651_v7 = vsel %vm863_vm0, %v323_v45, 0.0 }
  0x9d   :  { %v428_v52 = vld [vmem:[%s8493_s0 + $0xcd0] sm:$0x1]  ;;  %v173_v40 = vld [vmem:[%s8493_s0 + $0x4d8] sm:$0xff]  ;;  %v443_v33 = vld [vmem:[%s8493_s0 + $0xd48] sm:$0xff]  ;;  %2789 = vst [vmem:[#allocation2 + $0x10] sm:$0xff] %v2687_v50  ;;  %3184 = vmatmul.mubr.f32.vlgmr.msra.gmra.mrb[0].mxu1 %v2687_v50  ;;  %v925_v50 = vadd.f32 %v924_v3, %v53_v17  ;;  %v1509_v4 = vadd.f32 %v353_v21, %v338_v60  ;;  %v1120_v21 = vadd.f32 %v1119_v57, %v158_v6 }
  0x9e   :  { %v458_v30 = vld [vmem:[%s8493_s0 + $0xdc0] sm:$0xff]  ;;  %v533_v49 = vld [vmem:[%s8493_s0 + $0x1018] sm:$0x1]  ;;  %v83_v39 = vld [vmem:[%s8493_s0 + $0x208] sm:$0xff]  ;;  %v5654_v29 = vsel %vm863_vm0, %v428_v52, 0.0  ;;  %4035 = vmatpush3.bf16.msra.mxu1 %v8537_v55  ;;  %v1315_v3 = vadd.f32 %v1314_v38, %v263_v5  ;;  %v8538_v55 = vpack.c.bf16 %v5251_v18, %v5245_v15  ;;  %v8539_v45 = vpack.c.bf16 %v5369_v51, %v5364_v61 }
  0x9f   :  { %v548_v22 = vld [vmem:[%s8493_s0 + $0x1090] sm:$0xff]  ;;  %v563_v13 = vld [vmem:[%s8493_s0 + $0x1108] sm:$0xff]  ;;  %v638_v56 = vld [vmem:[%s8493_s0 + $0x1360] sm:$0x1]  ;;  %v1704_v1 = vadd.f32 %v458_v30, %v443_v33  ;;  %v5672_v2 = vsel %vm863_vm0, %v533_v49, 0.0  ;;  %v926_v18 = vadd.f32 %v925_v50, %v68_v32  ;;  %v1510_v33 = vadd.f32 %v1509_v4, %v368_v16 }
  0xa0   :  { %v188_v11 = vld [vmem:[%s8493_s0 + $0x550] sm:$0xff]  ;;  %v293_v44 = vld [vmem:[%s8493_s0 + $0x898] sm:$0xff]  ;;  %v98_v54 = vld [vmem:[%s8493_s0 + $0x280] sm:$0xff]  ;;  %4037 = vmatprep.subr.bf16.mxu1 %v8538_v55  ;;  %4019 = vmatpush3.bf16.msra.mxu0 %v8539_v45  ;;  %v1899_v61 = vadd.f32 %v563_v13, %v548_v22  ;;  %v5693_v51 = vsel %vm863_vm0, %v638_v56, 0.0  ;;  %v8540_v6 = vpack.c.bf16 %v5405_v9, %v5400_v0  ;;  %v1121_v13 = vadd.f32 %v1120_v21, %v173_v40 }
  0xa1   :  { %v473_v14 = vld [vmem:[%s8493_s0 + $0xe38] sm:$0xff]  ;;  %v668_v36 = vld [vmem:[%s8493_s0 + $0x1450] sm:$0xff]  ;;  %v383_v48 = vld [vmem:[%s8493_s0 + $0xb68] sm:$0xff]  ;;  %v1316_v22 = vadd.f32 %v1315_v3, %v278_v42  ;;  %v927_v50 = vadd.f32 %v926_v18, %v83_v39 }
  0xa2   :  { %v653_v8 = vld [vmem:[%s8493_s0 + $0x13d8] sm:$0xff]  ;;  %v578_v17 = vld [vmem:[%s8493_s0 + $0x1180] sm:$0xff]  ;;  %v743_v52 = vld [vmem:[%s8493_s0 + $0x16a8] sm:$0x1]  ;;  %4021 = vmatprep.subr.bf16.mxu0 %v8540_v6  ;;  %v1705_v16 = vadd.f32 %v1704_v1, %v473_v14  ;;  %v1511_v4 = vadd.f32 %v1510_v33, %v383_v48  ;;  %v8541_v14 = vpack.c.bf16 %v5261_v20, %v5256_v19  ;;  %v1122_v48 = vadd.f32 %v1121_v13, %v188_v11 }
  0xa3   :  { %v203_v60 = vld [vmem:[%s8493_s0 + $0x5c8] sm:$0xff]  ;;  %v308_v5 = vld [vmem:[%s8493_s0 + $0x910] sm:$0xff]  ;;  %v398_v30 = vld [vmem:[%s8493_s0 + $0xbe0] sm:$0xff]  ;;  %v2094_v56 = vadd.f32 %v668_v36, %v653_v8  ;;  %v1900_v55 = vadd.f32 %v1899_v61, %v578_v17  ;;  %v2099_v40 = vsel %vm863_vm0, %v743_v52, 0.0  ;;  %v1317_v36 = vadd.f32 %v1316_v22, %v293_v44 }
  0xa4   :  { %v488_v49 = vld [vmem:[%s8493_s0 + $0xeb0] sm:$0xff]  ;;  %v683_v15 = vld [vmem:[%s8493_s0 + $0x14c8] sm:$0xff]  ;;  %v593_v57 = vld [vmem:[%s8493_s0 + $0x11f8] sm:$0xff]  ;;  %4039 = vmatpush3.bf16.msra.mxu1 %v8541_v14  ;;  %v8542_v19 = vpack.c.bf16 %v5294_v25, %v5286_v24  ;;  %v8543_v20 = vpack.c.bf16 %v5415_v12, %v5410_v10  ;;  %v928_v11 = vadd.f32 %v927_v50, %v98_v54  ;;  %v1512_v44 = vadd.f32 %v1511_v4, %v398_v30 }
  0xa5   :  { %v848_v32 = vld [vmem:[%s8493_s0 + $0x19f0] sm:$0x1]  ;;  %v413_v0 = vld [vmem:[%s8493_s0 + $0xc58] sm:$0xff]  ;;  %v503_v9 = vld [vmem:[%s8493_s0 + $0xf28] sm:$0xff]  ;;  %v1706_v17 = vadd.f32 %v1705_v16, %v488_v49  ;;  %v2095_v52 = vadd.f32 %v2094_v56, %v683_v15  ;;  %v1901_v1 = vadd.f32 %v1900_v55, %v593_v57  ;;  %v8544_v24 = vpack.c.bf16 %v5448_v26, %v5443_v23 }
  0xa6   :  { %v698_v38 = vld [vmem:[%s8493_s0 + $0x1540] sm:$0xff]  ;;  %v608_v42 = vld [vmem:[%s8493_s0 + $0x1270] sm:$0xff]  ;;  %v773_v39 = vld [vmem:[%s8493_s0 + $0x1798] sm:$0xff]  ;;  %4041 = vmatprep.subr.bf16.mxu1 %v8542_v19  ;;  %4023 = vmatpush3.bf16.msra.mxu0 %v8543_v20  ;;  %v5742_v45 = vsel %vm863_vm0, %v848_v32, 0.0  ;;  %v1123_v12 = vadd.f32 %v1122_v48, %v203_v60  ;;  %v1318_v49 = vadd.f32 %v1317_v36, %v308_v5  ;;  %v930_v33 = vadd.f32 %v5617_v59, %v928_v11 }
  0xa7   :  { %v758_v8 = vld [vmem:[%s8493_s0 + $0x1720] sm:$0xff]  ;;  %v713_v3 = vld [vmem:[%s8493_s0 + $0x15b8] sm:$0xff]  ;;  %4025 = vmatprep.subr.bf16.mxu0 %v8544_v24  ;;  %v623_v25 = vld [vmem:[%s8493_s0 + $0x12e8] sm:$0xff]  ;;  %v1707_v54 = vadd.f32 %v1706_v17, %v503_v9  ;;  %v2096_v15 = vadd.f32 %v2095_v52, %v698_v38  ;;  %v1513_v23 = vadd.f32 %v1512_v44, %v413_v0  ;;  %v1902_v26 = vadd.f32 %v1901_v1, %v608_v42 }
  0xa8   :  { %v518_v21 = vld [vmem:[%s8493_s0 + $0xfa0] sm:$0xff]  ;;  %v788_v10 = vld [vmem:[%s8493_s0 + $0x1810] sm:$0xff]  ;;  %v2289_v61 = vadd.f32 %v773_v39, %v758_v8  ;;  %v8545_v6 = vpack.c.bf16 %v5304_v35, %v5299_v34  ;;  %v803_v60 = vld [vmem:[%s8493_s0 + $0x1888] sm:$0xff]  ;;  %v1125_v5 = vadd.f32 %v5633_v31, %v1123_v12  ;;  %v1320_v30 = vadd.f32 %v5651_v7, %v1318_v49 }
  0xa9   :  { %v728_v18 = vld [vmem:[%s8493_s0 + $0x1630] sm:$0xff]  ;;  %v1708_v57 = vadd.f32 %v1707_v54, %v518_v21  ;;  %v2097_v32 = vadd.f32 %v2096_v15, %v713_v3  ;;  %v8546_v59 = vpack.c.bf16 %v5334_v47, %v5329_v46  ;;  %v8547_v13 = vpack.c.bf16 %v5458_v28, %v5453_v27  ;;  %v818_v7 = vld [vmem:[%s8493_s0 + $0x1900] sm:$0xff]  ;;  %v8553_v21 = vld [vmem:[#allocation9_spill] sm:$0xff] }
  0xaa   :  { %4043 = vmatpush3.bf16.msra.mxu1 %v8545_v6  ;;  %v931_v34 = vrot.slane %v930_v33, 4  ;;  %v1515_v35 = vadd.f32 %v5654_v29, %v1513_v23  ;;  %v1903_v22 = vadd.f32 %v1902_v26, %v623_v25  ;;  %v2290_v16 = vadd.f32 %v2289_v61, %v788_v10  ;;  %v8551_v14 = vld [vmem:[#allocation18_spill] sm:$0xff]  ;;  %v8554_v3 = vld [vmem:[#allocation8_spill] sm:$0xff]  ;;  %v8556_v1 = vld [vmem:[#allocation11_spill] sm:$0xff] }
  0xab   :  { %4045 = vmatprep.subr.bf16.mxu1 %v8546_v59  ;;  %4027 = vmatpush3.bf16.msra.mxu0 %v8547_v13  ;;  %v8548_v31 = vpack.c.bf16 %v5494_v37, %v5489_v43  ;;  %v1126_v56 = vrot.slane %v1125_v5, 4  ;;  %v1321_v46 = vrot.slane %v1320_v30, 4  ;;  %v1710_v47 = vadd.f32 %v5672_v2, %v1708_v57  ;;  %v833_v43 = vld [vmem:[%s8493_s0 + $0x1978] sm:$0xff]  ;;  %v8557_v24 = vld [vmem:[#allocation10_spill] sm:$0xff] }
  0xac   :  { %v2098_v0 = vadd.f32 %v2097_v32, %v728_v18  ;;  %v932_v27 = vadd.f32 %v931_v34, %v930_v33  ;;  %v1516_v28 = vrot.slane %v1515_v35, 4  ;;  %v1905_v9 = vadd.f32 %v5693_v51, %v1903_v22  ;;  %v22_v22 = vld [vmem:[%s8493_s0 + $0x20] sm:$0xff] }
  0xad   :  { %4029 = vmatprep.subr.bf16.mxu0 %v8548_v31  ;;  %v2291_v29 = vadd.f32 %v2290_v16, %v803_v60  ;;  %v8549_v38 = vpack.c.bf16 %v5348_v41, %v5343_v53  ;;  %v1127_v37 = vadd.f32 %v1126_v56, %v1125_v5  ;;  %v1322_v50 = vadd.f32 %v1321_v46, %v1320_v30  ;;  %v8559_v5 = vld [vmem:[#allocation13_spill] sm:$0xff]  ;;  %v8560_v30 = vld [vmem:[#allocation12_spill] sm:$0xff]  ;;  %v8562_v16 = vld [vmem:[#allocation15_spill] sm:$0xff] }
  0xae   :  { %v1711_v4 = vrot.slane %v1710_v47, 4  ;;  %v2100_v55 = vadd.f32 %v2099_v40, %v2098_v0  ;;  %v8550_v2 = vpack.c.bf16 %v5379_v63, %v5374_v62  ;;  %v8552_v51 = vpack.c.bf16 %v5509_v58, %v8551_v14  ;;  %v8563_v31 = vld [vmem:[#allocation14_spill] sm:$0xff]  ;;  %v67_v14 = vld [vmem:[%s8493_s0 + $0x188] sm:$0xff] }
  0xaf   :  { %4047 = vmatpush3.bf16.msra.mxu1 %v8549_v38  ;;  %v933_v42 = vrot.slane %v932_v27, 2  ;;  %v1517_v8 = vadd.f32 %v1516_v28, %v1515_v35  ;;  %v1906_v53 = vrot.slane %v1905_v9, 4  ;;  %v2292_v41 = vadd.f32 %v2291_v29, %v818_v7  ;;  %v2913_v35 = vld [vmem:[%s8494_s1 + $0x378] sm:$0xff]  ;;  %v112_v28 = vld [vmem:[%s8493_s0 + $0x2f0] sm:$0x1] }
  0xb0   :  { %4049 = vmatprep.subr.bf16.mxu1 %v8550_v2  ;;  %4031 = vmatpush3.bf16.msra.mxu0 %v8552_v51  ;;  %v1128_v39 = vrot.slane %v1127_v37, 2  ;;  %v1323_v48 = vrot.slane %v1322_v50, 2  ;;  %v1712_v36 = vadd.f32 %v1711_v4, %v1710_v47  ;;  %v2101_v17 = vrot.slane %v2100_v55, 4  ;;  %v127_v51 = vld [vmem:[%s8493_s0 + $0x368] sm:$0xff] }
  0xb1   :  { %v934_v52 = vadd.f32 %v933_v42, %v932_v27  ;;  %v1518_v19 = vrot.slane %v1517_v8, 2  ;;  %v1907_v20 = vadd.f32 %v1906_v53, %v1905_v9  ;;  %v2293_v40 = vadd.f32 %v2292_v41, %v833_v43  ;;  %v37_v27 = vld [vmem:[%s8493_s0 + $0x98] sm:$0xff]  ;;  %v142_v42 = vld [vmem:[%s8493_s0 + $0x3e0] sm:$0xff]  ;;  %v8565_v53 = vld [vmem:[#allocation17_spill] sm:$0xff] }
  0xb2   :  { %v8555_v62 = vpack.c.bf16 %v8553_v21, %v8554_v3  ;;  %v1129_v63 = vadd.f32 %v1128_v39, %v1127_v37  ;;  %v1324_v11 = vadd.f32 %v1323_v48, %v1322_v50  ;;  %v1713_v58 = vrot.slane %v1712_v36, 2  ;;  %v52_v37 = vld [vmem:[%s8493_s0 + $0x110] sm:$0xff]  ;;  %v8566_v41 = vld [vmem:[#allocation16_spill] sm:$0xff]  ;;  %v8569_v3 = vld [vmem:[#allocation19_spill] sm:$0xff] }
  0xb3   :  { %v2102_v44 = vadd.f32 %v2101_v17, %v2100_v55  ;;  %v8558_v25 = vpack.c.bf16 %v8556_v1, %v8557_v24  ;;  %v935_v10 = vrot.slane %v934_v52, 1  ;;  %v1519_v12 = vadd.f32 %v1518_v19, %v1517_v8  ;;  %v157_v8 = vld [vmem:[%s8493_s0 + $0x458] sm:$0xff]  ;;  %v232_v19 = vld [vmem:[%s8493_s0 + $0x6b0] sm:$0xff]  ;;  %v8568_v21 = vld [vmem:[#allocation20_spill] sm:$0xff] }
  0xb4   :  { %4051 = vmatpush3.bf16.msra.mxu1 %v8555_v62  ;;  %v1908_v49 = vrot.slane %v1907_v20, 2  ;;  %v2295_v54 = vadd.f32 %v5742_v45, %v2293_v40  ;;  %v1130_v15 = vrot.slane %v1129_v63, 1  ;;  %v1325_v18 = vrot.slane %v1324_v11, 1  ;;  %v2912_v45 = vld [vmem:[%s8494_s1 + $0x370] sm:$0xff]  ;;  %v262_v24 = vld [vmem:[%s8493_s0 + $0x7a0] sm:$0xff] }
  0xb5   :  { %4053 = vmatprep.subr.bf16.mxu1 %v8558_v25  ;;  %v1714_v33 = vadd.f32 %v1713_v58, %v1712_v36  ;;  %v2103_v23 = vrot.slane %v2102_v44, 2  ;;  %v936_v26 = vadd.f32 %v935_v10, %v934_v52  ;;  %v1520_v61 = vrot.slane %v1519_v12, 1  ;;  %v217_v52 = vld [vmem:[%s8493_s0 + $0x638] sm:$0x1]  ;;  %v172_v1 = vld [vmem:[%s8493_s0 + $0x4d0] sm:$0xff] }
  0xb6   :  { %v1909_v6 = vadd.f32 %v1908_v49, %v1907_v20  ;;  %v2296_v60 = vrot.slane %v2295_v54, 4  ;;  %v8561_v57 = vpack.c.bf16 %v8559_v5, %v8560_v30  ;;  %v1131_v32 = vadd.f32 %v1130_v15, %v1129_v63  ;;  %v247_v20 = vld [vmem:[%s8493_s0 + $0x728] sm:$0xff]  ;;  %v322_v25 = vld [vmem:[%s8493_s0 + $0x980] sm:$0x1]  ;;  %v337_v15 = vld [vmem:[%s8493_s0 + $0x9f8] sm:$0xff] }
  0xb7   :  { %v1326_v59 = vadd.f32 %v1325_v18, %v1324_v11  ;;  %v1715_v13 = vrot.slane %v1714_v33, 1  ;;  %v2104_v34 = vadd.f32 %v2103_v23, %v2102_v44  ;;  %v8564_v7 = vpack.c.bf16 %v8562_v16, %v8563_v31  ;;  %v82_v44 = vld [vmem:[%s8493_s0 + $0x200] sm:$0xff]  ;;  %v352_v18 = vld [vmem:[%s8493_s0 + $0xa70] sm:$0xff]  ;;  %v427_v5 = vld [vmem:[%s8493_s0 + $0xcc8] sm:$0x1] }
  0xb8   :  { %4055 = vmatpush3.bf16.msra.mxu1 %v8561_v57  ;;  %v1521_v56 = vadd.f32 %v1520_v61, %v1519_v12  ;;  %v1910_v46 = vrot.slane %v1909_v6, 1  ;;  %v2297_v47 = vadd.f32 %v2296_v60, %v2295_v54  ;;  %v2425_v0 = vmul.f32 0.020408163, %v936_v26  ;;  %v277_v54 = vld [vmem:[%s8493_s0 + $0x818] sm:$0xff]  ;;  %v187_v60 = vld [vmem:[%s8493_s0 + $0x548] sm:$0xff]  ;;  %v442_v30 = vld [vmem:[%s8493_s0 + $0xd40] sm:$0xff] }
  0xb9   :  { %4057 = vmatprep.subr.bf16.mxu1 %v8564_v7  ;;  %v1716_v9 = vadd.f32 %v1715_v13, %v1714_v33  ;;  %v2105_v29 = vrot.slane %v2104_v34, 1  ;;  %v2440_v38 = vmul.f32 0.020408163, %v1131_v32  ;;  %v2455_v43 = vmul.f32 0.020408163, %v1326_v59  ;;  %v457_v57 = vld [vmem:[%s8493_s0 + $0xdb8] sm:$0xff] }
  0xba   :  { %v1911_v50 = vadd.f32 %v1910_v46, %v1909_v6  ;;  %v2298_v4 = vrot.slane %v2297_v47, 2  ;;  %v2470_v55 = vmul.f32 0.020408163, %v1521_v56  ;;  %v4062_v2 = vpack.c.bf16 %v2913_v35, %v2912_v45  ;;  %v97_v6 = vld [vmem:[%s8493_s0 + $0x278] sm:$0xff]  ;;  %v367_v45 = vld [vmem:[%s8493_s0 + $0xae8] sm:$0xff]  ;;  %v202_v46 = vld [vmem:[%s8493_s0 + $0x5c0] sm:$0xff] }
  0xbb   :  { %v8567_v39 = vpack.c.bf16 %v8565_v53, %v8566_v41  ;;  %v2106_v48 = vadd.f32 %v2105_v29, %v2104_v34  ;;  %v2485_v36 = vmul.f32 0.020408163, %v1716_v9  ;;  %v2702_v17 = vsel %vm2660_vm1, %v2440_v38, %v2425_v0  ;;  %v292_v34 = vld [vmem:[%s8493_s0 + $0x890] sm:$0xff]  ;;  %v547_v0 = vld [vmem:[%s8493_s0 + $0x1088] sm:$0xff]  ;;  %v382_v38 = vld [vmem:[%s8493_s0 + $0xb60] sm:$0xff] }
  0xbc   :  { %v911_v40 = vadd.f32 %v37_v27, %v22_v22  ;;  %v8570_v62 = vpack.c.bf16 %v8568_v21, %v8569_v3  ;;  %v2299_v63 = vadd.f32 %v2298_v4, %v2297_v47  ;;  %v2500_v11 = vmul.f32 0.020408163, %v1911_v50  ;;  %v532_v35 = vld [vmem:[%s8493_s0 + $0x1010] sm:$0x1]  ;;  %v562_v27 = vld [vmem:[%s8493_s0 + $0x1100] sm:$0xff]  ;;  %v307_v29 = vld [vmem:[%s8493_s0 + $0x908] sm:$0xff] }
  0xbd   :  { %4059 = vmatpush3.bf16.msra.mxu1 %v8567_v39  ;;  %v2703_v58 = vsel %vm2662_vm2, %v2455_v43, %v2702_v17  ;;  %v5865_v10 = vsel %vm863_vm0, %v112_v28, 0.0  ;;  %v2515_v12 = vmul.f32 0.020408163, %v2106_v48  ;;  %v1106_v23 = vadd.f32 %v142_v42, %v127_v51  ;;  %v472_v47 = vld [vmem:[%s8493_s0 + $0xe30] sm:$0xff]  ;;  %v637_v43 = vld [vmem:[%s8493_s0 + $0x1358] sm:$0x1] }
  0xbe   :  { %4061 = vmatprep.subr.bf16.mxu1 %v8570_v62  ;;  %v2704_v49 = vsel %vm2664_vm3, %v2470_v55, %v2703_v58  ;;  %v912_v33 = vadd.f32 %v911_v40, %v52_v37  ;;  %v2300_v26 = vrot.slane %v2299_v63, 1  ;;  %v5894_v32 = vsel %vm863_vm0, %v217_v52, 0.0  ;;  %v487_v51 = vld [vmem:[%s8493_s0 + $0xea8] sm:$0xff]  ;;  %v577_v42 = vld [vmem:[%s8493_s0 + $0x1178] sm:$0xff]  ;;  %v652_v39 = vld [vmem:[%s8493_s0 + $0x13d0] sm:$0xff] }
  0xbf   :  { %v2705_v61 = vsel %vm2666_vm4, %v2485_v36, %v2704_v49  ;;  %v1301_v59 = vadd.f32 %v247_v20, %v232_v19  ;;  %v1107_v16 = vadd.f32 %v1106_v23, %v157_v8  ;;  %v1306_v31 = vsel %vm863_vm0, %v322_v25, 0.0  ;;  %v667_v48 = vld [vmem:[%s8493_s0 + $0x1448] sm:$0xff]  ;;  %v742_v36 = vld [vmem:[%s8493_s0 + $0x16a0] sm:$0x1]  ;;  %v412_v21 = vld [vmem:[%s8493_s0 + $0xc50] sm:$0xff] }
  0xc0   :  { %v2706_v13 = vsel %vm2668_vm5, %v2500_v11, %v2705_v61  ;;  %v913_v22 = vadd.f32 %v912_v33, %v67_v14  ;;  %v2301_v7 = vadd.f32 %v2300_v26, %v2299_v63  ;;  %v1496_v9 = vadd.f32 %v352_v18, %v337_v15  ;;  %v397_v14 = vld [vmem:[%s8493_s0 + $0xbd8] sm:$0xff]  ;;  %v502_v3 = vld [vmem:[%s8493_s0 + $0xf20] sm:$0xff]  ;;  %v592_v62 = vld [vmem:[%s8493_s0 + $0x11f0] sm:$0xff] }
  0xc1   :  { %4063 = vmatpush3.bf16.msra.mxu1 %v4062_v2  ;;  %v2707_v56 = vsel %vm2670_vm6, %v2515_v12, %v2706_v13  ;;  %v1302_v28 = vadd.f32 %v1301_v59, %v262_v24  ;;  %v1108_v50 = vadd.f32 %v1107_v16, %v172_v1  ;;  %v1501_v4 = vsel %vm863_vm0, %v427_v5, 0.0  ;;  %v757_v1 = vld [vmem:[%s8493_s0 + $0x1718] sm:$0xff]  ;;  %v772_v24 = vld [vmem:[%s8493_s0 + $0x1790] sm:$0xff]  ;;  %v607_v18 = vld [vmem:[%s8493_s0 + $0x1268] sm:$0xff] }
  0xc2   :  { %v914_v37 = vadd.f32 %v913_v22, %v82_v44  ;;  %v1691_v55 = vadd.f32 %v457_v57, %v442_v30  ;;  %v2530_v2 = vmul.f32 0.020408163, %v2301_v7  ;;  %v1497_v53 = vadd.f32 %v1496_v9, %v367_v45  ;;  %v682_v44 = vld [vmem:[%s8493_s0 + $0x14c0] sm:$0xff]  ;;  %v517_v15 = vld [vmem:[%s8493_s0 + $0xf98] sm:$0xff]  ;;  %v712_v22 = vld [vmem:[%s8493_s0 + $0x15b0] sm:$0xff] }
  0xc3   :  { %v1303_v8 = vadd.f32 %v1302_v28, %v277_v54  ;;  %v1696_v41 = vsel %vm863_vm0, %v532_v35, 0.0  ;;  %v1109_v52 = vadd.f32 %v1108_v50, %v187_v60  ;;  %v1886_v20 = vadd.f32 %v562_v27, %v547_v0  ;;  %v622_v59 = vld [vmem:[%s8493_s0 + $0x12e0] sm:$0xff]  ;;  %v817_v9 = vld [vmem:[%s8493_s0 + $0x18f8] sm:$0xff] }
  0xc4   :  { %v915_v17 = vadd.f32 %v914_v37, %v97_v6  ;;  %v1692_v19 = vadd.f32 %v1691_v55, %v472_v47  ;;  %v2708_v40 = vsel %vm2672_vm7, %v2530_v2, %v2707_v56  ;;  %v1498_v11 = vadd.f32 %v1497_v53, %v382_v38  ;;  %v787_v6 = vld [vmem:[%s8493_s0 + $0x1808] sm:$0xff]  ;;  %v802_v16 = vld [vmem:[%s8493_s0 + $0x1880] sm:$0xff] }
  0xc5   :  { %v1304_v63 = vadd.f32 %v1303_v8, %v292_v34  ;;  %v1891_v58 = vsel %vm863_vm0, %v637_v43, 0.0  ;;  %2792 = vst [vmem:[#allocation2 + $0x28] sm:$0xff] %v2708_v40  ;;  %3253 = vmatprep.mubr.f32.mxu0 %v2708_v40  ;;  %v1110_v12 = vadd.f32 %v1109_v52, %v202_v46  ;;  %v1887_v54 = vadd.f32 %v1886_v20, %v577_v42 }
  0xc6   :  { %v917_v25 = vadd.f32 %v5865_v10, %v915_v17  ;;  %v1693_v49 = vadd.f32 %v1692_v19, %v487_v51  ;;  %v1499_v23 = vadd.f32 %v1498_v11, %v397_v14  ;;  %v2081_v26 = vadd.f32 %v667_v48, %v652_v39  ;;  %v697_v10 = vld [vmem:[%s8493_s0 + $0x1538] sm:$0xff] }
  0xc7   :  { %v1305_v33 = vadd.f32 %v1304_v63, %v307_v29  ;;  %v2086_v61 = vsel %vm863_vm0, %v742_v36, 0.0  ;;  %v1112_v5 = vadd.f32 %v5894_v32, %v1110_v12  ;;  %v1888_v57 = vadd.f32 %v1887_v54, %v592_v62 }
  0xc8   :  { %v918_v60 = vrot.slane %v917_v25, 4  ;;  %v1694_v30 = vadd.f32 %v1693_v49, %v502_v3  ;;  %v1500_v34 = vadd.f32 %v1499_v23, %v412_v21  ;;  %v2082_v45 = vadd.f32 %v2081_v26, %v682_v44  ;;  %v2946_v23 = vld [vmem:[%s8494_s1 + $0x480] sm:$0xff]  ;;  %v2947_v26 = vld [vmem:[%s8494_s1 + $0x488] sm:$0xff] }
  0xc9   :  { %v1307_v13 = vadd.f32 %v1306_v31, %v1305_v33  ;;  %v2276_v35 = vadd.f32 %v772_v24, %v757_v1  ;;  %v1113_v32 = vrot.slane %v1112_v5, 4  ;;  %v1889_v46 = vadd.f32 %v1888_v57, %v607_v18  ;;  %v727_v31 = vld [vmem:[%s8493_s0 + $0x1628] sm:$0xff] }
  0xca   :  { %v919_v7 = vadd.f32 %v918_v60, %v917_v25  ;;  %v1695_v56 = vadd.f32 %v1694_v30, %v517_v15  ;;  %v1502_v0 = vadd.f32 %v1501_v4, %v1500_v34  ;;  %v2083_v27 = vadd.f32 %v2082_v45, %v697_v10  ;;  %v832_v4 = vld [vmem:[%s8493_s0 + $0x1970] sm:$0xff] }
  0xcb   :  { %v1308_v47 = vrot.slane %v1307_v13, 4  ;;  %v2277_v28 = vadd.f32 %v2276_v35, %v787_v6  ;;  %v1114_v38 = vadd.f32 %v1113_v32, %v1112_v5  ;;  %v1890_v37 = vadd.f32 %v1889_v46, %v622_v59  ;;  %v40_v34 = vld [vmem:[%s8493_s0 + $0xb0] sm:$0xff] }
  0xcc   :  { %v920_v29 = vrot.slane %v919_v7, 2  ;;  %v1697_v43 = vadd.f32 %v1696_v41, %v1695_v56  ;;  %v1503_v55 = vrot.slane %v1502_v0, 4  ;;  %v2084_v2 = vadd.f32 %v2083_v27, %v712_v22  ;;  %v847_v41 = vld [vmem:[%s8493_s0 + $0x19e8] sm:$0x1]  ;;  %v130_v27 = vld [vmem:[%s8493_s0 + $0x380] sm:$0xff] }
  0xcd   :  { %v1309_v50 = vadd.f32 %v1308_v47, %v1307_v13  ;;  %v2278_v14 = vadd.f32 %v2277_v28, %v802_v16  ;;  %v1115_v42 = vrot.slane %v1114_v38, 2  ;;  %v1892_v53 = vadd.f32 %v1891_v58, %v1890_v37  ;;  %v25_v13 = vld [vmem:[%s8493_s0 + $0x38] sm:$0xff]  ;;  %v220_v37 = vld [vmem:[%s8493_s0 + $0x650] sm:$0x1] }
  0xce   :  { %v921_v51 = vadd.f32 %v920_v29, %v919_v7  ;;  %v1698_v8 = vrot.slane %v1697_v43, 4  ;;  %v1504_v48 = vadd.f32 %v1503_v55, %v1502_v0  ;;  %v2085_v36 = vadd.f32 %v2084_v2, %v727_v31  ;;  %v115_v7 = vld [vmem:[%s8493_s0 + $0x308] sm:$0x1]  ;;  %v145_v28 = vld [vmem:[%s8493_s0 + $0x3f8] sm:$0xff] }
  0xcf   :  { %v1310_v39 = vrot.slane %v1309_v50, 2  ;;  %v2279_v17 = vadd.f32 %v2278_v14, %v817_v9  ;;  %v1116_v19 = vadd.f32 %v1115_v42, %v1114_v38  ;;  %v1893_v40 = vrot.slane %v1892_v53, 4  ;;  %v55_v0 = vld [vmem:[%s8493_s0 + $0x128] sm:$0xff]  ;;  %v70_v38 = vld [vmem:[%s8493_s0 + $0x1a0] sm:$0xff] }
  0xd0   :  { %v922_v52 = vrot.slane %v921_v51, 1  ;;  %v1699_v20 = vadd.f32 %v1698_v8, %v1697_v43  ;;  %v1505_v3 = vrot.slane %v1504_v48, 2  ;;  %v2087_v62 = vadd.f32 %v2086_v61, %v2085_v36  ;;  %v160_v43 = vld [vmem:[%s8493_s0 + $0x470] sm:$0xff]  ;;  %v235_v42 = vld [vmem:[%s8493_s0 + $0x6c8] sm:$0xff]  ;;  %v250_v8 = vld [vmem:[%s8493_s0 + $0x740] sm:$0xff] }
  0xd1   :  { %v1311_v21 = vadd.f32 %v1310_v39, %v1309_v50  ;;  %v2280_v63 = vadd.f32 %v2279_v17, %v832_v4  ;;  %v1117_v44 = vrot.slane %v1116_v19, 1  ;;  %v1894_v58 = vadd.f32 %v1893_v40, %v1892_v53  ;;  %v85_v4 = vld [vmem:[%s8493_s0 + $0x218] sm:$0xff]  ;;  %v340_v17 = vld [vmem:[%s8493_s0 + $0xa10] sm:$0xff] }
  0xd2   :  { %v923_v11 = vadd.f32 %v922_v52, %v921_v51  ;;  %v1700_v1 = vrot.slane %v1699_v20, 2  ;;  %v1506_v25 = vadd.f32 %v1505_v3, %v1504_v48  ;;  %v2088_v12 = vrot.slane %v2087_v62, 4  ;;  %v175_v51 = vld [vmem:[%s8493_s0 + $0x4e8] sm:$0xff]  ;;  %v325_v36 = vld [vmem:[%s8493_s0 + $0x998] sm:$0x1]  ;;  %v100_v3 = vld [vmem:[%s8493_s0 + $0x290] sm:$0xff] }
  0xd3   :  { %v1312_v24 = vrot.slane %v1311_v21, 1  ;;  %v2281_v49 = vsel %vm863_vm0, %v847_v41, 0.0  ;;  %v1118_v54 = vadd.f32 %v1117_v44, %v1116_v19  ;;  %v1895_v18 = vrot.slane %v1894_v58, 2  ;;  %v355_v41 = vld [vmem:[%s8493_s0 + $0xa88] sm:$0xff] }
  0xd4   :  { %v1701_v15 = vadd.f32 %v1700_v1, %v1699_v20  ;;  %v2282_v33 = vadd.f32 %v2281_v49, %v2280_v63  ;;  %v1507_v10 = vrot.slane %v1506_v25, 1  ;;  %v2089_v6 = vadd.f32 %v2088_v12, %v2087_v62  ;;  %v190_v62 = vld [vmem:[%s8493_s0 + $0x560] sm:$0xff]  ;;  %v265_v63 = vld [vmem:[%s8493_s0 + $0x7b8] sm:$0xff] }
  0xd5   :  { %v1313_v61 = vadd.f32 %v1312_v24, %v1311_v21  ;;  %v2424_v60 = vmul.f32 0.020408163, %v923_v11  ;;  %v1896_v30 = vadd.f32 %v1895_v18, %v1894_v58  ;;  %v2439_v59 = vmul.f32 0.020408163, %v1118_v54  ;;  %v370_v11 = vld [vmem:[%s8493_s0 + $0xb00] sm:$0xff]  ;;  %v445_v24 = vld [vmem:[%s8493_s0 + $0xd58] sm:$0xff] }
  0xd6   :  { %v1702_v5 = vrot.slane %v1701_v15, 1  ;;  %v2283_v57 = vrot.slane %v2282_v33, 4  ;;  %v1508_v45 = vadd.f32 %v1507_v10, %v1506_v25  ;;  %v2090_v35 = vrot.slane %v2089_v6, 2  ;;  %v430_v58 = vld [vmem:[%s8493_s0 + $0xce0] sm:$0x1]  ;;  %v460_v25 = vld [vmem:[%s8493_s0 + $0xdd0] sm:$0xff] }
  0xd7   :  { %v2454_v22 = vmul.f32 0.020408163, %v1313_v61  ;;  %v4064_v16 = vpack.c.bf16 %v2947_v26, %v2946_v23  ;;  %v1897_v56 = vrot.slane %v1896_v30, 1  ;;  %v2695_v47 = vsel %vm2660_vm1, %v2439_v59, %v2424_v60  ;;  %v280_v23 = vld [vmem:[%s8493_s0 + $0x830] sm:$0xff]  ;;  %v295_v26 = vld [vmem:[%s8493_s0 + $0x8a8] sm:$0xff]  ;;  %v385_v60 = vld [vmem:[%s8493_s0 + $0xb78] sm:$0xff] }
  0xd8   :  { %v1703_v32 = vadd.f32 %v1702_v5, %v1701_v15  ;;  %v2284_v46 = vadd.f32 %v2283_v57, %v2282_v33  ;;  %v2091_v31 = vadd.f32 %v2090_v35, %v2089_v6  ;;  %v2469_v9 = vmul.f32 0.020408163, %v1508_v45  ;;  %v205_v33 = vld [vmem:[%s8493_s0 + $0x5d8] sm:$0xff]  ;;  %v475_v5 = vld [vmem:[%s8493_s0 + $0xe48] sm:$0xff]  ;;  %v310_v45 = vld [vmem:[%s8493_s0 + $0x920] sm:$0xff] }
  0xd9   :  { %v2696_v29 = vsel %vm2662_vm2, %v2454_v22, %v2695_v47  ;;  %4065 = vmatprep.subr.bf16.mxu0 %v4064_v16  ;;  %v950_v50 = vadd.f32 %v40_v34, %v25_v13  ;;  %v1898_v55 = vadd.f32 %v1897_v56, %v1896_v30  ;;  %v955_v53 = vsel %vm863_vm0, %v115_v7, 0.0  ;;  %v535_v30 = vld [vmem:[%s8493_s0 + $0x1028] sm:$0x1]  ;;  %v550_v35 = vld [vmem:[%s8493_s0 + $0x10a0] sm:$0xff]  ;;  %v565_v22 = vld [vmem:[%s8493_s0 + $0x1118] sm:$0xff] }
  0xda   :  { %v2285_v2 = vrot.slane %v2284_v46, 2  ;;  %v2484_v14 = vmul.f32 0.020408163, %v1703_v32  ;;  %v2092_v39 = vrot.slane %v2091_v31, 1  ;;  %v2697_v48 = vsel %vm2664_vm3, %v2469_v9, %v2696_v29  ;;  %v490_v47 = vld [vmem:[%s8493_s0 + $0xec0] sm:$0xff]  ;;  %v415_v29 = vld [vmem:[%s8493_s0 + $0xc68] sm:$0xff] }
  0xdb   :  { %v951_v52 = vadd.f32 %v950_v50, %v55_v0  ;;  %v1145_v19 = vadd.f32 %v145_v28, %v130_v27  ;;  %v2499_v40 = vmul.f32 0.020408163, %v1898_v55  ;;  %v1150_v44 = vsel %vm863_vm0, %v220_v37, 0.0  ;;  %v640_v0 = vld [vmem:[%s8493_s0 + $0x1370] sm:$0x1] }
  0xdc   :  { %v2286_v20 = vadd.f32 %v2285_v2, %v2284_v46  ;;  %v2698_v21 = vsel %vm2666_vm4, %v2484_v14, %v2697_v48  ;;  %v2093_v1 = vadd.f32 %v2092_v39, %v2091_v31  ;;  %v1340_v54 = vadd.f32 %v250_v8, %v235_v42  ;;  %v400_v46 = vld [vmem:[%s8493_s0 + $0xbf0] sm:$0xff]  ;;  %v655_v2 = vld [vmem:[%s8493_s0 + $0x13e8] sm:$0xff]  ;;  %v670_v14 = vld [vmem:[%s8493_s0 + $0x1460] sm:$0xff] }
  0xdd   :  { %v952_v12 = vadd.f32 %v951_v52, %v70_v38  ;;  %v1146_v49 = vadd.f32 %v1145_v19, %v160_v43  ;;  %v2699_v18 = vsel %vm2668_vm5, %v2499_v40, %v2698_v21  ;;  %v1345_v61 = vsel %vm863_vm0, %v325_v36, 0.0  ;;  %v505_v38 = vld [vmem:[%s8493_s0 + $0xf38] sm:$0xff]  ;;  %v580_v43 = vld [vmem:[%s8493_s0 + $0x1190] sm:$0xff]  ;;  %v775_v40 = vld [vmem:[%s8493_s0 + $0x17a8] sm:$0xff] }
  0xde   :  { %v2287_v15 = vrot.slane %v2286_v20, 1  ;;  %v1535_v10 = vadd.f32 %v355_v41, %v340_v17  ;;  %v2514_v6 = vmul.f32 0.020408163, %v2093_v1  ;;  %v1341_v13 = vadd.f32 %v1340_v54, %v265_v63  ;;  %v520_v36 = vld [vmem:[%s8493_s0 + $0xfb0] sm:$0xff]  ;;  %v595_v17 = vld [vmem:[%s8493_s0 + $0x1208] sm:$0xff] }
  0xdf   :  { %v953_v57 = vadd.f32 %v952_v12, %v85_v4  ;;  %v1147_v59 = vadd.f32 %v1146_v49, %v175_v51  ;;  %v1540_v7 = vsel %vm863_vm0, %v430_v58, 0.0  ;;  %v1730_v32 = vadd.f32 %v460_v25, %v445_v24  ;;  %v745_v4 = vld [vmem:[%s8493_s0 + $0x16b8] sm:$0x1]  ;;  %v700_v12 = vld [vmem:[%s8493_s0 + $0x1550] sm:$0xff]  ;;  %v790_v49 = vld [vmem:[%s8493_s0 + $0x1820] sm:$0xff] }
  0xe0   :  { %v2288_v34 = vadd.f32 %v2287_v15, %v2286_v20  ;;  %v1536_v16 = vadd.f32 %v1535_v10, %v370_v11  ;;  %v2700_v56 = vsel %vm2670_vm6, %v2514_v6, %v2699_v18  ;;  %v1342_v31 = vadd.f32 %v1341_v13, %v280_v23  ;;  %v760_v20 = vld [vmem:[%s8493_s0 + $0x1730] sm:$0xff]  ;;  %v610_v11 = vld [vmem:[%s8493_s0 + $0x1280] sm:$0xff] }
  0xe1   :  { %v954_v27 = vadd.f32 %v953_v57, %v100_v3  ;;  %v1148_v28 = vadd.f32 %v1147_v59, %v190_v62  ;;  %v1731_v50 = vadd.f32 %v1730_v32, %v475_v5  ;;  %v1735_v55 = vsel %vm863_vm0, %v535_v30, 0.0  ;;  %v805_v5 = vld [vmem:[%s8493_s0 + $0x1898] sm:$0xff] }
  0xe2   :  { %v2529_v9 = vmul.f32 0.020408163, %v2288_v34  ;;  %v1537_v37 = vadd.f32 %v1536_v16, %v385_v60  ;;  %v1343_v8 = vadd.f32 %v1342_v31, %v295_v26  ;;  %v1925_v39 = vadd.f32 %v565_v22, %v550_v35  ;;  %v715_v60 = vld [vmem:[%s8493_s0 + $0x15c8] sm:$0xff]  ;;  %v730_v22 = vld [vmem:[%s8493_s0 + $0x1640] sm:$0xff]  ;;  %v820_v16 = vld [vmem:[%s8493_s0 + $0x1910] sm:$0xff] }
  0xe3   :  { %v956_v51 = vadd.f32 %v955_v53, %v954_v27  ;;  %v1149_v42 = vadd.f32 %v1148_v28, %v205_v33  ;;  %v1732_v52 = vadd.f32 %v1731_v50, %v490_v47  ;;  %v1930_v19 = vsel %vm863_vm0, %v640_v0, 0.0  ;;  %v685_v53 = vld [vmem:[%s8493_s0 + $0x14d8] sm:$0xff]  ;;  %v835_v31 = vld [vmem:[%s8493_s0 + $0x1988] sm:$0xff] }
  0xe4   :  { %v2701_v48 = vsel %vm2672_vm7, %v2529_v9, %v2700_v56  ;;  %v1538_v41 = vadd.f32 %v1537_v37, %v400_v46  ;;  %v1344_v62 = vadd.f32 %v1343_v8, %v310_v45  ;;  %v1926_v63 = vadd.f32 %v1925_v39, %v580_v43  ;;  %v625_v33 = vld [vmem:[%s8493_s0 + $0x12f8] sm:$0xff]  ;;  %v850_v37 = vld [vmem:[%s8493_s0 + $0x1a00] sm:$0x1] }
  0xe5   :  { %2791 = vst [vmem:[#allocation2 + $0x20] sm:$0xff] %v2701_v48  ;;  %3254 = vmatmul.mubr.f32.vlgmr.msra.gmra.mrb[2].mxu0 %v2701_v48  ;;  %v957_v21 = vrot.slane %v956_v51, 4  ;;  %v1151_v3 = vadd.f32 %v1150_v44, %v1149_v42  ;;  %v1733_v58 = vadd.f32 %v1732_v52, %v505_v38  ;;  %v2120_v24 = vadd.f32 %v670_v14, %v655_v2 }
  0xe6   :  { %v1539_v1 = vadd.f32 %v1538_v41, %v415_v29  ;;  %v2125_v25 = vsel %vm863_vm0, %v745_v4, 0.0  ;;  %v1346_v15 = vadd.f32 %v1345_v61, %v1344_v62  ;;  %v1927_v18 = vadd.f32 %v1926_v63, %v595_v17  ;;  %v2930_v62 = vld [vmem:[%s8494_s1 + $0x400] sm:$0xff]  ;;  %v2931_v63 = vld [vmem:[%s8494_s1 + $0x408] sm:$0xff] }
  0xe7   :  { %v958_v44 = vadd.f32 %v957_v21, %v956_v51  ;;  %v1152_v54 = vrot.slane %v1151_v3, 4  ;;  %v1734_v26 = vadd.f32 %v1733_v58, %v520_v36  ;;  %v2121_v10 = vadd.f32 %v2120_v24, %v685_v53 }
  0xe8   :  { %v1541_v23 = vadd.f32 %v1540_v7, %v1539_v1  ;;  %v2315_v6 = vadd.f32 %v775_v40, %v760_v20  ;;  %v1347_v61 = vrot.slane %v1346_v15, 4  ;;  %v1928_v59 = vadd.f32 %v1927_v18, %v610_v11  ;;  %v114_v18 = vld [vmem:[%s8493_s0 + $0x300] sm:$0x1] }
  0xe9   :  { %v959_v30 = vrot.slane %v958_v44, 2  ;;  %v1153_v57 = vadd.f32 %v1152_v54, %v1151_v3  ;;  %v1736_v34 = vadd.f32 %v1735_v55, %v1734_v26  ;;  %v2122_v45 = vadd.f32 %v2121_v10, %v700_v12  ;;  %v24_v54 = vld [vmem:[%s8493_s0 + $0x30] sm:$0xff] }
  0xea   :  { %v1542_v13 = vrot.slane %v1541_v23, 4  ;;  %v2316_v35 = vadd.f32 %v2315_v6, %v790_v49  ;;  %v1348_v56 = vadd.f32 %v1347_v61, %v1346_v15  ;;  %v1929_v46 = vadd.f32 %v1928_v59, %v625_v33  ;;  %v39_v15 = vld [vmem:[%s8493_s0 + $0xa8] sm:$0xff]  ;;  %v54_v6 = vld [vmem:[%s8493_s0 + $0x120] sm:$0xff]  ;;  %v144_v59 = vld [vmem:[%s8493_s0 + $0x3f0] sm:$0xff] }
  0xeb   :  { %v960_v7 = vadd.f32 %v959_v30, %v958_v44  ;;  %v1154_v32 = vrot.slane %v1153_v57, 2  ;;  %v1737_v0 = vrot.slane %v1736_v34, 4  ;;  %v2123_v27 = vadd.f32 %v2122_v45, %v715_v60  ;;  %v129_v60 = vld [vmem:[%s8493_s0 + $0x378] sm:$0xff] }
  0xec   :  { %v1543_v47 = vadd.f32 %v1542_v13, %v1541_v23  ;;  %v2317_v28 = vadd.f32 %v2316_v35, %v805_v5  ;;  %v1349_v38 = vrot.slane %v1348_v56, 2  ;;  %v1931_v43 = vadd.f32 %v1930_v19, %v1929_v46  ;;  %v219_v13 = vld [vmem:[%s8493_s0 + $0x648] sm:$0x1]  ;;  %v69_v35 = vld [vmem:[%s8493_s0 + $0x198] sm:$0xff] }
  0xed   :  { %v961_v9 = vrot.slane %v960_v7, 1  ;;  %v1155_v29 = vadd.f32 %v1154_v32, %v1153_v57  ;;  %v1738_v55 = vadd.f32 %v1737_v0, %v1736_v34  ;;  %v2124_v2 = vadd.f32 %v2123_v27, %v730_v22  ;;  %v234_v22 = vld [vmem:[%s8493_s0 + $0x6c0] sm:$0xff]  ;;  %v84_v27 = vld [vmem:[%s8493_s0 + $0x210] sm:$0xff] }
  0xee   :  { %v1544_v50 = vrot.slane %v1543_v47, 2  ;;  %v2318_v14 = vadd.f32 %v2317_v28, %v820_v16  ;;  %v1350_v42 = vadd.f32 %v1349_v38, %v1348_v56  ;;  %v1932_v8 = vrot.slane %v1931_v43, 4  ;;  %v249_v16 = vld [vmem:[%s8493_s0 + $0x738] sm:$0xff]  ;;  %v159_v28 = vld [vmem:[%s8493_s0 + $0x468] sm:$0xff] }
  0xef   :  { %v962_v4 = vadd.f32 %v961_v9, %v960_v7  ;;  %v1156_v51 = vrot.slane %v1155_v29, 1  ;;  %v1739_v48 = vrot.slane %v1738_v55, 2  ;;  %v2126_v36 = vadd.f32 %v2125_v25, %v2124_v2  ;;  %v339_v38 = vld [vmem:[%s8493_s0 + $0xa08] sm:$0xff] }
  0xf0   :  { %v1545_v39 = vadd.f32 %v1544_v50, %v1543_v47  ;;  %v2319_v17 = vadd.f32 %v2318_v14, %v835_v31  ;;  %v1351_v52 = vrot.slane %v1350_v42, 1  ;;  %v1933_v53 = vadd.f32 %v1932_v8, %v1931_v43  ;;  %v324_v31 = vld [vmem:[%s8493_s0 + $0x990] sm:$0x1]  ;;  %v354_v43 = vld [vmem:[%s8493_s0 + $0xa80] sm:$0xff]  ;;  %v429_v8 = vld [vmem:[%s8493_s0 + $0xcd8] sm:$0x1] }
  0xf1   :  { %v1157_v41 = vadd.f32 %v1156_v51, %v1155_v29  ;;  %v2320_v19 = vsel %vm863_vm0, %v850_v37, 0.0  ;;  %v1740_v40 = vadd.f32 %v1739_v48, %v1738_v55  ;;  %v2127_v21 = vrot.slane %v2126_v36, 4  ;;  %v264_v29 = vld [vmem:[%s8493_s0 + $0x7b0] sm:$0xff]  ;;  %v99_v51 = vld [vmem:[%s8493_s0 + $0x288] sm:$0xff] }
  0xf2   :  { %v1546_v20 = vrot.slane %v1545_v39, 1  ;;  %v2321_v3 = vadd.f32 %v2320_v19, %v2319_v17  ;;  %v1352_v11 = vadd.f32 %v1351_v52, %v1350_v42  ;;  %v1934_v1 = vrot.slane %v1933_v53, 2  ;;  %v174_v42 = vld [vmem:[%s8493_s0 + $0x4e0] sm:$0xff]  ;;  %v279_v17 = vld [vmem:[%s8493_s0 + $0x828] sm:$0xff] }
  0xf3   :  { %v2427_v58 = vmul.f32 0.020408163, %v962_v4  ;;  %v2442_v24 = vmul.f32 0.020408163, %v1157_v41  ;;  %v1741_v12 = vrot.slane %v1740_v40, 1  ;;  %v2128_v49 = vadd.f32 %v2127_v21, %v2126_v36  ;;  %v189_v36 = vld [vmem:[%s8493_s0 + $0x558] sm:$0xff] }
  0xf4   :  { %v1547_v25 = vadd.f32 %v1546_v20, %v1545_v39  ;;  %v2322_v44 = vrot.slane %v2321_v3, 4  ;;  %v1935_v33 = vadd.f32 %v1934_v1, %v1933_v53  ;;  %v2457_v23 = vmul.f32 0.020408163, %v1352_v11  ;;  %v369_v41 = vld [vmem:[%s8493_s0 + $0xaf8] sm:$0xff]  ;;  %v444_v21 = vld [vmem:[%s8493_s0 + $0xd50] sm:$0xff] }
  0xf5   :  { %v2716_v26 = vsel %vm2660_vm1, %v2442_v24, %v2427_v58  ;;  %v4066_v10 = vpack.c.bf16 %v2931_v63, %v2930_v62  ;;  %v1742_v5 = vadd.f32 %v1741_v12, %v1740_v40  ;;  %v2129_v30 = vrot.slane %v2128_v49, 2  ;;  %v534_v62 = vld [vmem:[%s8493_s0 + $0x1020] sm:$0x1]  ;;  %v204_v58 = vld [vmem:[%s8493_s0 + $0x5d0] sm:$0xff] }
  0xf6   :  { %v2323_v57 = vadd.f32 %v2322_v44, %v2321_v3  ;;  %v2472_v61 = vmul.f32 0.020408163, %v1547_v25  ;;  %v1936_v34 = vrot.slane %v1935_v33, 1  ;;  %v2717_v45 = vsel %vm2662_vm2, %v2457_v23, %v2716_v26  ;;  %v459_v3 = vld [vmem:[%s8493_s0 + $0xdc8] sm:$0xff]  ;;  %v294_v24 = vld [vmem:[%s8493_s0 + $0x8a0] sm:$0xff]  ;;  %v384_v25 = vld [vmem:[%s8493_s0 + $0xb70] sm:$0xff] }
  0xf7   :  { %4067 = vmatpush3.bf16.msra.mxu0 %v4066_v10  ;;  %v937_v7 = vadd.f32 %v39_v15, %v24_v54  ;;  %v6234_v32 = vsel %vm863_vm0, %v114_v18, 0.0  ;;  %v2130_v56 = vadd.f32 %v2129_v30, %v2128_v49  ;;  %v2487_v47 = vmul.f32 0.020408163, %v1742_v5  ;;  %v474_v18 = vld [vmem:[%s8493_s0 + $0xe40] sm:$0xff]  ;;  %v564_v23 = vld [vmem:[%s8493_s0 + $0x1110] sm:$0xff] }
  0xf8   :  { %v2324_v46 = vrot.slane %v2323_v57, 2  ;;  %v2718_v0 = vsel %vm2664_vm3, %v2472_v61, %v2717_v45  ;;  %v1937_v9 = vadd.f32 %v1936_v34, %v1935_v33  ;;  %v1132_v50 = vadd.f32 %v144_v59, %v129_v60  ;;  %v549_v33 = vld [vmem:[%s8493_s0 + $0x1098] sm:$0xff]  ;;  %v399_v60 = vld [vmem:[%s8493_s0 + $0xbe8] sm:$0xff]  ;;  %v414_v45 = vld [vmem:[%s8493_s0 + $0xc60] sm:$0xff] }
  0xf9   :  { %v938_v37 = vadd.f32 %v937_v7, %v54_v6  ;;  %v6256_v55 = vsel %vm863_vm0, %v219_v13, 0.0  ;;  %v2131_v2 = vrot.slane %v2130_v56, 1  ;;  %v2719_v4 = vsel %vm2666_vm4, %v2487_v47, %v2718_v0  ;;  %v309_v6 = vld [vmem:[%s8493_s0 + $0x918] sm:$0xff]  ;;  %v639_v5 = vld [vmem:[%s8493_s0 + $0x1368] sm:$0x1] }
  0xfa   :  { %v2325_v14 = vadd.f32 %v2324_v46, %v2323_v57  ;;  %v1327_v39 = vadd.f32 %v249_v16, %v234_v22  ;;  %v2502_v48 = vmul.f32 0.020408163, %v1937_v9  ;;  %v1133_v53 = vadd.f32 %v1132_v50, %v159_v28  ;;  %v579_v22 = vld [vmem:[%s8493_s0 + $0x1188] sm:$0xff]  ;;  %v669_v46 = vld [vmem:[%s8493_s0 + $0x1458] sm:$0xff]  ;;  %v744_v47 = vld [vmem:[%s8493_s0 + $0x16b0] sm:$0x1] }
  0xfb   :  { %v939_v52 = vadd.f32 %v938_v37, %v69_v35  ;;  %v1332_v19 = vsel %vm863_vm0, %v324_v31, 0.0  ;;  %v2132_v20 = vadd.f32 %v2131_v2, %v2130_v56  ;;  %v1522_v11 = vadd.f32 %v354_v43, %v339_v38  ;;  %v489_v35 = vld [vmem:[%s8493_s0 + $0xeb8] sm:$0xff]  ;;  %v654_v56 = vld [vmem:[%s8493_s0 + $0x13e0] sm:$0xff]  ;;  %v759_v2 = vld [vmem:[%s8493_s0 + $0x1728] sm:$0xff] }
  0xfc   :  { %v2326_v40 = vrot.slane %v2325_v14, 1  ;;  %v1328_v63 = vadd.f32 %v1327_v39, %v264_v29  ;;  %v2720_v1 = vsel %vm2668_vm5, %v2502_v48, %v2719_v4  ;;  %v1134_v49 = vadd.f32 %v1133_v53, %v174_v42  ;;  %v504_v29 = vld [vmem:[%s8493_s0 + $0xf30] sm:$0xff]  ;;  %v594_v38 = vld [vmem:[%s8493_s0 + $0x1200] sm:$0xff]  ;;  %v519_v39 = vld [vmem:[%s8493_s0 + $0xfa8] sm:$0xff] }
  0xfd   :  { %v940_v12 = vadd.f32 %v939_v52, %v84_v27  ;;  %v1527_v44 = vsel %vm863_vm0, %v429_v8, 0.0  ;;  %v2517_v15 = vmul.f32 0.020408163, %v2132_v20  ;;  %v1523_v10 = vadd.f32 %v1522_v11, %v369_v41  ;;  %v609_v48 = vld [vmem:[%s8493_s0 + $0x1278] sm:$0xff]  ;;  %v699_v53 = vld [vmem:[%s8493_s0 + $0x1548] sm:$0xff] }
  0xfe   :  { %v2327_v54 = vadd.f32 %v2326_v40, %v2325_v14  ;;  %v1329_v26 = vadd.f32 %v1328_v63, %v279_v17  ;;  %v1135_v57 = vadd.f32 %v1134_v49, %v189_v36  ;;  %v1717_v61 = vadd.f32 %v459_v3, %v444_v21  ;;  %v774_v14 = vld [vmem:[%s8493_s0 + $0x17a0] sm:$0xff] }
  0xff   :  { %v941_v30 = vadd.f32 %v940_v12, %v99_v51  ;;  %v1722_v59 = vsel %vm863_vm0, %v534_v62, 0.0  ;;  %v2721_v34 = vsel %vm2670_vm6, %v2517_v15, %v2720_v1  ;;  %v1524_v7 = vadd.f32 %v1523_v10, %v384_v25 }
 0x100   :  { %v2532_v13 = vmul.f32 0.020408163, %v2327_v54  ;;  %v1330_v16 = vadd.f32 %v1329_v26, %v294_v24  ;;  %v1136_v27 = vadd.f32 %v1135_v57, %v204_v58  ;;  %v1718_v28 = vadd.f32 %v1717_v61, %v474_v18  ;;  %v714_v58 = vld [vmem:[%s8493_s0 + $0x15c0] sm:$0xff]  ;;  %v804_v24 = vld [vmem:[%s8493_s0 + $0x1890] sm:$0xff]  ;;  %v819_v26 = vld [vmem:[%s8493_s0 + $0x1908] sm:$0xff] }
 0x101   :  { %v943_v0 = vadd.f32 %v6234_v32, %v941_v30  ;;  %v1912_v31 = vadd.f32 %v564_v23, %v549_v33  ;;  %v1525_v37 = vadd.f32 %v1524_v7, %v399_v60  ;;  %v1917_v50 = vsel %vm863_vm0, %v639_v5, 0.0  ;;  %v684_v32 = vld [vmem:[%s8493_s0 + $0x14d0] sm:$0xff]  ;;  %v849_v7 = vld [vmem:[%s8493_s0 + $0x19f8] sm:$0x1] }
 0x102   :  { %v2722_v9 = vsel %vm2672_vm7, %v2532_v13, %v2721_v34  ;;  %v1331_v43 = vadd.f32 %v1330_v16, %v309_v6  ;;  %v1138_v51 = vadd.f32 %v6256_v55, %v1136_v27  ;;  %v1719_v42 = vadd.f32 %v1718_v28, %v489_v35  ;;  %v789_v55 = vld [vmem:[%s8493_s0 + $0x1818] sm:$0xff]  ;;  %v834_v34 = vld [vmem:[%s8493_s0 + $0x1980] sm:$0xff] }
 0x103   :  { %2794 = vst [vmem:[#allocation2 + $0x38] sm:$0xff] %v2722_v9  ;;  %3323 = vmatprep.mubr.f32.mxu1 %v2722_v9  ;;  %v944_v4 = vrot.slane %v943_v0, 4  ;;  %v1913_v8 = vadd.f32 %v1912_v31, %v579_v22  ;;  %v1526_v17 = vadd.f32 %v1525_v37, %v414_v45  ;;  %v2107_v41 = vadd.f32 %v669_v46, %v654_v56 }
 0x104   :  { %v1333_v36 = vadd.f32 %v1332_v19, %v1331_v43  ;;  %v2112_v52 = vsel %vm863_vm0, %v744_v47, 0.0  ;;  %v1139_v40 = vrot.slane %v1138_v51, 4  ;;  %v1720_v21 = vadd.f32 %v1719_v42, %v504_v29  ;;  %v624_v19 = vld [vmem:[%s8493_s0 + $0x12f0] sm:$0xff] }
 0x105   :  { %v945_v20 = vadd.f32 %v944_v4, %v943_v0  ;;  %v1914_v3 = vadd.f32 %v1913_v8, %v594_v38  ;;  %v1528_v63 = vadd.f32 %v1527_v44, %v1526_v17  ;;  %v2108_v11 = vadd.f32 %v2107_v41, %v684_v32  ;;  %v729_v44 = vld [vmem:[%s8493_s0 + $0x1638] sm:$0xff]  ;;  %v2979_v4 = vld [vmem:[%s8494_s1 + $0x588] sm:$0xff]  ;;  %v2948_v17 = vld [vmem:[%s8494_s1 + $0x490] sm:$0xff] }
 0x106   :  { %v1334_v62 = vrot.slane %v1333_v36, 4  ;;  %v2302_v1 = vadd.f32 %v774_v14, %v759_v2  ;;  %v1140_v12 = vadd.f32 %v1139_v40, %v1138_v51  ;;  %v1721_v49 = vadd.f32 %v1720_v21, %v519_v39  ;;  %v2978_v14 = vld [vmem:[%s8494_s1 + $0x580] sm:$0xff]  ;;  %v2949_v41 = vld [vmem:[%s8494_s1 + $0x498] sm:$0xff]  ;;  %v2932_v40 = vld [vmem:[%s8494_s1 + $0x410] sm:$0xff] }
 0x107   :  { %v946_v25 = vrot.slane %v945_v20, 2  ;;  %v1915_v54 = vadd.f32 %v1914_v3, %v609_v48  ;;  %v1529_v18 = vrot.slane %v1528_v63, 4  ;;  %v2109_v33 = vadd.f32 %v2108_v11, %v699_v53  ;;  %v6399_v48 = vld [vmem:[%s8494_s1 + $0x500] sm:$0xff]  ;;  %v2933_v21 = vld [vmem:[%s8494_s1 + $0x418] sm:$0xff]  ;;  %v6421_v11 = vld [vmem:[%s8494_s1 + $0x590] sm:$0xff] }
 0x108   :  { %v1335_v15 = vadd.f32 %v1334_v62, %v1333_v36  ;;  %v2303_v23 = vadd.f32 %v2302_v1, %v789_v55  ;;  %v1141_v6 = vrot.slane %v1140_v12, 2  ;;  %v1723_v60 = vadd.f32 %v1722_v59, %v1721_v49  ;;  %v6404_v36 = vld [vmem:[%s8494_s1 + $0x508] sm:$0xff]  ;;  %v6426_v1 = vld [vmem:[%s8494_s1 + $0x598] sm:$0xff] }
 0x109   :  { %v947_v10 = vadd.f32 %v946_v25, %v945_v20  ;;  %v1916_v5 = vadd.f32 %v1915_v54, %v624_v19  ;;  %v1530_v57 = vadd.f32 %v1529_v18, %v1528_v63  ;;  %v2110_v61 = vadd.f32 %v2109_v33, %v714_v58  ;;  %v6431_v58 = vld [vmem:[%s8494_s1 + $0x510] sm:$0xff]  ;;  %v2951_v18 = vld [vmem:[%s8494_s1 + $0x4a8] sm:$0xff]  ;;  %v6450_v33 = vld [vmem:[%s8494_s1 + $0x420] sm:$0xff] }
 0x10a   :  { %v1336_v30 = vrot.slane %v1335_v15, 2  ;;  %v2304_v13 = vadd.f32 %v2303_v23, %v804_v24  ;;  %v1142_v35 = vadd.f32 %v1141_v6, %v1140_v12  ;;  %v1724_v22 = vrot.slane %v1723_v60, 4  ;;  %v6436_v24 = vld [vmem:[%s8494_s1 + $0x518] sm:$0xff]  ;;  %v6455_v23 = vld [vmem:[%s8494_s1 + $0x428] sm:$0xff] }
 0x10b   :  { %v948_v45 = vrot.slane %v947_v10, 1  ;;  %v1918_v16 = vadd.f32 %v1917_v50, %v1916_v5  ;;  %v1531_v46 = vrot.slane %v1530_v57, 2  ;;  %v2111_v59 = vadd.f32 %v2110_v61, %v729_v44  ;;  %v6466_v5 = vld [vmem:[%s8494_s1 + $0x5a8] sm:$0xff] }
 0x10c   :  { %v1337_v56 = vadd.f32 %v1336_v30, %v1335_v15  ;;  %v2305_v47 = vadd.f32 %v2304_v13, %v819_v26  ;;  %v1143_v27 = vrot.slane %v1142_v35, 1  ;;  %v1725_v28 = vadd.f32 %v1724_v22, %v1723_v60  ;;  %v6442_v15 = vld [vmem:[%s8494_s1 + $0x4a0] sm:$0xff]  ;;  %v6488_v22 = vld [vmem:[%s8494_s1 + $0x4b8] sm:$0xff] }
 0x10d   :  { %v949_v0 = vadd.f32 %v948_v45, %v947_v10  ;;  %v1919_v31 = vrot.slane %v1918_v16, 4  ;;  %v1532_v29 = vadd.f32 %v1531_v46, %v1530_v57  ;;  %v2113_v38 = vadd.f32 %v2112_v52, %v2111_v59  ;;  %v6461_v60 = vld [vmem:[%s8494_s1 + $0x5a0] sm:$0xff]  ;;  %v6476_v57 = vld [vmem:[%s8494_s1 + $0x528] sm:$0xff] }
 0x10e   :  { %v1338_v9 = vrot.slane %v1337_v56, 1  ;;  %v2306_v43 = vadd.f32 %v2305_v47, %v834_v34  ;;  %v1144_v37 = vadd.f32 %v1143_v27, %v1142_v35  ;;  %v1726_v32 = vrot.slane %v1725_v28, 2  ;;  %v6471_v30 = vld [vmem:[%s8494_s1 + $0x520] sm:$0xff]  ;;  %v6483_v35 = vld [vmem:[%s8494_s1 + $0x4b0] sm:$0xff]  ;;  %v6509_v27 = vld [vmem:[%s8494_s1 + $0x5b8] sm:$0xff] }
 0x10f   :  { %v1920_v2 = vadd.f32 %v1919_v31, %v1918_v16  ;;  %v2307_v50 = vsel %vm863_vm0, %v849_v7, 0.0  ;;  %v1533_v42 = vrot.slane %v1532_v29, 1  ;;  %v2114_v8 = vrot.slane %v2113_v38, 4  ;;  %v6493_v16 = vld [vmem:[%s8494_s1 + $0x430] sm:$0xff]  ;;  %v6498_v7 = vld [vmem:[%s8494_s1 + $0x438] sm:$0xff] }
 0x110   :  { %v1339_v51 = vadd.f32 %v1338_v9, %v1337_v56  ;;  %v2308_v39 = vadd.f32 %v2307_v50, %v2306_v43  ;;  %v1727_v52 = vadd.f32 %v1726_v32, %v1725_v28  ;;  %v2426_v55 = vmul.f32 0.020408163, %v949_v0  ;;  %v6504_v0 = vld [vmem:[%s8494_s1 + $0x5b0] sm:$0xff]  ;;  %v6519_v31 = vld [vmem:[%s8494_s1 + $0x538] sm:$0xff]  ;;  %v6524_v9 = vld [vmem:[%s8494_s1 + $0x4c0] sm:$0xff] }
 0x111   :  { %v1921_v53 = vrot.slane %v1920_v2, 2  ;;  %v2441_v20 = vmul.f32 0.020408163, %v1144_v37  ;;  %v1534_v3 = vadd.f32 %v1533_v42, %v1532_v29  ;;  %v2115_v19 = vadd.f32 %v2114_v8, %v2113_v38  ;;  %v6514_v28 = vld [vmem:[%s8494_s1 + $0x530] sm:$0xff]  ;;  %v6529_v29 = vld [vmem:[%s8494_s1 + $0x4c8] sm:$0xff] }
 0x112   :  { %v2309_v62 = vrot.slane %v2308_v39, 4  ;;  %v2456_v63 = vmul.f32 0.020408163, %v1339_v51  ;;  %v1728_v25 = vrot.slane %v1727_v52, 1  ;;  %v4096_v54 = vpack.c.bf16 %v2979_v4, %v2978_v14  ;;  %v6543_v50 = vld [vmem:[%s8494_s1 + $0x448] sm:$0xff]  ;;  %v6548_v14 = vld [vmem:[%s8494_s1 + $0x5c0] sm:$0xff] }
 0x113   :  { %v1922_v12 = vadd.f32 %v1921_v53, %v1920_v2  ;;  %v2709_v49 = vsel %vm2660_vm1, %v2441_v20, %v2426_v55  ;;  %v2116_v44 = vrot.slane %v2115_v19, 2  ;;  %v2471_v10 = vmul.f32 0.020408163, %v1534_v3  ;;  %v6538_v2 = vld [vmem:[%s8494_s1 + $0x440] sm:$0xff]  ;;  %v6553_v4 = vld [vmem:[%s8494_s1 + $0x5c8] sm:$0xff]  ;;  %v6576_v53 = vld [vmem:[%s8494_s1 + $0x4d8] sm:$0xff] }
 0x114   :  { %v2310_v26 = vadd.f32 %v2309_v62, %v2308_v39  ;;  %v2710_v6 = vsel %vm2662_vm2, %v2456_v63, %v2709_v49  ;;  %v1729_v61 = vadd.f32 %v1728_v25, %v1727_v52  ;;  %4097 = vmatprep.subr.bf16.mxu1 %v4096_v54  ;;  %v4068_v45 = vpack.c.bf16 %v2949_v41, %v2948_v17  ;;  %v6561_v17 = vld [vmem:[%s8494_s1 + $0x540] sm:$0xff]  ;;  %v6566_v41 = vld [vmem:[%s8494_s1 + $0x548] sm:$0xff]  ;;  %v6571_v52 = vld [vmem:[%s8494_s1 + $0x4d0] sm:$0xff] }
 0x115   :  { %v1923_v13 = vrot.slane %v1922_v12, 1  ;;  %v2117_v56 = vadd.f32 %v2116_v44, %v2115_v19  ;;  %v2711_v59 = vsel %vm2664_vm3, %v2471_v10, %v2710_v6  ;;  %v4070_v47 = vpack.c.bf16 %v2933_v21, %v2932_v40  ;;  %8571 = vst [vmem:[#allocation18_spill] sm:$0xff] %v6561_v17  ;;  %v6581_v55 = vld [vmem:[%s8494_s1 + $0x450] sm:$0xff]  ;;  %v6586_v20 = vld [vmem:[%s8494_s1 + $0x458] sm:$0xff]  ;;  %v6616_v49 = vld [vmem:[%s8494_s1 + $0x4e0] sm:$0xff] }
 0x116   :  { %v2311_v46 = vrot.slane %v2310_v26, 2  ;;  %v2486_v43 = vmul.f32 0.020408163, %v1729_v61  ;;  %4069 = vmatprep.subr.bf16.mxu0 %v4068_v45  ;;  %v4072_v8 = vpack.c.bf16 %v2951_v18, %v6442_v15  ;;  %v4074_v39 = vpack.c.bf16 %v6455_v23, %v6450_v33  ;;  %v6591_v40 = vld [vmem:[%s8494_s1 + $0x5d0] sm:$0xff]  ;;  %v6596_v21 = vld [vmem:[%s8494_s1 + $0x5d8] sm:$0xff]  ;;  %v6621_v54 = vld [vmem:[%s8494_s1 + $0x4e8] sm:$0xff] }
 0x117   :  { %v1924_v38 = vadd.f32 %v1923_v13, %v1922_v12  ;;  %v2118_v51 = vrot.slane %v2117_v56, 1  ;;  %4071 = vmatpush3.bf16.msra.mxu0 %v4070_v47  ;;  %8572 = vst [vmem:[#allocation9_spill] sm:$0xff] %v6591_v40  ;;  %8573 = vst [vmem:[#allocation8_spill] sm:$0xff] %v6596_v21  ;;  %v6606_v25 = vld [vmem:[%s8494_s1 + $0x550] sm:$0xff]  ;;  %v6611_v12 = vld [vmem:[%s8494_s1 + $0x558] sm:$0xff]  ;;  %v4076_v33 = vpack.c.bf16 %v6488_v22, %v6483_v35 }
 0x118   :  { %v2312_v42 = vadd.f32 %v2311_v46, %v2310_v26  ;;  %v2712_v19 = vsel %vm2666_vm4, %v2486_v43, %v2711_v59  ;;  %8574 = vst [vmem:[#allocation11_spill] sm:$0xff] %v6606_v25  ;;  %8575 = vst [vmem:[#allocation10_spill] sm:$0xff] %v6611_v12  ;;  %4073 = vmatprep.subr.bf16.mxu0 %v4072_v8  ;;  %v4078_v23 = vpack.c.bf16 %v6498_v7, %v6493_v16  ;;  %v6630_v44 = vld [vmem:[%s8494_s1 + $0x460] sm:$0xff]  ;;  %v6635_v26 = vld [vmem:[%s8494_s1 + $0x468] sm:$0xff] }
 0x119   :  { %v2501_v3 = vmul.f32 0.020408163, %v1924_v38  ;;  %v2119_v15 = vadd.f32 %v2118_v51, %v2117_v56  ;;  %v6640_v10 = vld [vmem:[%s8494_s1 + $0x5e0] sm:$0xff]  ;;  %v6645_v6 = vld [vmem:[%s8494_s1 + $0x5e8] sm:$0xff]  ;;  %v6660_v45 = vld [vmem:[%s8494_s1 + $0x4f0] sm:$0xff]  ;;  %v4080_v56 = vpack.c.bf16 %v6529_v29, %v6524_v9  ;;  %v8582_v12 = vpack.c.bf16 %v6404_v36, %v6399_v48 }
 0x11a   :  { %v2313_v18 = vrot.slane %v2312_v42, 1  ;;  %8576 = vst [vmem:[#allocation13_spill] sm:$0xff] %v6640_v10  ;;  %8577 = vst [vmem:[#allocation12_spill] sm:$0xff] %v6645_v6  ;;  %v6650_v61 = vld [vmem:[%s8494_s1 + $0x560] sm:$0xff]  ;;  %v6655_v13 = vld [vmem:[%s8494_s1 + $0x568] sm:$0xff] }
 0x11b   :  { %8578 = vst [vmem:[#allocation15_spill] sm:$0xff] %v6650_v61  ;;  %8579 = vst [vmem:[#allocation14_spill] sm:$0xff] %v6655_v13  ;;  %v6665_v35 = vld [vmem:[%s8494_s1 + $0x4f8] sm:$0xff]  ;;  %v2713_v22 = vsel %vm2668_vm5, %v2501_v3, %v2712_v19  ;;  %v6677_v46 = vld [vmem:[%s8494_s1 + $0x470] sm:$0xff]  ;;  %v2516_v51 = vmul.f32 0.020408163, %v2119_v15  ;;  %4075 = vmatpush3.bf16.msra.mxu0 %v4074_v39 }
 0x11c   :  { %v6682_v59 = vld [vmem:[%s8494_s1 + $0x478] sm:$0xff]  ;;  %v6687_v47 = vld [vmem:[%s8494_s1 + $0x5f0] sm:$0xff]  ;;  %v27_v9 = vld [vmem:[%s8493_s0 + $0x48] sm:$0xff]  ;;  %v2314_v43 = vadd.f32 %v2313_v18, %v2312_v42  ;;  %4077 = vmatprep.subr.bf16.mxu0 %v4076_v33 }
 0x11d   :  { %8580 = vst [vmem:[#allocation17_spill] sm:$0xff] %v6687_v47  ;;  %v6692_v38 = vld [vmem:[%s8494_s1 + $0x5f8] sm:$0xff]  ;;  %v42_v29 = vld [vmem:[%s8493_s0 + $0xc0] sm:$0xff]  ;;  %v132_v7 = vld [vmem:[%s8493_s0 + $0x390] sm:$0xff]  ;;  %v2714_v62 = vsel %vm2670_vm6, %v2516_v51, %v2713_v22 }
 0x11e   :  { %8581 = vst [vmem:[#allocation16_spill] sm:$0xff] %v6692_v38  ;;  %v117_v19 = vld [vmem:[%s8493_s0 + $0x318] sm:$0x1]  ;;  %v147_v42 = vld [vmem:[%s8493_s0 + $0x408] sm:$0xff]  ;;  %v222_v33 = vld [vmem:[%s8493_s0 + $0x660] sm:$0x1] }
 0x11f   :  { %v57_v16 = vld [vmem:[%s8493_s0 + $0x138] sm:$0xff]  ;;  %v252_v63 = vld [vmem:[%s8493_s0 + $0x750] sm:$0xff]  ;;  %v2531_v18 = vmul.f32 0.020408163, %v2314_v43  ;;  %v162_v15 = vld [vmem:[%s8493_s0 + $0x480] sm:$0xff]  ;;  %4079 = vmatpush3.bf16.msra.mxu0 %v4078_v23 }
 0x120   :  { %v237_v39 = vld [vmem:[%s8493_s0 + $0x6d8] sm:$0xff]  ;;  %v267_v8 = vld [vmem:[%s8493_s0 + $0x7c8] sm:$0xff]  ;;  %v342_v22 = vld [vmem:[%s8493_s0 + $0xa20] sm:$0xff]  ;;  %4081 = vmatprep.subr.bf16.mxu0 %v4080_v56  ;;  %v6806_v56 = vsel %vm863_vm0, %v222_v33, 0.0 }
 0x121   :  { %v327_v43 = vld [vmem:[%s8493_s0 + $0x9a8] sm:$0x1]  ;;  %v72_v34 = vld [vmem:[%s8493_s0 + $0x1b0] sm:$0xff]  ;;  %v357_v25 = vld [vmem:[%s8493_s0 + $0xa98] sm:$0xff]  ;;  %v2715_v32 = vsel %vm2672_vm7, %v2531_v18, %v2714_v62  ;;  %v976_v18 = vadd.f32 %v42_v29, %v27_v9  ;;  %v6803_v9 = vsel %vm863_vm0, %v117_v19, 0.0  ;;  %v1366_v29 = vadd.f32 %v252_v63, %v237_v39 }
 0x122   :  { %v372_v51 = vld [vmem:[%s8493_s0 + $0xb10] sm:$0xff]  ;;  %v177_v13 = vld [vmem:[%s8493_s0 + $0x4f8] sm:$0xff]  ;;  %v282_v10 = vld [vmem:[%s8493_s0 + $0x840] sm:$0xff]  ;;  %2793 = vst [vmem:[#allocation2 + $0x30] sm:$0xff] %v2715_v32  ;;  %3324 = vmatmul.mubr.f32.vlgmr.msra.gmra.mrb[2].mxu1 %v2715_v32  ;;  %v1171_v32 = vadd.f32 %v147_v42, %v132_v7  ;;  %v1561_v19 = vadd.f32 %v357_v25, %v342_v22  ;;  %v8583_v39 = vpack.c.bf16 %v6426_v1, %v6421_v11 }
 0x123   :  { %v432_v3 = vld [vmem:[%s8493_s0 + $0xcf0] sm:$0x1]  ;;  %v447_v6 = vld [vmem:[%s8493_s0 + $0xd68] sm:$0xff]  ;;  %v462_v62 = vld [vmem:[%s8493_s0 + $0xde0] sm:$0xff]  ;;  %4099 = vmatpush3.bf16.msra.mxu1 %v8582_v12  ;;  %v977_v36 = vadd.f32 %v976_v18, %v57_v16  ;;  %v6827_v12 = vsel %vm863_vm0, %v327_v43, 0.0  ;;  %v1367_v43 = vadd.f32 %v1366_v29, %v267_v8  ;;  %v8584_v22 = vpack.c.bf16 %v6543_v50, %v6538_v2 }
 0x124   :  { %v537_v23 = vld [vmem:[%s8493_s0 + $0x1038] sm:$0x1]  ;;  %v87_v61 = vld [vmem:[%s8493_s0 + $0x228] sm:$0xff]  ;;  %v552_v37 = vld [vmem:[%s8493_s0 + $0x10b0] sm:$0xff]  ;;  %v6830_v42 = vsel %vm863_vm0, %v432_v3, 0.0  ;;  %4101 = vmatprep.subr.bf16.mxu1 %v8583_v39  ;;  %v1172_v3 = vadd.f32 %v1171_v32, %v162_v15  ;;  %v1756_v11 = vadd.f32 %v462_v62, %v447_v6  ;;  %v1562_v62 = vadd.f32 %v1561_v19, %v372_v51 }
 0x125   :  { %v567_v47 = vld [vmem:[%s8493_s0 + $0x1128] sm:$0xff]  ;;  %v642_v38 = vld [vmem:[%s8493_s0 + $0x1380] sm:$0x1]  ;;  %v192_v40 = vld [vmem:[%s8493_s0 + $0x570] sm:$0xff]  ;;  %v6848_v1 = vsel %vm863_vm0, %v537_v23, 0.0  ;;  %4083 = vmatpush3.bf16.msra.mxu0 %v8584_v22  ;;  %v978_v15 = vadd.f32 %v977_v36, %v72_v34  ;;  %v8585_v23 = vpack.c.bf16 %v6576_v53, %v6571_v52  ;;  %v8586_v52 = vpack.c.bf16 %v6436_v24, %v6431_v58 }
 0x126   :  { %v297_v21 = vld [vmem:[%s8493_s0 + $0x8b8] sm:$0xff]  ;;  %v672_v48 = vld [vmem:[%s8493_s0 + $0x1470] sm:$0xff]  ;;  %v102_v33 = vld [vmem:[%s8493_s0 + $0x2a0] sm:$0xff]  ;;  %v1951_v2 = vadd.f32 %v567_v47, %v552_v37  ;;  %v6866_v50 = vsel %vm863_vm0, %v642_v38, 0.0  ;;  %v1173_v37 = vadd.f32 %v1172_v3, %v177_v13  ;;  %v1368_v47 = vadd.f32 %v1367_v43, %v282_v10 }
 0x127   :  { %v477_v7 = vld [vmem:[%s8493_s0 + $0xe58] sm:$0xff]  ;;  %v387_v17 = vld [vmem:[%s8493_s0 + $0xb88] sm:$0xff]  ;;  %v582_v16 = vld [vmem:[%s8493_s0 + $0x11a0] sm:$0xff]  ;;  %4085 = vmatprep.subr.bf16.mxu0 %v8585_v23  ;;  %4103 = vmatpush3.bf16.msra.mxu1 %v8586_v52  ;;  %v979_v13 = vadd.f32 %v978_v15, %v87_v61  ;;  %v8587_v58 = vpack.c.bf16 %v6466_v5, %v6461_v60  ;;  %v8588_v60 = vpack.c.bf16 %v6586_v20, %v6581_v55 }
 0x128   :  { %v657_v63 = vld [vmem:[%s8493_s0 + $0x13f8] sm:$0xff]  ;;  %v747_v25 = vld [vmem:[%s8493_s0 + $0x16c8] sm:$0x1]  ;;  %v402_v39 = vld [vmem:[%s8493_s0 + $0xc00] sm:$0xff]  ;;  %v1757_v38 = vadd.f32 %v1756_v11, %v477_v7  ;;  %v1563_v10 = vadd.f32 %v1562_v62, %v387_v17  ;;  %v1952_v7 = vadd.f32 %v1951_v2, %v582_v16  ;;  %v1174_v17 = vadd.f32 %v1173_v37, %v192_v40 }
 0x129   :  { %v207_v18 = vld [vmem:[%s8493_s0 + $0x5e8] sm:$0xff]  ;;  %v492_v8 = vld [vmem:[%s8493_s0 + $0xed0] sm:$0xff]  ;;  %v597_v32 = vld [vmem:[%s8493_s0 + $0x1218] sm:$0xff]  ;;  %v2146_v51 = vadd.f32 %v672_v48, %v657_v63  ;;  %v2151_v63 = vsel %vm863_vm0, %v747_v25, 0.0  ;;  %4105 = vmatprep.subr.bf16.mxu1 %v8587_v58  ;;  %v1369_v16 = vadd.f32 %v1368_v47, %v297_v21  ;;  %4087 = vmatpush3.bf16.msra.mxu0 %v8588_v60  ;;  %v980_v11 = vadd.f32 %v979_v13, %v102_v33 }
 0x12a   :  { %v687_v6 = vld [vmem:[%s8493_s0 + $0x14e8] sm:$0xff]  ;;  %v762_v29 = vld [vmem:[%s8493_s0 + $0x1740] sm:$0xff]  ;;  %v777_v34 = vld [vmem:[%s8493_s0 + $0x17b8] sm:$0xff]  ;;  %v1758_v3 = vadd.f32 %v1757_v38, %v492_v8  ;;  %v1564_v22 = vadd.f32 %v1563_v10, %v402_v39  ;;  %v1953_v15 = vadd.f32 %v1952_v7, %v597_v32  ;;  %v8589_v40 = vpack.c.bf16 %v6621_v54, %v6616_v49 }
 0x12b   :  { %v312_v53 = vld [vmem:[%s8493_s0 + $0x930] sm:$0xff]  ;;  %v507_v36 = vld [vmem:[%s8493_s0 + $0xf48] sm:$0xff]  ;;  %v702_v19 = vld [vmem:[%s8493_s0 + $0x1560] sm:$0xff]  ;;  %v2147_v25 = vadd.f32 %v2146_v51, %v687_v6  ;;  %v2341_v62 = vadd.f32 %v777_v34, %v762_v29  ;;  %v1175_v21 = vadd.f32 %v1174_v17, %v207_v18  ;;  %v8590_v33 = vpack.c.bf16 %v6476_v57, %v6471_v30 }
 0x12c   :  { %v417_v24 = vld [vmem:[%s8493_s0 + $0xc78] sm:$0xff]  ;;  %v612_v48 = vld [vmem:[%s8493_s0 + $0x1290] sm:$0xff]  ;;  %v522_v5 = vld [vmem:[%s8493_s0 + $0xfc0] sm:$0xff]  ;;  %4089 = vmatprep.subr.bf16.mxu0 %v8589_v40  ;;  %v1370_v8 = vadd.f32 %v1369_v16, %v312_v53  ;;  %v1759_v6 = vadd.f32 %v1758_v3, %v507_v36  ;;  %v982_v54 = vadd.f32 %v6803_v9, %v980_v11  ;;  %v8591_v29 = vpack.c.bf16 %v6509_v27, %v6504_v0 }
 0x12d   :  { %v792_v61 = vld [vmem:[%s8493_s0 + $0x1830] sm:$0xff]  ;;  %v717_v43 = vld [vmem:[%s8493_s0 + $0x15d8] sm:$0xff]  ;;  %v627_v55 = vld [vmem:[%s8493_s0 + $0x1308] sm:$0xff]  ;;  %v2148_v2 = vadd.f32 %v2147_v25, %v702_v19  ;;  %4107 = vmatpush3.bf16.msra.mxu1 %v8590_v33  ;;  %v1565_v39 = vadd.f32 %v1564_v22, %v417_v24  ;;  %v1954_v23 = vadd.f32 %v1953_v15, %v612_v48  ;;  %v1177_v30 = vadd.f32 %v6806_v56, %v1175_v21 }
 0x12e   :  { %v807_v20 = vld [vmem:[%s8493_s0 + $0x18a8] sm:$0xff]  ;;  %v732_v49 = vld [vmem:[%s8493_s0 + $0x1650] sm:$0xff]  ;;  %v2342_v32 = vadd.f32 %v2341_v62, %v792_v61  ;;  %4109 = vmatprep.subr.bf16.mxu1 %v8591_v29  ;;  %v822_v18 = vld [vmem:[%s8493_s0 + $0x1920] sm:$0xff]  ;;  %v1372_v57 = vadd.f32 %v6827_v12, %v1370_v8  ;;  %v1760_v34 = vadd.f32 %v1759_v6, %v522_v5  ;;  %v8592_v9 = vpack.c.bf16 %v6635_v26, %v6630_v44 }
 0x12f   :  { %v2149_v37 = vadd.f32 %v2148_v2, %v717_v43  ;;  %v983_v47 = vrot.slane %v982_v54, 4  ;;  %v1567_v38 = vadd.f32 %v6830_v42, %v1565_v39  ;;  %v1955_v51 = vadd.f32 %v1954_v23, %v627_v55  ;;  %v837_v56 = vld [vmem:[%s8493_s0 + $0x1998] sm:$0xff]  ;;  %v8597_v16 = vld [vmem:[#allocation18_spill] sm:$0xff]  ;;  %v8599_v43 = vld [vmem:[#allocation8_spill] sm:$0xff] }
 0x130   :  { %4091 = vmatpush3.bf16.msra.mxu0 %v8592_v9  ;;  %v2343_v0 = vadd.f32 %v2342_v32, %v807_v20  ;;  %v8593_v27 = vpack.c.bf16 %v6665_v35, %v6660_v45  ;;  %v1178_v12 = vrot.slane %v1177_v30, 4  ;;  %v1373_v52 = vrot.slane %v1372_v57, 4  ;;  %v852_v35 = vld [vmem:[%s8493_s0 + $0x1a10] sm:$0x1] }
 0x131   :  { %v1762_v53 = vadd.f32 %v6848_v1, %v1760_v34  ;;  %v2150_v36 = vadd.f32 %v2149_v37, %v732_v49  ;;  %v8594_v44 = vpack.c.bf16 %v6519_v31, %v6514_v28  ;;  %v984_v26 = vadd.f32 %v983_v47, %v982_v54  ;;  %v8602_v33 = vld [vmem:[#allocation10_spill] sm:$0xff]  ;;  %v8603_v49 = vld [vmem:[#allocation11_spill] sm:$0xff] }
 0x132   :  { %4093 = vmatprep.subr.bf16.mxu0 %v8593_v27  ;;  %v1568_v42 = vrot.slane %v1567_v38, 4  ;;  %v1957_v19 = vadd.f32 %v6866_v50, %v1955_v51  ;;  %v2344_v13 = vadd.f32 %v2343_v0, %v822_v18  ;;  %v8595_v45 = vpack.c.bf16 %v6553_v4, %v6548_v14  ;;  %v8605_v18 = vld [vmem:[#allocation12_spill] sm:$0xff]  ;;  %v2977_v51 = vld [vmem:[%s8494_s1 + $0x578] sm:$0xff] }
 0x133   :  { %4111 = vmatpush3.bf16.msra.mxu1 %v8594_v44  ;;  %v1179_v10 = vadd.f32 %v1178_v12, %v1177_v30  ;;  %v1374_v1 = vadd.f32 %v1373_v52, %v1372_v57  ;;  %v1763_v7 = vrot.slane %v1762_v53, 4  ;;  %v2152_v58 = vadd.f32 %v2151_v63, %v2150_v36  ;;  %v8606_v30 = vld [vmem:[#allocation13_spill] sm:$0xff]  ;;  %v26_v0 = vld [vmem:[%s8493_s0 + $0x40] sm:$0xff]  ;;  %v116_v36 = vld [vmem:[%s8493_s0 + $0x310] sm:$0x1] }
 0x134   :  { %4113 = vmatprep.subr.bf16.mxu1 %v8595_v45  ;;  %v8596_v28 = vpack.c.bf16 %v6682_v59, %v6677_v46  ;;  %v985_v31 = vrot.slane %v984_v26, 2  ;;  %v1569_v24 = vadd.f32 %v1568_v42, %v1567_v38  ;;  %v1958_v50 = vrot.slane %v1957_v19, 4  ;;  %v8600_v46 = vld [vmem:[#allocation9_spill] sm:$0xff]  ;;  %v2976_v38 = vld [vmem:[%s8494_s1 + $0x570] sm:$0xff] }
 0x135   :  { %v2345_v48 = vadd.f32 %v2344_v13, %v837_v56  ;;  %v1180_v61 = vrot.slane %v1179_v10, 2  ;;  %v1375_v17 = vrot.slane %v1374_v1, 2  ;;  %v1764_v14 = vadd.f32 %v1763_v7, %v1762_v53  ;;  %v41_v53 = vld [vmem:[%s8493_s0 + $0xb8] sm:$0xff]  ;;  %v56_v13 = vld [vmem:[%s8493_s0 + $0x130] sm:$0xff] }
 0x136   :  { %4095 = vmatpush3.bf16.msra.mxu0 %v8596_v28  ;;  %v2153_v4 = vrot.slane %v2152_v58, 4  ;;  %v8598_v3 = vpack.c.bf16 %v6566_v41, %v8597_v16  ;;  %v986_v25 = vadd.f32 %v985_v31, %v984_v26  ;;  %v1570_v60 = vrot.slane %v1569_v24, 2  ;;  %v8608_v45 = vld [vmem:[#allocation14_spill] sm:$0xff]  ;;  %v71_v31 = vld [vmem:[%s8493_s0 + $0x1a8] sm:$0xff] }
 0x137   :  { %v1959_v5 = vadd.f32 %v1958_v50, %v1957_v19  ;;  %v2346_v63 = vsel %vm863_vm0, %v852_v35, 0.0  ;;  %v8601_v59 = vpack.c.bf16 %v8599_v43, %v8600_v46  ;;  %v1181_v11 = vadd.f32 %v1180_v61, %v1179_v10  ;;  %v8609_v35 = vld [vmem:[#allocation15_spill] sm:$0xff]  ;;  %v146_v50 = vld [vmem:[%s8493_s0 + $0x400] sm:$0xff] }
 0x138   :  { %4115 = vmatpush3.bf16.msra.mxu1 %v8598_v3  ;;  %v1376_v22 = vadd.f32 %v1375_v17, %v1374_v1  ;;  %v1765_v15 = vrot.slane %v1764_v14, 2  ;;  %v2154_v62 = vadd.f32 %v2153_v4, %v2152_v58  ;;  %v987_v40 = vrot.slane %v986_v25, 1  ;;  %v8611_v61 = vld [vmem:[#allocation16_spill] sm:$0xff]  ;;  %v8612_v17 = vld [vmem:[#allocation17_spill] sm:$0xff] }
 0x139   :  { %4117 = vmatprep.subr.bf16.mxu1 %v8601_v59  ;;  %v1571_v55 = vadd.f32 %v1570_v60, %v1569_v24  ;;  %v1960_v20 = vrot.slane %v1959_v5, 2  ;;  %v2347_v21 = vadd.f32 %v2346_v63, %v2345_v48  ;;  %v1182_v8 = vrot.slane %v1181_v11, 1  ;;  %v131_v24 = vld [vmem:[%s8493_s0 + $0x388] sm:$0xff]  ;;  %v161_v48 = vld [vmem:[%s8493_s0 + $0x478] sm:$0xff]  ;;  %v236_v60 = vld [vmem:[%s8493_s0 + $0x6d0] sm:$0xff] }
 0x13a   :  { %v1377_v41 = vrot.slane %v1376_v22, 1  ;;  %v1766_v6 = vadd.f32 %v1765_v15, %v1764_v14  ;;  %v2155_v2 = vrot.slane %v2154_v62, 2  ;;  %v8604_v54 = vpack.c.bf16 %v8602_v33, %v8603_v49  ;;  %v266_v15 = vld [vmem:[%s8493_s0 + $0x7c0] sm:$0xff] }
 0x13b   :  { %v988_v39 = vadd.f32 %v987_v40, %v986_v25  ;;  %v1572_v23 = vrot.slane %v1571_v55, 1  ;;  %v1961_v32 = vadd.f32 %v1960_v20, %v1959_v5  ;;  %v2348_v29 = vrot.slane %v2347_v21, 4  ;;  %v221_v25 = vld [vmem:[%s8493_s0 + $0x658] sm:$0x1]  ;;  %v251_v5 = vld [vmem:[%s8493_s0 + $0x748] sm:$0xff] }
 0x13c   :  { %4119 = vmatpush3.bf16.msra.mxu1 %v8604_v54  ;;  %v8607_v57 = vpack.c.bf16 %v8605_v18, %v8606_v30  ;;  %v1183_v34 = vadd.f32 %v1182_v8, %v1181_v11  ;;  %v1378_v37 = vadd.f32 %v1377_v41, %v1376_v22  ;;  %v1767_v9 = vrot.slane %v1766_v6, 1  ;;  %v86_v11 = vld [vmem:[%s8493_s0 + $0x220] sm:$0xff]  ;;  %v176_v22 = vld [vmem:[%s8493_s0 + $0x4f0] sm:$0xff]  ;;  %v341_v8 = vld [vmem:[%s8493_s0 + $0xa18] sm:$0xff] }
 0x13d   :  { %v2156_v47 = vadd.f32 %v2155_v2, %v2154_v62  ;;  %v1573_v27 = vadd.f32 %v1572_v23, %v1571_v55  ;;  %v1962_v56 = vrot.slane %v1961_v32, 1  ;;  %v2349_v12 = vadd.f32 %v2348_v29, %v2347_v21  ;;  %v326_v62 = vld [vmem:[%s8493_s0 + $0x9a0] sm:$0x1]  ;;  %v281_v21 = vld [vmem:[%s8493_s0 + $0x838] sm:$0xff]  ;;  %v356_v41 = vld [vmem:[%s8493_s0 + $0xa90] sm:$0xff] }
 0x13e   :  { %4121 = vmatprep.subr.bf16.mxu1 %v8607_v57  ;;  %v2429_v52 = vmul.f32 0.020408163, %v988_v39  ;;  %v1768_v44 = vadd.f32 %v1767_v9, %v1766_v6  ;;  %v2444_v42 = vmul.f32 0.020408163, %v1183_v34  ;;  %v2459_v19 = vmul.f32 0.020408163, %v1378_v37 }
 0x13f   :  { %v2157_v26 = vrot.slane %v2156_v47, 1  ;;  %v8610_v10 = vpack.c.bf16 %v8608_v45, %v8609_v35  ;;  %v1963_v1 = vadd.f32 %v1962_v56, %v1961_v32  ;;  %v2350_v7 = vrot.slane %v2349_v12, 2  ;;  %v101_v54 = vld [vmem:[%s8493_s0 + $0x298] sm:$0xff]  ;;  %v191_v39 = vld [vmem:[%s8493_s0 + $0x568] sm:$0xff]  ;;  %v446_v32 = vld [vmem:[%s8493_s0 + $0xd60] sm:$0xff] }
 0x140   :  { %v2474_v58 = vmul.f32 0.020408163, %v1573_v27  ;;  %v4126_v28 = vpack.c.bf16 %v2977_v51, %v2976_v38  ;;  %v8613_v14 = vpack.c.bf16 %v8611_v61, %v8612_v17  ;;  %v2489_v16 = vmul.f32 0.020408163, %v1768_v44  ;;  %v431_v23 = vld [vmem:[%s8493_s0 + $0xce8] sm:$0x1] }
 0x141   :  { %4123 = vmatpush3.bf16.msra.mxu1 %v8610_v10  ;;  %v2158_v4 = vadd.f32 %v2157_v26, %v2156_v47  ;;  %v2730_v3 = vsel %vm2660_vm1, %v2444_v42, %v2429_v52  ;;  %v963_v63 = vadd.f32 %v41_v53, %v26_v0  ;;  %v2351_v43 = vadd.f32 %v2350_v7, %v2349_v12  ;;  %v461_v29 = vld [vmem:[%s8493_s0 + $0xdd8] sm:$0xff]  ;;  %v296_v34 = vld [vmem:[%s8493_s0 + $0x8b0] sm:$0xff]  ;;  %v371_v37 = vld [vmem:[%s8493_s0 + $0xb08] sm:$0xff] }
 0x142   :  { %4125 = vmatprep.subr.bf16.mxu1 %v8613_v14  ;;  %v2504_v46 = vmul.f32 0.020408163, %v1963_v1  ;;  %v2731_v59 = vsel %vm2662_vm2, %v2459_v19, %v2730_v3  ;;  %v7035_v40 = vsel %vm863_vm0, %v116_v36, 0.0  ;;  %v1158_v2 = vadd.f32 %v146_v50, %v131_v24  ;;  %v536_v9 = vld [vmem:[%s8493_s0 + $0x1030] sm:$0x1]  ;;  %v206_v56 = vld [vmem:[%s8493_s0 + $0x5e0] sm:$0xff] }
 0x143   :  { %v2519_v55 = vmul.f32 0.020408163, %v2158_v4  ;;  %v2732_v20 = vsel %vm2664_vm3, %v2474_v58, %v2731_v59  ;;  %v964_v6 = vadd.f32 %v963_v63, %v56_v13  ;;  %v2352_v33 = vrot.slane %v2351_v43, 1  ;;  %v476_v12 = vld [vmem:[%s8493_s0 + $0xe50] sm:$0xff]  ;;  %v551_v52 = vld [vmem:[%s8493_s0 + $0x10a8] sm:$0xff]  ;;  %v566_v53 = vld [vmem:[%s8493_s0 + $0x1120] sm:$0xff] }
 0x144   :  { %v2733_v49 = vsel %vm2666_vm4, %v2489_v16, %v2732_v20  ;;  %v7064_v18 = vsel %vm863_vm0, %v221_v25, 0.0  ;;  %v1353_v30 = vadd.f32 %v251_v5, %v236_v60  ;;  %v1159_v38 = vadd.f32 %v1158_v2, %v161_v48  ;;  %v311_v26 = vld [vmem:[%s8493_s0 + $0x928] sm:$0xff]  ;;  %v386_v42 = vld [vmem:[%s8493_s0 + $0xb80] sm:$0xff]  ;;  %v641_v19 = vld [vmem:[%s8493_s0 + $0x1378] sm:$0x1] }
 0x145   :  { %4127 = vmatpush3.bf16.msra.mxu1 %v4126_v28  ;;  %v2734_v57 = vsel %vm2668_vm5, %v2504_v46, %v2733_v49  ;;  %v965_v47 = vadd.f32 %v964_v6, %v71_v31  ;;  %v1358_v51 = vsel %vm863_vm0, %v326_v62, 0.0  ;;  %v2353_v0 = vadd.f32 %v2352_v33, %v2351_v43  ;;  %v401_v7 = vld [vmem:[%s8493_s0 + $0xbf8] sm:$0xff]  ;;  %v491_v58 = vld [vmem:[%s8493_s0 + $0xec8] sm:$0xff]  ;;  %v656_v48 = vld [vmem:[%s8493_s0 + $0x13f0] sm:$0xff] }
 0x146   :  { %v2735_v27 = vsel %vm2670_vm6, %v2519_v55, %v2734_v57  ;;  %v1354_v36 = vadd.f32 %v1353_v30, %v266_v15  ;;  %v1548_v44 = vadd.f32 %v356_v41, %v341_v8  ;;  %v1160_v45 = vadd.f32 %v1159_v38, %v176_v22  ;;  %v581_v28 = vld [vmem:[%s8493_s0 + $0x1198] sm:$0xff]  ;;  %v671_v61 = vld [vmem:[%s8493_s0 + $0x1468] sm:$0xff]  ;;  %v746_v17 = vld [vmem:[%s8493_s0 + $0x16c0] sm:$0x1] }
 0x147   :  { %v966_v13 = vadd.f32 %v965_v47, %v86_v11  ;;  %v1553_v35 = vsel %vm863_vm0, %v431_v23, 0.0  ;;  %v1743_v10 = vadd.f32 %v461_v29, %v446_v32  ;;  %v2534_v1 = vmul.f32 0.020408163, %v2353_v0  ;;  %v416_v60 = vld [vmem:[%s8493_s0 + $0xc70] sm:$0xff]  ;;  %v506_v5 = vld [vmem:[%s8493_s0 + $0xf40] sm:$0xff]  ;;  %v761_v22 = vld [vmem:[%s8493_s0 + $0x1738] sm:$0xff] }
 0x148   :  { %v1355_v31 = vadd.f32 %v1354_v36, %v281_v21  ;;  %v1549_v24 = vadd.f32 %v1548_v44, %v371_v37  ;;  %v1748_v50 = vsel %vm863_vm0, %v536_v9, 0.0  ;;  %v1161_v4 = vadd.f32 %v1160_v45, %v191_v39  ;;  %v596_v63 = vld [vmem:[%s8493_s0 + $0x1210] sm:$0xff]  ;;  %v686_v11 = vld [vmem:[%s8493_s0 + $0x14e0] sm:$0xff]  ;;  %v521_v8 = vld [vmem:[%s8493_s0 + $0xfb8] sm:$0xff] }
 0x149   :  { %v967_v14 = vadd.f32 %v966_v13, %v101_v54  ;;  %v1744_v16 = vadd.f32 %v1743_v10, %v476_v12  ;;  %v1938_v3 = vadd.f32 %v566_v53, %v551_v52  ;;  %v2736_v25 = vsel %vm2672_vm7, %v2534_v1, %v2735_v27  ;;  %v776_v15 = vld [vmem:[%s8493_s0 + $0x17b0] sm:$0xff]  ;;  %v611_v41 = vld [vmem:[%s8493_s0 + $0x1288] sm:$0xff]  ;;  %v626_v30 = vld [vmem:[%s8493_s0 + $0x1300] sm:$0xff] }
 0x14a   :  { %v1356_v43 = vadd.f32 %v1355_v31, %v296_v34  ;;  %v1550_v46 = vadd.f32 %v1549_v24, %v386_v42  ;;  %v1943_v59 = vsel %vm863_vm0, %v641_v19, 0.0  ;;  %2796 = vst [vmem:[#allocation2 + $0x48] sm:$0xff] %v2736_v25  ;;  %3393 = vmatprep.mubr.f32.mxu0 %v2736_v25  ;;  %v1162_v55 = vadd.f32 %v1161_v4, %v206_v56  ;;  %v791_v54 = vld [vmem:[%s8493_s0 + $0x1828] sm:$0xff]  ;;  %v716_v47 = vld [vmem:[%s8493_s0 + $0x15d0] sm:$0xff]  ;;  %v806_v38 = vld [vmem:[%s8493_s0 + $0x18a0] sm:$0xff] }
 0x14b   :  { %v969_v62 = vadd.f32 %v7035_v40, %v967_v14  ;;  %v1745_v20 = vadd.f32 %v1744_v16, %v491_v58  ;;  %v1939_v21 = vadd.f32 %v1938_v3, %v581_v28  ;;  %v2133_v33 = vadd.f32 %v671_v61, %v656_v48  ;;  %v701_v40 = vld [vmem:[%s8493_s0 + $0x1558] sm:$0xff] }
 0x14c   :  { %v1357_v6 = vadd.f32 %v1356_v43, %v311_v26  ;;  %v1551_v2 = vadd.f32 %v1550_v46, %v401_v7  ;;  %v2138_v49 = vsel %vm863_vm0, %v746_v17, 0.0  ;;  %v1164_v23 = vadd.f32 %v7064_v18, %v1162_v55  ;;  %v821_v44 = vld [vmem:[%s8493_s0 + $0x1918] sm:$0xff] }
 0x14d   :  { %v970_v39 = vrot.slane %v969_v62, 4  ;;  %v1746_v32 = vadd.f32 %v1745_v20, %v506_v5  ;;  %v1940_v29 = vadd.f32 %v1939_v21, %v596_v63  ;;  %v2134_v37 = vadd.f32 %v2133_v33, %v686_v11  ;;  %v3011_v33 = vld [vmem:[%s8494_s1 + $0x688] sm:$0xff] }
 0x14e   :  { %v1359_v57 = vadd.f32 %v1358_v51, %v1357_v6  ;;  %v1552_v34 = vadd.f32 %v1551_v2, %v416_v60  ;;  %v2328_v9 = vadd.f32 %v776_v15, %v761_v22  ;;  %v1165_v18 = vrot.slane %v1164_v23, 4  ;;  %v731_v51 = vld [vmem:[%s8493_s0 + $0x1648] sm:$0xff]  ;;  %v3010_v2 = vld [vmem:[%s8494_s1 + $0x680] sm:$0xff] }
 0x14f   :  { %v971_v0 = vadd.f32 %v970_v39, %v969_v62  ;;  %v1747_v27 = vadd.f32 %v1746_v32, %v521_v8  ;;  %v1941_v56 = vadd.f32 %v1940_v29, %v611_v41  ;;  %v2135_v53 = vadd.f32 %v2134_v37, %v701_v40 }
 0x150   :  { %v1360_v12 = vrot.slane %v1359_v57, 4  ;;  %v1554_v52 = vadd.f32 %v1553_v35, %v1552_v34  ;;  %v2329_v36 = vadd.f32 %v2328_v9, %v791_v54  ;;  %v1166_v42 = vadd.f32 %v1165_v18, %v1164_v23  ;;  %v836_v35 = vld [vmem:[%s8493_s0 + $0x1990] sm:$0xff] }
 0x151   :  { %v972_v26 = vrot.slane %v971_v0, 2  ;;  %v1749_v19 = vadd.f32 %v1748_v50, %v1747_v27  ;;  %v1942_v13 = vadd.f32 %v1941_v56, %v626_v30  ;;  %v2136_v1 = vadd.f32 %v2135_v53, %v716_v47  ;;  %v851_v50 = vld [vmem:[%s8493_s0 + $0x1a08] sm:$0x1]  ;;  %v44_v34 = vld [vmem:[%s8493_s0 + $0xd0] sm:$0xff]  ;;  %v134_v53 = vld [vmem:[%s8493_s0 + $0x3a0] sm:$0xff] }
 0x152   :  { %v1361_v45 = vadd.f32 %v1360_v12, %v1359_v57  ;;  %v1555_v10 = vrot.slane %v1554_v52, 4  ;;  %v2330_v7 = vadd.f32 %v2329_v36, %v806_v38  ;;  %v1167_v28 = vrot.slane %v1166_v42, 2  ;;  %v29_v57 = vld [vmem:[%s8493_s0 + $0x58] sm:$0xff] }
 0x153   :  { %v973_v58 = vadd.f32 %v972_v26, %v971_v0  ;;  %v1750_v31 = vrot.slane %v1749_v19, 4  ;;  %v1944_v24 = vadd.f32 %v1943_v59, %v1942_v13  ;;  %v2137_v17 = vadd.f32 %v2136_v1, %v731_v51  ;;  %v119_v0 = vld [vmem:[%s8493_s0 + $0x328] sm:$0x1]  ;;  %v149_v36 = vld [vmem:[%s8493_s0 + $0x418] sm:$0xff]  ;;  %v224_v13 = vld [vmem:[%s8493_s0 + $0x670] sm:$0x1] }
 0x154   :  { %v1362_v48 = vrot.slane %v1361_v45, 2  ;;  %v1556_v61 = vadd.f32 %v1555_v10, %v1554_v52  ;;  %v2331_v14 = vadd.f32 %v2330_v7, %v821_v44  ;;  %v1168_v16 = vadd.f32 %v1167_v28, %v1166_v42  ;;  %v59_v52 = vld [vmem:[%s8493_s0 + $0x148] sm:$0xff]  ;;  %v74_v42 = vld [vmem:[%s8493_s0 + $0x1c0] sm:$0xff] }
 0x155   :  { %v974_v4 = vrot.slane %v973_v58, 1  ;;  %v1751_v3 = vadd.f32 %v1750_v31, %v1749_v19  ;;  %v1945_v25 = vrot.slane %v1944_v24, 4  ;;  %v2139_v63 = vadd.f32 %v2138_v49, %v2137_v17  ;;  %v164_v19 = vld [vmem:[%s8493_s0 + $0x490] sm:$0xff]  ;;  %v239_v28 = vld [vmem:[%s8493_s0 + $0x6e8] sm:$0xff]  ;;  %v254_v31 = vld [vmem:[%s8493_s0 + $0x760] sm:$0xff] }
 0x156   :  { %v1363_v60 = vadd.f32 %v1362_v48, %v1361_v45  ;;  %v1557_v5 = vrot.slane %v1556_v61, 2  ;;  %v2332_v43 = vadd.f32 %v2331_v14, %v836_v35  ;;  %v1169_v11 = vrot.slane %v1168_v16, 1  ;;  %v89_v35 = vld [vmem:[%s8493_s0 + $0x238] sm:$0xff]  ;;  %v344_v14 = vld [vmem:[%s8493_s0 + $0xa30] sm:$0xff] }
 0x157   :  { %v975_v46 = vadd.f32 %v974_v4, %v973_v58  ;;  %v1752_v22 = vrot.slane %v1751_v3, 2  ;;  %v1946_v59 = vadd.f32 %v1945_v25, %v1944_v24  ;;  %v2140_v55 = vrot.slane %v2139_v63, 4  ;;  %v179_v58 = vld [vmem:[%s8493_s0 + $0x508] sm:$0xff]  ;;  %v329_v17 = vld [vmem:[%s8493_s0 + $0x9b8] sm:$0x1] }
 0x158   :  { %v1364_v15 = vrot.slane %v1363_v60, 1  ;;  %v1558_v62 = vadd.f32 %v1557_v5, %v1556_v61  ;;  %v2333_v20 = vsel %vm863_vm0, %v851_v50, 0.0  ;;  %v1170_v21 = vadd.f32 %v1169_v11, %v1168_v16  ;;  %v359_v50 = vld [vmem:[%s8493_s0 + $0xaa8] sm:$0xff]  ;;  %v104_v5 = vld [vmem:[%s8493_s0 + $0x2b0] sm:$0xff] }
 0x159   :  { %v1753_v8 = vadd.f32 %v1752_v22, %v1751_v3  ;;  %v1947_v41 = vrot.slane %v1946_v59, 2  ;;  %v2334_v6 = vadd.f32 %v2333_v20, %v2332_v43  ;;  %v2141_v54 = vadd.f32 %v2140_v55, %v2139_v63  ;;  %v194_v63 = vld [vmem:[%s8493_s0 + $0x580] sm:$0xff]  ;;  %v269_v43 = vld [vmem:[%s8493_s0 + $0x7d8] sm:$0xff] }
 0x15a   :  { %v1365_v49 = vadd.f32 %v1364_v15, %v1363_v60  ;;  %v1559_v40 = vrot.slane %v1558_v62, 1  ;;  %v2428_v39 = vmul.f32 0.020408163, %v975_v46  ;;  %v2443_v30 = vmul.f32 0.020408163, %v1170_v21  ;;  %v374_v46 = vld [vmem:[%s8493_s0 + $0xb20] sm:$0xff] }
 0x15b   :  { %v1754_v23 = vrot.slane %v1753_v8, 1  ;;  %v1948_v32 = vadd.f32 %v1947_v41, %v1946_v59  ;;  %v2335_v29 = vrot.slane %v2334_v6, 4  ;;  %v2142_v9 = vrot.slane %v2141_v54, 2  ;;  %v434_v59 = vld [vmem:[%s8493_s0 + $0xd00] sm:$0x1]  ;;  %v449_v15 = vld [vmem:[%s8493_s0 + $0xd78] sm:$0xff] }
 0x15c   :  { %v1560_v37 = vadd.f32 %v1559_v40, %v1558_v62  ;;  %v2458_v47 = vmul.f32 0.020408163, %v1365_v49  ;;  %v4128_v38 = vpack.c.bf16 %v3011_v33, %v3010_v2  ;;  %v2723_v12 = vsel %vm2660_vm1, %v2443_v30, %v2428_v39  ;;  %v464_v62 = vld [vmem:[%s8493_s0 + $0xdf0] sm:$0xff]  ;;  %v299_v33 = vld [vmem:[%s8493_s0 + $0x8c8] sm:$0xff]  ;;  %v389_v39 = vld [vmem:[%s8493_s0 + $0xb98] sm:$0xff] }
 0x15d   :  { %v1755_v18 = vadd.f32 %v1754_v23, %v1753_v8  ;;  %v1949_v27 = vrot.slane %v1948_v32, 1  ;;  %v2336_v56 = vadd.f32 %v2335_v29, %v2334_v6  ;;  %v2143_v51 = vadd.f32 %v2142_v9, %v2141_v54  ;;  %v209_v6 = vld [vmem:[%s8493_s0 + $0x5f8] sm:$0xff]  ;;  %v284_v2 = vld [vmem:[%s8493_s0 + $0x850] sm:$0xff]  ;;  %v479_v23 = vld [vmem:[%s8493_s0 + $0xe68] sm:$0xff] }
 0x15e   :  { %v2473_v44 = vmul.f32 0.020408163, %v1560_v37  ;;  %v2724_v26 = vsel %vm2662_vm2, %v2458_v47, %v2723_v12  ;;  %4129 = vmatprep.subr.bf16.mxu0 %v4128_v38  ;;  %v1002_v45 = vadd.f32 %v44_v34, %v29_v57  ;;  %v1007_v24 = vsel %vm863_vm0, %v119_v0, 0.0  ;;  %v314_v37 = vld [vmem:[%s8493_s0 + $0x940] sm:$0xff]  ;;  %v569_v47 = vld [vmem:[%s8493_s0 + $0x1138] sm:$0xff] }
 0x15f   :  { %v1950_v10 = vadd.f32 %v1949_v27, %v1948_v32  ;;  %v2337_v1 = vrot.slane %v2336_v56, 2  ;;  %v2488_v7 = vmul.f32 0.020408163, %v1755_v18  ;;  %v2144_v48 = vrot.slane %v2143_v51, 1  ;;  %v539_v32 = vld [vmem:[%s8493_s0 + $0x1048] sm:$0x1] }
 0x160   :  { %v2725_v61 = vsel %vm2664_vm3, %v2473_v44, %v2724_v26  ;;  %v1003_v4 = vadd.f32 %v1002_v45, %v59_v52  ;;  %v1197_v16 = vadd.f32 %v149_v36, %v134_v53  ;;  %v1202_v11 = vsel %vm863_vm0, %v224_v13, 0.0  ;;  %v554_v9 = vld [vmem:[%s8493_s0 + $0x10c0] sm:$0xff]  ;;  %v644_v52 = vld [vmem:[%s8493_s0 + $0x1390] sm:$0x1]  ;;  %v419_v26 = vld [vmem:[%s8493_s0 + $0xc88] sm:$0xff] }
 0x161   :  { %v2338_v3 = vadd.f32 %v2337_v1, %v2336_v56  ;;  %v2503_v25 = vmul.f32 0.020408163, %v1950_v10  ;;  %v2726_v60 = vsel %vm2666_vm4, %v2488_v7, %v2725_v61  ;;  %v2145_v22 = vadd.f32 %v2144_v48, %v2143_v51  ;;  %v404_v56 = vld [vmem:[%s8493_s0 + $0xc10] sm:$0xff]  ;;  %v494_v12 = vld [vmem:[%s8493_s0 + $0xee0] sm:$0xff]  ;;  %v659_v1 = vld [vmem:[%s8493_s0 + $0x1408] sm:$0xff] }
 0x162   :  { %v1004_v55 = vadd.f32 %v1003_v4, %v74_v42  ;;  %v1198_v20 = vadd.f32 %v1197_v16, %v164_v19  ;;  %v1392_v21 = vadd.f32 %v254_v31, %v239_v28  ;;  %v1397_v49 = vsel %vm863_vm0, %v329_v17, 0.0  ;;  %v509_v42 = vld [vmem:[%s8493_s0 + $0xf58] sm:$0xff]  ;;  %v584_v19 = vld [vmem:[%s8493_s0 + $0x11b0] sm:$0xff]  ;;  %v674_v7 = vld [vmem:[%s8493_s0 + $0x1480] sm:$0xff] }
 0x163   :  { %v2339_v8 = vrot.slane %v2338_v3, 1  ;;  %v2727_v41 = vsel %vm2668_vm5, %v2503_v25, %v2726_v60  ;;  %v1587_v40 = vadd.f32 %v359_v50, %v344_v14  ;;  %v2518_v54 = vmul.f32 0.020408163, %v2145_v22  ;;  %v524_v17 = vld [vmem:[%s8493_s0 + $0xfd0] sm:$0xff]  ;;  %v599_v14 = vld [vmem:[%s8493_s0 + $0x1228] sm:$0xff] }
 0x164   :  { %v1005_v29 = vadd.f32 %v1004_v55, %v89_v35  ;;  %v1199_v30 = vadd.f32 %v1198_v20, %v179_v58  ;;  %v1393_v57 = vadd.f32 %v1392_v21, %v269_v43  ;;  %v1592_v0 = vsel %vm863_vm0, %v434_v59, 0.0  ;;  %v749_v35 = vld [vmem:[%s8493_s0 + $0x16d8] sm:$0x1]  ;;  %v779_v25 = vld [vmem:[%s8493_s0 + $0x17c8] sm:$0xff]  ;;  %v704_v55 = vld [vmem:[%s8493_s0 + $0x1570] sm:$0xff] }
 0x165   :  { %v2340_v34 = vadd.f32 %v2339_v8, %v2338_v3  ;;  %v1588_v38 = vadd.f32 %v1587_v40, %v374_v46  ;;  %v1782_v18 = vadd.f32 %v464_v62, %v449_v15  ;;  %v2728_v27 = vsel %vm2670_vm6, %v2518_v54, %v2727_v41  ;;  %v764_v3 = vld [vmem:[%s8493_s0 + $0x1750] sm:$0xff]  ;;  %v614_v46 = vld [vmem:[%s8493_s0 + $0x12a0] sm:$0xff] }
 0x166   :  { %v1006_v53 = vadd.f32 %v1005_v29, %v104_v5  ;;  %v1200_v36 = vadd.f32 %v1199_v30, %v194_v63  ;;  %v1394_v51 = vadd.f32 %v1393_v57, %v284_v2  ;;  %v1787_v10 = vsel %vm863_vm0, %v539_v32, 0.0  ;;  %v794_v20 = vld [vmem:[%s8493_s0 + $0x1840] sm:$0xff] }
 0x167   :  { %v2533_v44 = vmul.f32 0.020408163, %v2340_v34  ;;  %v1589_v13 = vadd.f32 %v1588_v38, %v389_v39  ;;  %v1783_v45 = vadd.f32 %v1782_v18, %v479_v23  ;;  %v1977_v48 = vadd.f32 %v569_v47, %v554_v9  ;;  %v719_v39 = vld [vmem:[%s8493_s0 + $0x15e8] sm:$0xff]  ;;  %v809_v23 = vld [vmem:[%s8493_s0 + $0x18b8] sm:$0xff]  ;;  %v734_v47 = vld [vmem:[%s8493_s0 + $0x1660] sm:$0xff] }
 0x168   :  { %v1008_v58 = vadd.f32 %v1007_v24, %v1006_v53  ;;  %v1201_v28 = vadd.f32 %v1200_v36, %v209_v6  ;;  %v1395_v31 = vadd.f32 %v1394_v51, %v299_v33  ;;  %v1982_v16 = vsel %vm863_vm0, %v644_v52, 0.0  ;;  %v689_v24 = vld [vmem:[%s8493_s0 + $0x14f8] sm:$0xff]  ;;  %v824_v38 = vld [vmem:[%s8493_s0 + $0x1930] sm:$0xff]  ;;  %v839_v51 = vld [vmem:[%s8493_s0 + $0x19a8] sm:$0xff] }
 0x169   :  { %v2729_v61 = vsel %vm2672_vm7, %v2533_v44, %v2728_v27  ;;  %v1590_v50 = vadd.f32 %v1589_v13, %v404_v56  ;;  %v1784_v4 = vadd.f32 %v1783_v45, %v494_v12  ;;  %v1978_v43 = vadd.f32 %v1977_v48, %v584_v19  ;;  %v629_v6 = vld [vmem:[%s8493_s0 + $0x1318] sm:$0xff]  ;;  %v854_v13 = vld [vmem:[%s8493_s0 + $0x1a20] sm:$0x1] }
 0x16a   :  { %2795 = vst [vmem:[#allocation2 + $0x40] sm:$0xff] %v2729_v61  ;;  %3394 = vmatmul.mubr.f32.vlgmr.msra.gmra.mrb[4].mxu0 %v2729_v61  ;;  %v1009_v60 = vrot.slane %v1008_v58, 4  ;;  %v1203_v5 = vadd.f32 %v1202_v11, %v1201_v28  ;;  %v1396_v63 = vadd.f32 %v1395_v31, %v314_v37  ;;  %v2172_v15 = vadd.f32 %v674_v7, %v659_v1 }
 0x16b   :  { %v1591_v22 = vadd.f32 %v1590_v50, %v419_v26  ;;  %v1785_v59 = vadd.f32 %v1784_v4, %v509_v42  ;;  %v2177_v62 = vsel %vm863_vm0, %v749_v35, 0.0  ;;  %v1979_v41 = vadd.f32 %v1978_v43, %v599_v14  ;;  %v2995_v43 = vld [vmem:[%s8494_s1 + $0x608] sm:$0xff] }
 0x16c   :  { %v1010_v11 = vadd.f32 %v1009_v60, %v1008_v58  ;;  %v1204_v21 = vrot.slane %v1203_v5, 4  ;;  %v1398_v8 = vadd.f32 %v1397_v49, %v1396_v63  ;;  %v2173_v40 = vadd.f32 %v2172_v15, %v689_v24  ;;  %v2994_v63 = vld [vmem:[%s8494_s1 + $0x600] sm:$0xff] }
 0x16d   :  { %v1593_v2 = vadd.f32 %v1592_v0, %v1591_v22  ;;  %v1786_v33 = vadd.f32 %v1785_v59, %v524_v17  ;;  %v2367_v54 = vadd.f32 %v779_v25, %v764_v3  ;;  %v1980_v30 = vadd.f32 %v1979_v41, %v614_v46  ;;  %v118_v41 = vld [vmem:[%s8493_s0 + $0x320] sm:$0x1] }
 0x16e   :  { %v1011_v32 = vrot.slane %v1010_v11, 2  ;;  %v1205_v29 = vadd.f32 %v1204_v21, %v1203_v5  ;;  %v1399_v49 = vrot.slane %v1398_v8, 4  ;;  %v2174_v37 = vadd.f32 %v2173_v40, %v704_v55  ;;  %v28_v21 = vld [vmem:[%s8493_s0 + $0x50] sm:$0xff] }
 0x16f   :  { %v1594_v57 = vrot.slane %v1593_v2, 4  ;;  %v1788_v34 = vadd.f32 %v1787_v10, %v1786_v33  ;;  %v2368_v9 = vadd.f32 %v2367_v54, %v794_v20  ;;  %v1981_v56 = vadd.f32 %v1980_v30, %v629_v6  ;;  %v58_v54 = vld [vmem:[%s8493_s0 + $0x140] sm:$0xff]  ;;  %v148_v30 = vld [vmem:[%s8493_s0 + $0x410] sm:$0xff] }
 0x170   :  { %v1012_v0 = vadd.f32 %v1011_v32, %v1010_v11  ;;  %v1206_v18 = vrot.slane %v1205_v29, 2  ;;  %v1400_v27 = vadd.f32 %v1399_v49, %v1398_v8  ;;  %v2175_v53 = vadd.f32 %v2174_v37, %v719_v39  ;;  %v43_v8 = vld [vmem:[%s8493_s0 + $0xc8] sm:$0xff]  ;;  %v133_v39 = vld [vmem:[%s8493_s0 + $0x398] sm:$0xff] }
 0x171   :  { %v1595_v12 = vadd.f32 %v1594_v57, %v1593_v2  ;;  %v1789_v52 = vrot.slane %v1788_v34, 4  ;;  %v2369_v36 = vadd.f32 %v2368_v9, %v809_v23  ;;  %v1983_v19 = vadd.f32 %v1982_v16, %v1981_v56  ;;  %v223_v57 = vld [vmem:[%s8493_s0 + $0x668] sm:$0x1]  ;;  %v73_v9 = vld [vmem:[%s8493_s0 + $0x1b8] sm:$0xff] }
 0x172   :  { %v1013_v44 = vrot.slane %v1012_v0, 1  ;;  %v1207_v26 = vadd.f32 %v1206_v18, %v1205_v29  ;;  %v1401_v42 = vrot.slane %v1400_v27, 2  ;;  %v2176_v1 = vadd.f32 %v2175_v53, %v734_v47  ;;  %v238_v47 = vld [vmem:[%s8493_s0 + $0x6e0] sm:$0xff]  ;;  %v88_v53 = vld [vmem:[%s8493_s0 + $0x230] sm:$0xff] }
 0x173   :  { %v1596_v45 = vrot.slane %v1595_v12, 2  ;;  %v1790_v10 = vadd.f32 %v1789_v52, %v1788_v34  ;;  %v2370_v7 = vadd.f32 %v2369_v36, %v824_v38  ;;  %v1984_v31 = vrot.slane %v1983_v19, 4  ;;  %v253_v38 = vld [vmem:[%s8493_s0 + $0x758] sm:$0xff]  ;;  %v163_v36 = vld [vmem:[%s8493_s0 + $0x488] sm:$0xff] }
 0x174   :  { %v1014_v35 = vadd.f32 %v1013_v44, %v1012_v0  ;;  %v1208_v58 = vrot.slane %v1207_v26, 1  ;;  %v1402_v28 = vadd.f32 %v1401_v42, %v1400_v27  ;;  %v2178_v17 = vadd.f32 %v2177_v62, %v2176_v1  ;;  %v343_v42 = vld [vmem:[%s8493_s0 + $0xa28] sm:$0xff] }
 0x175   :  { %v1597_v48 = vadd.f32 %v1596_v45, %v1595_v12  ;;  %v1791_v61 = vrot.slane %v1790_v10, 2  ;;  %v2371_v14 = vadd.f32 %v2370_v7, %v839_v51  ;;  %v1985_v24 = vadd.f32 %v1984_v31, %v1983_v19  ;;  %v328_v51 = vld [vmem:[%s8493_s0 + $0x9b0] sm:$0x1]  ;;  %v358_v19 = vld [vmem:[%s8493_s0 + $0xaa0] sm:$0xff]  ;;  %v433_v31 = vld [vmem:[%s8493_s0 + $0xcf8] sm:$0x1] }
 0x176   :  { %v1209_v50 = vadd.f32 %v1208_v58, %v1207_v26  ;;  %v1403_v4 = vrot.slane %v1402_v28, 1  ;;  %v2372_v16 = vsel %vm863_vm0, %v854_v13, 0.0  ;;  %v2179_v60 = vrot.slane %v2178_v17, 4  ;;  %v268_v26 = vld [vmem:[%s8493_s0 + $0x7d0] sm:$0xff]  ;;  %v103_v58 = vld [vmem:[%s8493_s0 + $0x2a8] sm:$0xff] }
 0x177   :  { %v1598_v3 = vrot.slane %v1597_v48, 1  ;;  %v1792_v25 = vadd.f32 %v1791_v61, %v1790_v10  ;;  %v2373_v5 = vadd.f32 %v2372_v16, %v2371_v14  ;;  %v1986_v22 = vrot.slane %v1985_v24, 2 }
 0x178   :  { %v1404_v46 = vadd.f32 %v1403_v4, %v1402_v28  ;;  %v2431_v59 = vmul.f32 0.020408163, %v1014_v35  ;;  %v2446_v15 = vmul.f32 0.020408163, %v1209_v50  ;;  %v2180_v20 = vadd.f32 %v2179_v60, %v2178_v17  ;;  %v178_v28 = vld [vmem:[%s8493_s0 + $0x500] sm:$0xff] }
 0x179   :  { %v1599_v62 = vadd.f32 %v1598_v3, %v1597_v48  ;;  %v1793_v55 = vrot.slane %v1792_v25, 1  ;;  %v2374_v11 = vrot.slane %v2373_v5, 4  ;;  %v1987_v6 = vadd.f32 %v1986_v22, %v1985_v24 }
 0x17a   :  { %v2461_v2 = vmul.f32 0.020408163, %v1404_v46  ;;  %v2744_v33 = vsel %vm2660_vm1, %v2446_v15, %v2431_v59  ;;  %v4130_v40 = vpack.c.bf16 %v2995_v43, %v2994_v63  ;;  %v2181_v32 = vrot.slane %v2180_v20, 2 }
 0x17b   :  { %v1794_v23 = vadd.f32 %v1793_v55, %v1792_v25  ;;  %v2375_v29 = vadd.f32 %v2374_v11, %v2373_v5  ;;  %v2476_v49 = vmul.f32 0.020408163, %v1599_v62  ;;  %v1988_v34 = vrot.slane %v1987_v6, 1 }
 0x17c   :  { %v2745_v37 = vsel %vm2662_vm2, %v2461_v2, %v2744_v33  ;;  %4131 = vmatpush3.bf16.msra.mxu0 %v4130_v40  ;;  %v989_v0 = vadd.f32 %v43_v8, %v28_v21  ;;  %v7404_v18 = vsel %vm863_vm0, %v118_v41, 0.0  ;;  %v2182_v27 = vadd.f32 %v2181_v32, %v2180_v20 }
 0x17d   :  { %v2376_v56 = vrot.slane %v2375_v29, 2  ;;  %v2491_v12 = vmul.f32 0.020408163, %v1794_v23  ;;  %v2746_v52 = vsel %vm2664_vm3, %v2476_v49, %v2745_v37  ;;  %v1989_v44 = vadd.f32 %v1988_v34, %v1987_v6 }
 0x17e   :  { %v990_v13 = vadd.f32 %v989_v0, %v58_v54  ;;  %v1184_v45 = vadd.f32 %v148_v30, %v133_v39  ;;  %v7426_v10 = vsel %vm863_vm0, %v223_v57, 0.0  ;;  %v2183_v1 = vrot.slane %v2182_v27, 1 }
 0x17f   :  { %v2377_v7 = vadd.f32 %v2376_v56, %v2375_v29  ;;  %v2747_v35 = vsel %vm2666_vm4, %v2491_v12, %v2746_v52  ;;  %v1379_v48 = vadd.f32 %v253_v38, %v238_v47 }
 0x180   :  { %11 = vsyncpa [#allocation5], 0  ;;  %v2506_v61 = vmul.f32 0.020408163, %v1989_v44  ;;  %v193_v17 = vld [vmem:[%s8493_s0 + $0x578] sm:$0xff]  ;;  %v283_v14 = vld [vmem:[%s8493_s0 + $0x848] sm:$0xff]  ;;  %v991_v4 = vadd.f32 %v990_v13, %v73_v9  ;;  %v1185_v24 = vadd.f32 %v1184_v45, %v163_v36  ;;  %v2184_v3 = vadd.f32 %v2183_v1, %v2182_v27 }
 0x181   :  { %v373_v50 = vld [vmem:[%s8493_s0 + $0xb18] sm:$0xff]  ;;  %v7448_v16 = vsel %vm863_vm0, %v328_v51, 0.0  ;;  %v2378_v25 = vrot.slane %v2377_v7, 1  ;;  %v448_v60 = vld [vmem:[%s8493_s0 + $0xd70] sm:$0xff]  ;;  %v463_v5 = vld [vmem:[%s8493_s0 + $0xde8] sm:$0xff]  ;;  %v1380_v43 = vadd.f32 %v1379_v48, %v268_v26  ;;  %v1574_v46 = vadd.f32 %v358_v19, %v343_v42  ;;  %v7511_v44 = vpop.f32.mrb[0].mxu0 }
 0x182   :  { %v538_v63 = vld [vmem:[%s8493_s0 + $0x1040] sm:$0x1]  ;;  %v2748_v22 = vsel %vm2668_vm5, %v2506_v61, %v2747_v35  ;;  %v208_v59 = vld [vmem:[%s8493_s0 + $0x5f0] sm:$0xff]  ;;  %v992_v55 = vadd.f32 %v991_v4, %v88_v53  ;;  %v1186_v20 = vadd.f32 %v1185_v24, %v178_v28  ;;  %v1579_v11 = vsel %vm863_vm0, %v433_v31, 0.0  ;;  %v553_v6 = vld [vmem:[%s8493_s0 + $0x10b8] sm:$0xff]  ;;  %v7513_v26 = vpop.f32.mrb[0].mxu1 }
 0x183   :  { %v298_v15 = vld [vmem:[%s8493_s0 + $0x8c0] sm:$0xff]  ;;  %v388_v62 = vld [vmem:[%s8493_s0 + $0xb90] sm:$0xff]  ;;  %v2379_v21 = vadd.f32 %v2378_v25, %v2377_v7  ;;  %v2521_v8 = vmul.f32 0.020408163, %v2184_v3  ;;  %v1381_v33 = vadd.f32 %v1380_v43, %v283_v14  ;;  %v1575_v40 = vadd.f32 %v1574_v46, %v373_v50  ;;  %v313_v54 = vld [vmem:[%s8493_s0 + $0x938] sm:$0xff]  ;;  %8614 = vst [vmem:[#allocation20_spill] sm:$0xff] %v7513_v26 }
 0x184   :  { %v478_v41 = vld [vmem:[%s8493_s0 + $0xe60] sm:$0xff]  ;;  %v568_v2 = vld [vmem:[%s8493_s0 + $0x1130] sm:$0xff]  ;;  %v403_v39 = vld [vmem:[%s8493_s0 + $0xc08] sm:$0xff]  ;;  %v993_v32 = vadd.f32 %v992_v55, %v103_v58  ;;  %v1187_v29 = vadd.f32 %v1186_v20, %v193_v17  ;;  %v1769_v49 = vadd.f32 %v463_v5, %v448_v60  ;;  %v7489_v30 = vsel %vm863_vm0, %v538_v63, 0.0  ;;  %v7523_v7 = vpop.f32.mrb[1].mxu0  ;;  %v7525_v35 = vpop.f32.mrb[1].mxu1 }
 0x185   :  { %v643_v23 = vld [vmem:[%s8493_s0 + $0x1388] sm:$0x1]  ;;  %v2536_v57 = vmul.f32 0.020408163, %v2379_v21  ;;  %v2749_v34 = vsel %vm2670_vm6, %v2521_v8, %v2748_v22  ;;  %v418_v37 = vld [vmem:[%s8493_s0 + $0xc80] sm:$0xff]  ;;  %v493_v9 = vld [vmem:[%s8493_s0 + $0xed8] sm:$0xff]  ;;  %v1382_v38 = vadd.f32 %v1381_v33, %v298_v15  ;;  %v1576_v0 = vadd.f32 %v1575_v40, %v388_v62 }
 0x186   :  { %v583_v47 = vld [vmem:[%s8493_s0 + $0x11a8] sm:$0xff]  ;;  %v658_v27 = vld [vmem:[%s8493_s0 + $0x1400] sm:$0xff]  ;;  %v673_v56 = vld [vmem:[%s8493_s0 + $0x1478] sm:$0xff]  ;;  %v995_v52 = vadd.f32 %v7404_v18, %v993_v32  ;;  %v1188_v53 = vadd.f32 %v1187_v29, %v208_v59  ;;  %v1770_v36 = vadd.f32 %v1769_v49, %v478_v41  ;;  %v1964_v51 = vadd.f32 %v568_v2, %v553_v6  ;;  %8615 = vst [vmem:[#allocation19_spill] sm:$0xff] %v7523_v7 }
 0x187   :  { %v748_v12 = vld [vmem:[%s8493_s0 + $0x16d0] sm:$0x1]  ;;  %v2750_v42 = vsel %vm2672_vm7, %v2536_v57, %v2749_v34  ;;  %v598_v13 = vld [vmem:[%s8493_s0 + $0x1220] sm:$0xff]  ;;  %v1383_v45 = vadd.f32 %v1382_v38, %v313_v54  ;;  %v1577_v1 = vadd.f32 %v1576_v0, %v403_v39  ;;  %v1969_v18 = vsel %vm863_vm0, %v643_v23, 0.0  ;;  %8616 = vst [vmem:[#allocation18_spill] sm:$0xff] %v7525_v35  ;;  %v763_v28 = vld [vmem:[%s8493_s0 + $0x1748] sm:$0xff] }
 0x188   :  { %v508_v19 = vld [vmem:[%s8493_s0 + $0xf50] sm:$0xff]  ;;  %2798 = vst [vmem:[#allocation2 + $0x58] sm:$0xff] %v2750_v42  ;;  %3463 = vmatprep.mubr.f32.mxu1 %v2750_v42  ;;  %v778_v31 = vld [vmem:[%s8493_s0 + $0x17c0] sm:$0xff]  ;;  %v996_v48 = vrot.slane %v995_v52, 4  ;;  %v1190_v61 = vadd.f32 %v7426_v10, %v1188_v53  ;;  %v1771_v17 = vadd.f32 %v1770_v36, %v493_v9  ;;  %v1965_v14 = vadd.f32 %v1964_v51, %v583_v47  ;;  %v523_v50 = vld [vmem:[%s8493_s0 + $0xfc8] sm:$0xff] }
 0x189   :  { %v688_v58 = vld [vmem:[%s8493_s0 + $0x14f0] sm:$0xff]  ;;  %v613_v4 = vld [vmem:[%s8493_s0 + $0x1298] sm:$0xff]  ;;  %v1385_v24 = vadd.f32 %v7448_v16, %v1383_v45  ;;  %v1578_v3 = vadd.f32 %v1577_v1, %v418_v37  ;;  %v2159_v25 = vadd.f32 %v673_v56, %v658_v27  ;;  %v2164_v60 = vsel %vm863_vm0, %v748_v12, 0.0  ;;  %v703_v10 = vld [vmem:[%s8493_s0 + $0x1568] sm:$0xff] }
 0x18a   :  { %v793_v5 = vld [vmem:[%s8493_s0 + $0x1838] sm:$0xff]  ;;  %v997_v63 = vadd.f32 %v996_v48, %v995_v52  ;;  %v1191_v43 = vrot.slane %v1190_v61, 4  ;;  %v1772_v46 = vadd.f32 %v1771_v17, %v508_v19  ;;  %v1966_v22 = vadd.f32 %v1965_v14, %v598_v13  ;;  %v628_v16 = vld [vmem:[%s8493_s0 + $0x1310] sm:$0xff]  ;;  %v718_v20 = vld [vmem:[%s8493_s0 + $0x15e0] sm:$0xff] }
 0x18b   :  { %v1386_v59 = vrot.slane %v1385_v24, 4  ;;  %v1580_v15 = vadd.f32 %v1579_v11, %v1578_v3  ;;  %v2160_v62 = vadd.f32 %v2159_v25, %v688_v58  ;;  %v2354_v55 = vadd.f32 %v778_v31, %v763_v28  ;;  %v808_v21 = vld [vmem:[%s8493_s0 + $0x18b0] sm:$0xff]  ;;  %v733_v11 = vld [vmem:[%s8493_s0 + $0x1658] sm:$0xff]  ;;  %v823_v23 = vld [vmem:[%s8493_s0 + $0x1928] sm:$0xff] }
 0x18c   :  { %v998_v8 = vrot.slane %v997_v63, 2  ;;  %v1192_v41 = vadd.f32 %v1191_v43, %v1190_v61  ;;  %v1773_v6 = vadd.f32 %v1772_v46, %v523_v50  ;;  %v1967_v2 = vadd.f32 %v1966_v22, %v613_v4  ;;  %v838_v38 = vld [vmem:[%s8493_s0 + $0x19a0] sm:$0xff]  ;;  %v853_v52 = vld [vmem:[%s8493_s0 + $0x1a18] sm:$0x1]  ;;  %v3012_v14 = vld [vmem:[%s8494_s1 + $0x690] sm:$0xff] }
 0x18d   :  { %v1387_v33 = vadd.f32 %v1386_v59, %v1385_v24  ;;  %v1581_v40 = vrot.slane %v1580_v15, 4  ;;  %v2161_v54 = vadd.f32 %v2160_v62, %v703_v10  ;;  %v2355_v39 = vadd.f32 %v2354_v55, %v793_v5  ;;  %v3013_v25 = vld [vmem:[%s8494_s1 + $0x698] sm:$0xff]  ;;  %v7589_v22 = vld [vmem:[%s8494_s1 + $0x700] sm:$0xff]  ;;  %v196_v35 = vld [vmem:[%s8493_s0 + $0x590] sm:$0xff] }
 0x18e   :  { %v999_v32 = vadd.f32 %v998_v8, %v997_v63  ;;  %v1193_v29 = vrot.slane %v1192_v41, 2  ;;  %v1775_v49 = vadd.f32 %v7489_v30, %v1773_v6  ;;  %v1968_v57 = vadd.f32 %v1967_v2, %v628_v16  ;;  %v2997_v10 = vld [vmem:[%s8494_s1 + $0x618] sm:$0xff]  ;;  %v7594_v16 = vld [vmem:[%s8494_s1 + $0x708] sm:$0xff]  ;;  %v7609_v8 = vld [vmem:[%s8494_s1 + $0x620] sm:$0xff] }
 0x18f   :  { %v1388_v34 = vrot.slane %v1387_v33, 2  ;;  %v1582_v37 = vadd.f32 %v1581_v40, %v1580_v15  ;;  %v2162_v9 = vadd.f32 %v2161_v54, %v718_v20  ;;  %v2356_v47 = vadd.f32 %v2355_v39, %v808_v21  ;;  %v7599_v20 = vld [vmem:[%s8494_s1 + $0x6a0] sm:$0xff]  ;;  %v7604_v21 = vld [vmem:[%s8494_s1 + $0x6a8] sm:$0xff]  ;;  %v7620_v54 = vld [vmem:[%s8494_s1 + $0x710] sm:$0xff] }
 0x190   :  { %v1000_v0 = vrot.slane %v999_v32, 1  ;;  %v1194_v27 = vadd.f32 %v1193_v29, %v1192_v41  ;;  %v1776_v56 = vrot.slane %v1775_v49, 4  ;;  %v1970_v12 = vadd.f32 %v1969_v18, %v1968_v57  ;;  %v7614_v41 = vld [vmem:[%s8494_s1 + $0x628] sm:$0xff]  ;;  %v7625_v39 = vld [vmem:[%s8494_s1 + $0x718] sm:$0xff] }
 0x191   :  { %v1389_v53 = vadd.f32 %v1388_v34, %v1387_v33  ;;  %v1583_v36 = vrot.slane %v1582_v37, 2  ;;  %v2163_v30 = vadd.f32 %v2162_v9, %v733_v11  ;;  %v2357_v51 = vadd.f32 %v2356_v47, %v823_v23  ;;  %v7630_v11 = vld [vmem:[%s8494_s1 + $0x6b0] sm:$0xff]  ;;  %v7635_v23 = vld [vmem:[%s8494_s1 + $0x6b8] sm:$0xff]  ;;  %v7651_v9 = vld [vmem:[%s8494_s1 + $0x720] sm:$0xff] }
 0x192   :  { %v1001_v42 = vadd.f32 %v1000_v0, %v999_v32  ;;  %v1195_v19 = vrot.slane %v1194_v27, 1  ;;  %v1777_v13 = vadd.f32 %v1776_v56, %v1775_v49  ;;  %v1971_v45 = vrot.slane %v1970_v12, 4  ;;  %v7641_v34 = vld [vmem:[%s8494_s1 + $0x630] sm:$0xff]  ;;  %v7656_v47 = vld [vmem:[%s8494_s1 + $0x728] sm:$0xff]  ;;  %v7661_v56 = vld [vmem:[%s8494_s1 + $0x6c0] sm:$0xff] }
 0x193   :  { %v1390_v1 = vrot.slane %v1389_v53, 1  ;;  %v1584_v58 = vadd.f32 %v1583_v36, %v1582_v37  ;;  %v2165_v28 = vadd.f32 %v2164_v60, %v2163_v30  ;;  %v2358_v31 = vadd.f32 %v2357_v51, %v838_v38  ;;  %v2996_v60 = vld [vmem:[%s8494_s1 + $0x610] sm:$0xff]  ;;  %v7646_v37 = vld [vmem:[%s8494_s1 + $0x638] sm:$0xff]  ;;  %v391_v26 = vld [vmem:[%s8493_s0 + $0xba8] sm:$0xff] }
 0x194   :  { %v1196_v48 = vadd.f32 %v1195_v19, %v1194_v27  ;;  %v1778_v61 = vrot.slane %v1777_v13, 2  ;;  %v1972_v17 = vadd.f32 %v1971_v45, %v1970_v12  ;;  %v2359_v18 = vsel %vm863_vm0, %v853_v52, 0.0  ;;  %v7666_v12 = vld [vmem:[%s8494_s1 + $0x6c8] sm:$0xff]  ;;  %v7671_v52 = vld [vmem:[%s8494_s1 + $0x640] sm:$0xff]  ;;  %v7690_v45 = vld [vmem:[%s8494_s1 + $0x738] sm:$0xff] }
 0x195   :  { %v1391_v50 = vadd.f32 %v1390_v1, %v1389_v53  ;;  %v1585_v4 = vrot.slane %v1584_v58, 1  ;;  %v2166_v24 = vrot.slane %v2165_v28, 4  ;;  %v2360_v3 = vadd.f32 %v2359_v18, %v2358_v31  ;;  %v7676_v53 = vld [vmem:[%s8494_s1 + $0x648] sm:$0xff]  ;;  %v7695_v1 = vld [vmem:[%s8494_s1 + $0x6d0] sm:$0xff]  ;;  %v7710_v31 = vld [vmem:[%s8494_s1 + $0x658] sm:$0xff] }
 0x196   :  { %v1779_v5 = vadd.f32 %v1778_v61, %v1777_v13  ;;  %v1973_v63 = vrot.slane %v1972_v17, 2  ;;  %v2430_v43 = vmul.f32 0.020408163, %v1001_v42  ;;  %v2445_v46 = vmul.f32 0.020408163, %v1196_v48  ;;  %v7685_v13 = vld [vmem:[%s8494_s1 + $0x730] sm:$0xff] }
 0x197   :  { %v1586_v59 = vadd.f32 %v1585_v4, %v1584_v58  ;;  %v2167_v15 = vadd.f32 %v2166_v24, %v2165_v28  ;;  %v2361_v62 = vrot.slane %v2360_v3, 4  ;;  %v2460_v55 = vmul.f32 0.020408163, %v1391_v50  ;;  %v7700_v58 = vld [vmem:[%s8494_s1 + $0x6d8] sm:$0xff]  ;;  %v7705_v28 = vld [vmem:[%s8494_s1 + $0x650] sm:$0xff]  ;;  %v7724_v50 = vld [vmem:[%s8494_s1 + $0x748] sm:$0xff] }
 0x198   :  { %v1780_v6 = vrot.slane %v1779_v5, 1  ;;  %v1974_v2 = vadd.f32 %v1973_v63, %v1972_v17  ;;  %v2737_v33 = vsel %vm2660_vm1, %v2445_v46, %v2430_v43  ;;  %v4132_v40 = vpack.c.bf16 %v3013_v25, %v3012_v14  ;;  %v7719_v14 = vld [vmem:[%s8494_s1 + $0x740] sm:$0xff]  ;;  %v7734_v24 = vld [vmem:[%s8494_s1 + $0x6e8] sm:$0xff]  ;;  %v7753_v43 = vld [vmem:[%s8494_s1 + $0x750] sm:$0xff] }
 0x199   :  { %v2168_v32 = vrot.slane %v2167_v15, 2  ;;  %v2362_v29 = vadd.f32 %v2361_v62, %v2360_v3  ;;  %v2475_v49 = vmul.f32 0.020408163, %v1586_v59  ;;  %v2738_v57 = vsel %vm2662_vm2, %v2460_v55, %v2737_v33  ;;  %v7729_v4 = vld [vmem:[%s8494_s1 + $0x6e0] sm:$0xff]  ;;  %v7748_v63 = vld [vmem:[%s8494_s1 + $0x668] sm:$0xff]  ;;  %v7758_v46 = vld [vmem:[%s8494_s1 + $0x758] sm:$0xff] }
 0x19a   :  { %v1781_v38 = vadd.f32 %v1780_v6, %v1779_v5  ;;  %v1975_v0 = vrot.slane %v1974_v2, 1  ;;  %4133 = vmatprep.subr.bf16.mxu0 %v4132_v40  ;;  %v4134_v27 = vpack.c.bf16 %v2997_v10, %v2996_v60  ;;  %v8522_v42 = vmov 0.0|0.0   ;;  %v7743_v5 = vld [vmem:[%s8494_s1 + $0x660] sm:$0xff]  ;;  %v7763_v59 = vld [vmem:[%s8494_s1 + $0x6f0] sm:$0xff]  ;;  %v7778_v55 = vld [vmem:[%s8494_s1 + $0x678] sm:$0xff] }
 0x19b   :  { %v2169_v36 = vadd.f32 %v2168_v32, %v2167_v15  ;;  %v2363_v30 = vrot.slane %v2362_v29, 2  ;;  %v2739_v51 = vsel %vm2664_vm3, %v2475_v49, %v2738_v57  ;;  %4160 = vmatprep.subr.bf16.mxu1 %v8522_v42  ;;  %v4136_v17 = vpack.c.bf16 %v7604_v21, %v7599_v20  ;;  %v7768_v15 = vld [vmem:[%s8494_s1 + $0x6f8] sm:$0xff]  ;;  %v7773_v62 = vld [vmem:[%s8494_s1 + $0x670] sm:$0xff]  ;;  %v7788_v6 = vld [vmem:[%s8494_s1 + $0x760] sm:$0xff] }
 0x19c   :  { %v1976_v48 = vadd.f32 %v1975_v0, %v1974_v2  ;;  %v2490_v61 = vmul.f32 0.020408163, %v1781_v38  ;;  %4135 = vmatpush3.bf16.msra.mxu0 %v4134_v27  ;;  %v4138_v18 = vpack.c.bf16 %v7614_v41, %v7609_v8  ;;  %v4140_v10 = vpack.c.bf16 %v7635_v23, %v7630_v11  ;;  %v7793_v2 = vld [vmem:[%s8494_s1 + $0x768] sm:$0xff]  ;;  %v121_v49 = vld [vmem:[%s8493_s0 + $0x338] sm:$0x1]  ;;  %v136_v57 = vld [vmem:[%s8493_s0 + $0x3b0] sm:$0xff] }
 0x19d   :  { %v2170_v3 = vrot.slane %v2169_v36, 1  ;;  %v2364_v25 = vadd.f32 %v2363_v30, %v2362_v29  ;;  %4137 = vmatprep.subr.bf16.mxu0 %v4136_v17  ;;  %v4142_v8 = vpack.c.bf16 %v7646_v37, %v7641_v34  ;;  %v31_v33 = vld [vmem:[%s8493_s0 + $0x68] sm:$0xff]  ;;  %v4144_v23 = vpack.c.bf16 %v7666_v12, %v7661_v56  ;;  %v46_v29 = vld [vmem:[%s8493_s0 + $0xe0] sm:$0xff]  ;;  %v61_v27 = vld [vmem:[%s8493_s0 + $0x158] sm:$0xff] }
 0x19e   :  { %v2505_v20 = vmul.f32 0.020408163, %v1976_v48  ;;  %v2740_v21 = vsel %vm2666_vm4, %v2490_v61, %v2739_v51  ;;  %v151_v56 = vld [vmem:[%s8493_s0 + $0x428] sm:$0xff]  ;;  %v226_v12 = vld [vmem:[%s8493_s0 + $0x680] sm:$0x1]  ;;  %v361_v37 = vld [vmem:[%s8493_s0 + $0xab8] sm:$0xff] }
 0x19f   :  { %v2171_v40 = vadd.f32 %v2170_v3, %v2169_v36  ;;  %v2365_v11 = vrot.slane %v2364_v25, 1  ;;  %v241_v36 = vld [vmem:[%s8493_s0 + $0x6f8] sm:$0xff]  ;;  %v166_v17 = vld [vmem:[%s8493_s0 + $0x4a0] sm:$0xff]  ;;  %v271_v3 = vld [vmem:[%s8493_s0 + $0x7e8] sm:$0xff]  ;;  %v7897_v42 = vsel %vm863_vm0, %v121_v49, 0.0  ;;  %vm4238_vm8 = vmmov 0  }
 0x1a0   :  { %v2741_v34 = vsel %vm2668_vm5, %v2505_v20, %v2740_v21  ;;  %4139 = vmatpush3.bf16.msra.mxu0 %v4138_v18  ;;  %v256_v18 = vld [vmem:[%s8493_s0 + $0x770] sm:$0xff]  ;;  %v346_v48 = vld [vmem:[%s8493_s0 + $0xa40] sm:$0xff]  ;;  %v181_v41 = vld [vmem:[%s8493_s0 + $0x518] sm:$0xff] }
 0x1a1   :  { %v2366_v30 = vadd.f32 %v2365_v11, %v2364_v25  ;;  %v2520_v51 = vmul.f32 0.020408163, %v2171_v40  ;;  %4141 = vmatprep.subr.bf16.mxu0 %v4140_v10  ;;  %v331_v25 = vld [vmem:[%s8493_s0 + $0x9c8] sm:$0x1]  ;;  %v76_v11 = vld [vmem:[%s8493_s0 + $0x1d0] sm:$0xff]  ;;  %v286_v61 = vld [vmem:[%s8493_s0 + $0x860] sm:$0xff] }
 0x1a2   :  { %v376_v20 = vld [vmem:[%s8493_s0 + $0xb30] sm:$0xff]  ;;  %v91_v40 = vld [vmem:[%s8493_s0 + $0x248] sm:$0xff]  ;;  %v541_v60 = vld [vmem:[%s8493_s0 + $0x1058] sm:$0x1] }
 0x1a3   :  { %v2535_v21 = vmul.f32 0.020408163, %v2366_v30  ;;  %v2742_v10 = vsel %vm2670_vm6, %v2520_v51, %v2741_v34  ;;  %v436_v0 = vld [vmem:[%s8493_s0 + $0xd10] sm:$0x1]  ;;  %v451_v30 = vld [vmem:[%s8493_s0 + $0xd88] sm:$0xff]  ;;  %v466_v34 = vld [vmem:[%s8493_s0 + $0xe00] sm:$0xff]  ;;  %v1028_v51 = vadd.f32 %v46_v29, %v31_v33  ;;  %v1418_v29 = vadd.f32 %v256_v18, %v241_v36 }
 0x1a4   :  { %4143 = vmatpush3.bf16.msra.mxu0 %v4142_v8  ;;  %v556_v38 = vld [vmem:[%s8493_s0 + $0x10d0] sm:$0xff]  ;;  %v571_v32 = vld [vmem:[%s8493_s0 + $0x1148] sm:$0xff]  ;;  %v1223_v8 = vadd.f32 %v151_v56, %v136_v57  ;;  %v7900_v33 = vsel %vm863_vm0, %v226_v12, 0.0  ;;  %v481_v49 = vld [vmem:[%s8493_s0 + $0xe78] sm:$0xff]  ;;  %v7916_v12 = vsel %vm863_vm0, %v331_v25, 0.0 }
 0x1a5   :  { %v2743_v19 = vsel %vm2672_vm7, %v2535_v21, %v2742_v10  ;;  %4145 = vmatprep.subr.bf16.mxu0 %v4144_v23  ;;  %v646_v57 = vld [vmem:[%s8493_s0 + $0x13a0] sm:$0x1]  ;;  %v1029_v56 = vadd.f32 %v1028_v51, %v61_v27  ;;  %v1613_v23 = vadd.f32 %v361_v37, %v346_v48  ;;  %v661_v10 = vld [vmem:[%s8493_s0 + $0x1418] sm:$0xff]  ;;  %v676_v27 = vld [vmem:[%s8493_s0 + $0x1490] sm:$0xff]  ;;  %v1419_v37 = vadd.f32 %v1418_v29, %v271_v3 }
 0x1a6   :  { %2797 = vst [vmem:[#allocation2 + $0x50] sm:$0xff] %v2743_v19  ;;  %3464 = vmatmul.mubr.f32.vlgmr.msra.gmra.mrb[4].mxu1 %v2743_v19  ;;  %v106_v36 = vld [vmem:[%s8493_s0 + $0x2c0] sm:$0xff]  ;;  %v1224_v25 = vadd.f32 %v1223_v8, %v166_v17  ;;  %v7931_v19 = vsel %vm863_vm0, %v436_v0, 0.0  ;;  %v1808_v48 = vadd.f32 %v466_v34, %v451_v30  ;;  %v8617_v21 = vpack.c.bf16 %v7594_v16, %v7589_v22  ;;  %v211_v51 = vld [vmem:[%s8493_s0 + $0x608] sm:$0xff]  ;;  %v301_v7 = vld [vmem:[%s8493_s0 + $0x8d8] sm:$0xff] }
 0x1a7   :  { %v586_v18 = vld [vmem:[%s8493_s0 + $0x11c0] sm:$0xff]  ;;  %v496_v17 = vld [vmem:[%s8493_s0 + $0xef0] sm:$0xff]  ;;  %v751_v0 = vld [vmem:[%s8493_s0 + $0x16e8] sm:$0x1]  ;;  %v1030_v3 = vadd.f32 %v1029_v56, %v76_v11  ;;  %v1614_v30 = vadd.f32 %v1613_v23, %v376_v20  ;;  %v7949_v22 = vsel %vm863_vm0, %v541_v60, 0.0  ;;  %v2003_v16 = vadd.f32 %v571_v32, %v556_v38 }
 0x1a8   :  { %4162 = vmatpush3.bf16.msra.mxu1 %v8617_v21  ;;  %v8618_v34 = vmov 0.0|0.0   ;;  %v8619_v8 = vpack.c.bf16 %v7676_v53, %v7671_v52  ;;  %v406_v29 = vld [vmem:[%s8493_s0 + $0xc20] sm:$0xff]  ;;  %v601_v21 = vld [vmem:[%s8493_s0 + $0x1238] sm:$0xff]  ;;  %v691_v60 = vld [vmem:[%s8493_s0 + $0x1508] sm:$0xff]  ;;  %v1225_v20 = vadd.f32 %v1224_v25, %v181_v41  ;;  %v1420_v32 = vadd.f32 %v1419_v37, %v286_v61 }
 0x1a9   :  { %4163 = vmatprep.subr.bf16.mxu1 %v8618_v34  ;;  %v1809_v38 = vadd.f32 %v1808_v48, %v481_v49  ;;  %v2008_v11 = vsel %vm863_vm0, %v646_v57, 0.0  ;;  %v8620_v52 = vpack.c.bf16 %v7700_v58, %v7695_v1  ;;  %v316_v53 = vld [vmem:[%s8493_s0 + $0x950] sm:$0xff]  ;;  %v511_v56 = vld [vmem:[%s8493_s0 + $0xf68] sm:$0xff]  ;;  %v1031_v61 = vadd.f32 %v1030_v3, %v91_v40  ;;  %v421_v1 = vld [vmem:[%s8493_s0 + $0xc98] sm:$0xff] }
 0x1aa   :  { %4147 = vmatpush3.bf16.msra.mxu0 %v8619_v8  ;;  %v856_v41 = vld [vmem:[%s8493_s0 + $0x1a30] sm:$0x1]  ;;  %v1615_v49 = vadd.f32 %v1614_v30, %v391_v26  ;;  %v2004_v23 = vadd.f32 %v2003_v16, %v586_v18  ;;  %v2198_v57 = vadd.f32 %v676_v27, %v661_v10  ;;  %v706_v25 = vld [vmem:[%s8493_s0 + $0x1580] sm:$0xff]  ;;  %v1226_v37 = vadd.f32 %v1225_v20, %v196_v35  ;;  %v781_v35 = vld [vmem:[%s8493_s0 + $0x17d8] sm:$0xff] }
 0x1ab   :  { %4149 = vmatprep.subr.bf16.mxu0 %v8620_v52  ;;  %v616_v58 = vld [vmem:[%s8493_s0 + $0x12b0] sm:$0xff]  ;;  %v1421_v48 = vadd.f32 %v1420_v32, %v301_v7  ;;  %v1810_v8 = vadd.f32 %v1809_v38, %v496_v17  ;;  %v2203_v40 = vsel %vm863_vm0, %v751_v0, 0.0  ;;  %v8621_v26 = vpack.c.bf16 %v7625_v39, %v7620_v54  ;;  %v526_v18 = vld [vmem:[%s8493_s0 + $0xfe0] sm:$0xff]  ;;  %v631_v39 = vld [vmem:[%s8493_s0 + $0x1328] sm:$0xff] }
 0x1ac   :  { %v766_v10 = vld [vmem:[%s8493_s0 + $0x1760] sm:$0xff]  ;;  %v1032_v7 = vadd.f32 %v1031_v61, %v106_v36  ;;  %v1616_v27 = vadd.f32 %v1615_v49, %v406_v29  ;;  %v2005_v17 = vadd.f32 %v2004_v23, %v601_v21  ;;  %v2199_v0 = vadd.f32 %v2198_v57, %v691_v60  ;;  %v721_v3 = vld [vmem:[%s8493_s0 + $0x15f8] sm:$0xff] }
 0x1ad   :  { %4165 = vmatpush3.bf16.msra.mxu1 %v8621_v26  ;;  %v8622_v54 = vpack.c.bf16 %v7710_v31, %v7705_v28  ;;  %v1227_v30 = vadd.f32 %v1226_v37, %v211_v51  ;;  %v1422_v16 = vadd.f32 %v1421_v48, %v316_v53  ;;  %v1811_v36 = vadd.f32 %v1810_v8, %v511_v56  ;;  %v796_v28 = vld [vmem:[%s8493_s0 + $0x1850] sm:$0xff] }
 0x1ae   :  { %4166 = vmatprep.subr.bf16.mxu1 %v8618_v34  ;;  %v8010_v29 = vsel %vm863_vm0, %v856_v41, 0.0  ;;  %v8623_v21 = vpack.c.bf16 %v7734_v24, %v7729_v4  ;;  %v1034_v31 = vadd.f32 %v7897_v42, %v1032_v7  ;;  %v1617_v60 = vadd.f32 %v1616_v27, %v421_v1  ;;  %v736_v51 = vld [vmem:[%s8493_s0 + $0x1670] sm:$0xff]  ;;  %v811_v42 = vld [vmem:[%s8493_s0 + $0x18c8] sm:$0xff] }
 0x1af   :  { %4151 = vmatpush3.bf16.msra.mxu0 %v8622_v54  ;;  %v2006_v20 = vadd.f32 %v2005_v17, %v616_v58  ;;  %v2200_v32 = vadd.f32 %v2199_v0, %v706_v25  ;;  %v1229_v38 = vadd.f32 %v7900_v33, %v1227_v30  ;;  %v1424_v52 = vadd.f32 %v7916_v12, %v1422_v16 }
 0x1b0   :  { %4153 = vmatprep.subr.bf16.mxu0 %v8623_v21  ;;  %v1812_v53 = vadd.f32 %v1811_v36, %v526_v18  ;;  %v2393_v4 = vadd.f32 %v781_v35, %v766_v10  ;;  %v8624_v24 = vpack.c.bf16 %v7656_v47, %v7651_v9  ;;  %v1035_v56 = vrot.slane %v1034_v31, 4 }
 0x1b1   :  { %v1619_v41 = vadd.f32 %v7931_v19, %v1617_v60  ;;  %v2007_v61 = vadd.f32 %v2006_v20, %v631_v39  ;;  %v2201_v49 = vadd.f32 %v2200_v32, %v721_v3  ;;  %v8625_v33 = vpack.c.bf16 %v7748_v63, %v7743_v5  ;;  %v826_v19 = vld [vmem:[%s8493_s0 + $0x1940] sm:$0xff] }
 0x1b2   :  { %4168 = vmatpush3.bf16.msra.mxu1 %v8624_v24  ;;  %v1230_v12 = vrot.slane %v1229_v38, 4  ;;  %v1425_v23 = vrot.slane %v1424_v52, 4  ;;  %v1814_v9 = vadd.f32 %v7949_v22, %v1812_v53  ;;  %v2394_v47 = vadd.f32 %v2393_v4, %v796_v28 }
 0x1b3   :  { %4169 = vmatprep.subr.bf16.mxu1 %v8618_v34  ;;  %4155 = vmatpush3.bf16.msra.mxu0 %v8625_v33  ;;  %v8626_v57 = vpack.c.bf16 %v7768_v15, %v7763_v59  ;;  %v1036_v1 = vadd.f32 %v1035_v56, %v1034_v31  ;;  %v1620_v58 = vrot.slane %v1619_v41, 4  ;;  %v2009_v25 = vadd.f32 %v2008_v11, %v2007_v61  ;;  %v841_v59 = vld [vmem:[%s8493_s0 + $0x19b8] sm:$0xff]  ;;  %v60_v33 = vld [vmem:[%s8493_s0 + $0x150] sm:$0xff] }
 0x1b4   :  { %v2202_v37 = vadd.f32 %v2201_v49, %v736_v51  ;;  %v1231_v48 = vadd.f32 %v1230_v12, %v1229_v38  ;;  %v1426_v5 = vadd.f32 %v1425_v23, %v1424_v52  ;;  %v1815_v63 = vrot.slane %v1814_v9, 4  ;;  %v120_v12 = vld [vmem:[%s8493_s0 + $0x330] sm:$0x1] }
 0x1b5   :  { %4157 = vmatprep.subr.bf16.mxu0 %v8626_v57  ;;  %v2395_v8 = vadd.f32 %v2394_v47, %v811_v42  ;;  %v8627_v22 = vpack.c.bf16 %v7690_v45, %v7685_v13  ;;  %v1037_v15 = vrot.slane %v1036_v1, 2  ;;  %v1621_v26 = vadd.f32 %v1620_v58, %v1619_v41  ;;  %v45_v42 = vld [vmem:[%s8493_s0 + $0xd8] sm:$0xff] }
 0x1b6   :  { %v2010_v18 = vrot.slane %v2009_v25, 4  ;;  %v2204_v10 = vadd.f32 %v2203_v40, %v2202_v37  ;;  %v8628_v11 = vpack.c.bf16 %v7778_v55, %v7773_v62  ;;  %v1232_v35 = vrot.slane %v1231_v48, 2  ;;  %v165_v37 = vld [vmem:[%s8493_s0 + $0x498] sm:$0xff] }
 0x1b7   :  { %4171 = vmatpush3.bf16.msra.mxu1 %v8627_v22  ;;  %v1427_v7 = vrot.slane %v1426_v5, 2  ;;  %v1816_v27 = vadd.f32 %v1815_v63, %v1814_v9  ;;  %v2396_v17 = vadd.f32 %v2395_v8, %v826_v19  ;;  %v1038_v13 = vadd.f32 %v1037_v15, %v1036_v1  ;;  %v150_v19 = vld [vmem:[%s8493_s0 + $0x420] sm:$0xff] }
 0x1b8   :  { %4172 = vmatprep.subr.bf16.mxu1 %v8618_v34  ;;  %4159 = vmatpush3.bf16.msra.mxu0 %v8628_v11  ;;  %v1622_v45 = vrot.slane %v1621_v26, 2  ;;  %v2011_v0 = vadd.f32 %v2010_v18, %v2009_v25  ;;  %v2205_v54 = vrot.slane %v2204_v10, 4  ;;  %v1233_v39 = vadd.f32 %v1232_v35, %v1231_v48  ;;  %v225_v48 = vld [vmem:[%s8493_s0 + $0x678] sm:$0x1]  ;;  %v90_v15 = vld [vmem:[%s8493_s0 + $0x240] sm:$0xff] }
 0x1b9   :  { %v1428_v3 = vadd.f32 %v1427_v7, %v1426_v5  ;;  %v1817_v30 = vrot.slane %v1816_v27, 2  ;;  %v2397_v16 = vadd.f32 %v2396_v17, %v841_v59  ;;  %v8629_v40 = vpack.c.bf16 %v7724_v50, %v7719_v14  ;;  %v30_v50 = vld [vmem:[%s8493_s0 + $0x60] sm:$0xff]  ;;  %v240_v5 = vld [vmem:[%s8493_s0 + $0x6f0] sm:$0xff] }
 0x1ba   :  { %v1039_v36 = vrot.slane %v1038_v13, 1  ;;  %v1623_v21 = vadd.f32 %v1622_v45, %v1621_v26  ;;  %v2012_v62 = vrot.slane %v2011_v0, 2  ;;  %v2206_v55 = vadd.f32 %v2205_v54, %v2204_v10  ;;  %v255_v26 = vld [vmem:[%s8493_s0 + $0x768] sm:$0xff]  ;;  %v8101_v10 = vpop.f32.mrb[2].mxu0  ;;  %v180_v17 = vld [vmem:[%s8493_s0 + $0x510] sm:$0xff] }
 0x1bb   :  { %4174 = vmatpush3.bf16.msra.mxu1 %v8629_v40  ;;  %v1234_v28 = vrot.slane %v1233_v39, 1  ;;  %v1429_v31 = vrot.slane %v1428_v3, 1  ;;  %v1818_v60 = vadd.f32 %v1817_v30, %v1816_v27  ;;  %v2399_v20 = vadd.f32 %v8010_v29, %v2397_v16  ;;  %v360_v30 = vld [vmem:[%s8493_s0 + $0xab0] sm:$0xff] }
 0x1bc   :  { %4175 = vmatprep.subr.bf16.mxu1 %v8618_v34  ;;  %v1040_v32 = vadd.f32 %v1039_v36, %v1038_v13  ;;  %v1624_v51 = vrot.slane %v1623_v21, 1  ;;  %v2013_v38 = vadd.f32 %v2012_v62, %v2011_v0  ;;  %v2207_v52 = vrot.slane %v2206_v55, 2  ;;  %v330_v13 = vld [vmem:[%s8493_s0 + $0x9c0] sm:$0x1]  ;;  %v8113_v0 = vpop.f32.mrb[3].mxu0  ;;  %v195_v62 = vld [vmem:[%s8493_s0 + $0x588] sm:$0xff] }
 0x1bd   :  { %v1235_v53 = vadd.f32 %v1234_v28, %v1233_v39  ;;  %v1430_v4 = vadd.f32 %v1429_v31, %v1428_v3  ;;  %v1819_v24 = vrot.slane %v1818_v60, 1  ;;  %v2400_v14 = vrot.slane %v2399_v20, 4  ;;  %v345_v3 = vld [vmem:[%s8493_s0 + $0xa38] sm:$0xff]  ;;  %v450_v28 = vld [vmem:[%s8493_s0 + $0xd80] sm:$0xff] }
 0x1be   :  { %v8630_v56 = vpack.c.bf16 %v7758_v46, %v7753_v43  ;;  %v1625_v29 = vadd.f32 %v1624_v51, %v1623_v21  ;;  %v2014_v41 = vrot.slane %v2013_v38, 1  ;;  %v2208_v61 = vadd.f32 %v2207_v52, %v2206_v55  ;;  %v75_v43 = vld [vmem:[%s8493_s0 + $0x1c8] sm:$0xff]  ;;  %v465_v31 = vld [vmem:[%s8493_s0 + $0xdf8] sm:$0xff]  ;;  %v540_v52 = vld [vmem:[%s8493_s0 + $0x1050] sm:$0x1] }
 0x1bf   :  { %v2433_v49 = vmul.f32 0.020408163, %v1040_v32  ;;  %v1820_v23 = vadd.f32 %v1819_v24, %v1818_v60  ;;  %v2401_v9 = vadd.f32 %v2400_v14, %v2399_v20  ;;  %v2448_v47 = vmul.f32 0.020408163, %v1235_v53  ;;  %v135_v46 = vld [vmem:[%s8493_s0 + $0x3a8] sm:$0xff]  ;;  %v285_v51 = vld [vmem:[%s8493_s0 + $0x858] sm:$0xff] }
 0x1c0   :  { %4177 = vmatpush3.bf16.msra.mxu1 %v8630_v56  ;;  %v2463_v57 = vmul.f32 0.020408163, %v1430_v4  ;;  %v2015_v1 = vadd.f32 %v2014_v41, %v2013_v38  ;;  %v2209_v58 = vrot.slane %v2208_v61, 1  ;;  %v2478_v25 = vmul.f32 0.020408163, %v1625_v29  ;;  %v375_v38 = vld [vmem:[%s8493_s0 + $0xb28] sm:$0xff] }
 0x1c1   :  { %4178 = vmatprep.subr.bf16.mxu1 %v8618_v34  ;;  %v1015_v63 = vadd.f32 %v45_v42, %v30_v50  ;;  %v2402_v8 = vrot.slane %v2401_v9, 2  ;;  %v2493_v22 = vmul.f32 0.020408163, %v1820_v23  ;;  %v2758_v59 = vsel %vm2660_vm1, %v2448_v47, %v2433_v49  ;;  %v435_v55 = vld [vmem:[%s8493_s0 + $0xd08] sm:$0x1]  ;;  %v210_v14 = vld [vmem:[%s8493_s0 + $0x600] sm:$0xff] }
 0x1c2   :  { %v8099_v18 = vsel %vm863_vm0, %v120_v12, 0.0  ;;  %v8631_v11 = vpack.c.bf16 %v7793_v2, %v7788_v6  ;;  %v2210_v35 = vadd.f32 %v2209_v58, %v2208_v61  ;;  %v2508_v7 = vmul.f32 0.020408163, %v2015_v1  ;;  %v105_v6 = vld [vmem:[%s8493_s0 + $0x2b8] sm:$0xff]  ;;  %v270_v2 = vld [vmem:[%s8493_s0 + $0x7e0] sm:$0xff]  ;;  %v480_v50 = vld [vmem:[%s8493_s0 + $0xe70] sm:$0xff] }
 0x1c3   :  { %v2759_v27 = vsel %vm2662_vm2, %v2463_v57, %v2758_v59  ;;  %v1016_v45 = vadd.f32 %v1015_v63, %v60_v33  ;;  %v2403_v54 = vadd.f32 %v2402_v8, %v2401_v9  ;;  %v1210_v16 = vadd.f32 %v150_v19, %v135_v46  ;;  %v555_v42 = vld [vmem:[%s8493_s0 + $0x10c8] sm:$0xff]  ;;  %v570_v56 = vld [vmem:[%s8493_s0 + $0x1140] sm:$0xff]  ;;  %v300_v33 = vld [vmem:[%s8493_s0 + $0x8d0] sm:$0xff] }
 0x1c4   :  { %4180 = vmatpush3.bf16.msra.mxu1 %v8631_v11  ;;  %v2760_v39 = vsel %vm2664_vm3, %v2478_v25, %v2759_v27  ;;  %v8129_v40 = vsel %vm863_vm0, %v225_v48, 0.0  ;;  %v2523_v36 = vmul.f32 0.020408163, %v2210_v35  ;;  %v1405_v60 = vadd.f32 %v255_v26, %v240_v5  ;;  %v390_v12 = vld [vmem:[%s8493_s0 + $0xba0] sm:$0xff]  ;;  %v645_v23 = vld [vmem:[%s8493_s0 + $0x1398] sm:$0x1] }
 0x1c5   :  { %4181 = vmatprep.subr.bf16.mxu1 %v8618_v34  ;;  %v2761_v21 = vsel %vm2666_vm4, %v2493_v22, %v2760_v39  ;;  %v1017_v34 = vadd.f32 %v1016_v45, %v75_v43  ;;  %v2404_v20 = vrot.slane %v2403_v54, 1  ;;  %v1211_v53 = vadd.f32 %v1210_v16, %v165_v37  ;;  %v315_v43 = vld [vmem:[%s8493_s0 + $0x948] sm:$0xff]  ;;  %v585_v19 = vld [vmem:[%s8493_s0 + $0x11b8] sm:$0xff]  ;;  %v660_v63 = vld [vmem:[%s8493_s0 + $0x1410] sm:$0xff] }
 0x1c6   :  { %v2762_v32 = vsel %vm2668_vm5, %v2508_v7, %v2761_v21  ;;  %v1410_v4 = vsel %vm863_vm0, %v330_v13, 0.0  ;;  %v1406_v41 = vadd.f32 %v1405_v60, %v270_v2  ;;  %v1600_v61 = vadd.f32 %v360_v30, %v345_v3  ;;  %v495_v46 = vld [vmem:[%s8493_s0 + $0xee8] sm:$0xff]  ;;  %v405_v5 = vld [vmem:[%s8493_s0 + $0xc18] sm:$0xff]  ;;  %v510_v26 = vld [vmem:[%s8493_s0 + $0xf60] sm:$0xff] }
 0x1c7   :  { %v2763_v24 = vsel %vm2670_vm6, %v2523_v36, %v2762_v32  ;;  %v1018_v29 = vadd.f32 %v1017_v34, %v90_v15  ;;  %v2405_v49 = vadd.f32 %v2404_v20, %v2403_v54  ;;  %v1212_v9 = vadd.f32 %v1211_v53, %v180_v17  ;;  %v675_v8 = vld [vmem:[%s8493_s0 + $0x1488] sm:$0xff]  ;;  %v600_v11 = vld [vmem:[%s8493_s0 + $0x1230] sm:$0xff]  ;;  %v750_v35 = vld [vmem:[%s8493_s0 + $0x16e0] sm:$0x1] }
 0x1c8   :  { %v1605_v47 = vsel %vm863_vm0, %v435_v55, 0.0  ;;  %v1795_v57 = vadd.f32 %v465_v31, %v450_v28  ;;  %v1407_v58 = vadd.f32 %v1406_v41, %v285_v51  ;;  %v1601_v25 = vadd.f32 %v1600_v61, %v375_v38  ;;  %v420_v54 = vld [vmem:[%s8493_s0 + $0xc90] sm:$0xff]  ;;  %v525_v39 = vld [vmem:[%s8493_s0 + $0xfd8] sm:$0xff]  ;;  %v615_v30 = vld [vmem:[%s8493_s0 + $0x12a8] sm:$0xff] }
 0x1c9   :  { %v1019_v1 = vadd.f32 %v1018_v29, %v105_v6  ;;  %v1800_v37 = vsel %vm863_vm0, %v540_v52, 0.0  ;;  %v2538_v48 = vmul.f32 0.020408163, %v2405_v49  ;;  %v1213_v22 = vadd.f32 %v1212_v9, %v195_v62  ;;  %v690_v6 = vld [vmem:[%s8493_s0 + $0x1500] sm:$0xff]  ;;  %v765_v16 = vld [vmem:[%s8493_s0 + $0x1758] sm:$0xff]  ;;  %v780_v36 = vld [vmem:[%s8493_s0 + $0x17d0] sm:$0xff] }
 0x1ca   :  { %v1796_v59 = vadd.f32 %v1795_v57, %v480_v50  ;;  %v1990_v15 = vadd.f32 %v570_v56, %v555_v42  ;;  %v1408_v27 = vadd.f32 %v1407_v58, %v300_v33  ;;  %v1602_v17 = vadd.f32 %v1601_v25, %v390_v12  ;;  %v705_v31 = vld [vmem:[%s8493_s0 + $0x1578] sm:$0xff]  ;;  %v630_v51 = vld [vmem:[%s8493_s0 + $0x1320] sm:$0xff]  ;;  %v795_v38 = vld [vmem:[%s8493_s0 + $0x1848] sm:$0xff] }
 0x1cb   :  { %v1021_v7 = vadd.f32 %v8099_v18, %v1019_v1  ;;  %v1995_v13 = vsel %vm863_vm0, %v645_v23, 0.0  ;;  %v2764_v45 = vsel %vm2672_vm7, %v2538_v48, %v2763_v24  ;;  %v1214_v2 = vadd.f32 %v1213_v22, %v210_v14  ;;  %v810_v41 = vld [vmem:[%s8493_s0 + $0x18c0] sm:$0xff] }
 0x1cc   :  { %v1797_v18 = vadd.f32 %v1796_v59, %v495_v46  ;;  %v1991_v3 = vadd.f32 %v1990_v15, %v585_v19  ;;  %2800 = vst [vmem:[#allocation2 + $0x68] sm:$0xff] %v2764_v45  ;;  %3533 = vmatprep.mubr.f32.mxu0 %v2764_v45  ;;  %v1409_v62 = vadd.f32 %v1408_v27, %v315_v43  ;;  %v2190_v32 = vsel %vm863_vm0, %v750_v35, 0.0  ;;  %v825_v46 = vld [vmem:[%s8493_s0 + $0x1938] sm:$0xff] }
 0x1cd   :  { %v1022_v21 = vrot.slane %v1021_v7, 4  ;;  %v1603_v55 = vadd.f32 %v1602_v17, %v405_v5  ;;  %v2185_v28 = vadd.f32 %v675_v8, %v660_v63  ;;  %v1216_v34 = vadd.f32 %v8129_v40, %v1214_v2  ;;  %v720_v40 = vld [vmem:[%s8493_s0 + $0x15f0] sm:$0xff] }
 0x1ce   :  { %v1798_v60 = vadd.f32 %v1797_v18, %v510_v26  ;;  %v1992_v20 = vadd.f32 %v1991_v3, %v600_v11  ;;  %v1411_v53 = vadd.f32 %v1410_v4, %v1409_v62  ;;  %v2380_v29 = vadd.f32 %v780_v36, %v765_v16  ;;  %v735_v4 = vld [vmem:[%s8493_s0 + $0x1668] sm:$0xff]  ;;  %v840_v8 = vld [vmem:[%s8493_s0 + $0x19b0] sm:$0xff] }
 0x1cf   :  { %v1023_v52 = vadd.f32 %v1022_v21, %v1021_v7  ;;  %v1604_v24 = vadd.f32 %v1603_v55, %v420_v54  ;;  %v2186_v14 = vadd.f32 %v2185_v28, %v690_v6  ;;  %v1217_v50 = vrot.slane %v1216_v34, 4  ;;  %v855_v26 = vld [vmem:[%s8493_s0 + $0x1a28] sm:$0x1] }
 0x1d0   :  { %v1799_v42 = vadd.f32 %v1798_v60, %v525_v39  ;;  %v1993_v56 = vadd.f32 %v1992_v20, %v615_v30  ;;  %v1412_v49 = vrot.slane %v1411_v53, 4  ;;  %v2381_v43 = vadd.f32 %v2380_v29, %v795_v38  ;;  %v47_v29 = vld [vmem:[%s8493_s0 + $0xe8] sm:$0xff] }
 0x1d1   :  { %v1024_v61 = vrot.slane %v1023_v52, 2  ;;  %v1606_v33 = vadd.f32 %v1605_v47, %v1604_v24  ;;  %v2187_v12 = vadd.f32 %v2186_v14, %v705_v31  ;;  %v1218_v23 = vadd.f32 %v1217_v50, %v1216_v34  ;;  %v3040_v31 = vld [vmem:[%s8494_s1 + $0x770] sm:$0xff]  ;;  %v3041_v34 = vld [vmem:[%s8494_s1 + $0x778] sm:$0xff] }
 0x1d2   :  { %v1801_v9 = vadd.f32 %v1800_v37, %v1799_v42  ;;  %v1994_v57 = vadd.f32 %v1993_v56, %v630_v51  ;;  %v1413_v1 = vadd.f32 %v1412_v49, %v1411_v53  ;;  %v2382_v63 = vadd.f32 %v2381_v43, %v810_v41  ;;  %v32_v56 = vld [vmem:[%s8493_s0 + $0x70] sm:$0xff] }
 0x1d3   :  { %v1025_v19 = vadd.f32 %v1024_v61, %v1023_v52  ;;  %v1607_v58 = vrot.slane %v1606_v33, 4  ;;  %v2188_v25 = vadd.f32 %v2187_v12, %v720_v40  ;;  %v1219_v48 = vrot.slane %v1218_v23, 2  ;;  %v62_v12 = vld [vmem:[%s8493_s0 + $0x160] sm:$0xff] }
 0x1d4   :  { %v1802_v5 = vrot.slane %v1801_v9, 4  ;;  %v1996_v47 = vadd.f32 %v1995_v13, %v1994_v57  ;;  %v1414_v37 = vrot.slane %v1413_v1, 2  ;;  %v2383_v27 = vadd.f32 %v2382_v63, %v825_v46  ;;  %v152_v46 = vld [vmem:[%s8493_s0 + $0x430] sm:$0xff] }
 0x1d5   :  { %v1026_v22 = vrot.slane %v1025_v19, 1  ;;  %v1608_v59 = vadd.f32 %v1607_v58, %v1606_v33  ;;  %v2189_v15 = vadd.f32 %v2188_v25, %v735_v4  ;;  %v1220_v11 = vadd.f32 %v1219_v48, %v1218_v23  ;;  %v122_v4 = vld [vmem:[%s8493_s0 + $0x340] sm:$0x1]  ;;  %v137_v23 = vld [vmem:[%s8493_s0 + $0x3b8] sm:$0xff] }
 0x1d6   :  { %v1803_v35 = vadd.f32 %v1802_v5, %v1801_v9  ;;  %v1997_v7 = vrot.slane %v1996_v47, 4  ;;  %v1415_v45 = vadd.f32 %v1414_v37, %v1413_v1  ;;  %v2384_v18 = vadd.f32 %v2383_v27, %v840_v8  ;;  %v77_v48 = vld [vmem:[%s8493_s0 + $0x1d8] sm:$0xff]  ;;  %v242_v5 = vld [vmem:[%s8493_s0 + $0x700] sm:$0xff]  ;;  %v167_v37 = vld [vmem:[%s8493_s0 + $0x4a8] sm:$0xff] }
 0x1d7   :  { %v1027_v17 = vadd.f32 %v1026_v22, %v1025_v19  ;;  %v1609_v13 = vrot.slane %v1608_v59, 2  ;;  %v2191_v54 = vadd.f32 %v2190_v32, %v2189_v15  ;;  %v1221_v39 = vrot.slane %v1220_v11, 1  ;;  %v227_v19 = vld [vmem:[%s8493_s0 + $0x688] sm:$0x1]  ;;  %v332_v15 = vld [vmem:[%s8493_s0 + $0x9d0] sm:$0x1] }
 0x1d8   :  { %v1804_v6 = vrot.slane %v1803_v35, 2  ;;  %v1998_v2 = vadd.f32 %v1997_v7, %v1996_v47  ;;  %v1416_v3 = vrot.slane %v1415_v45, 1  ;;  %v2385_v36 = vsel %vm863_vm0, %v855_v26, 0.0  ;;  %v257_v47 = vld [vmem:[%s8493_s0 + $0x778] sm:$0xff] }
 0x1d9   :  { %v1610_v30 = vadd.f32 %v1609_v13, %v1608_v59  ;;  %v2192_v16 = vrot.slane %v2191_v54, 4  ;;  %v1222_v21 = vadd.f32 %v1221_v39, %v1220_v11  ;;  %v2386_v28 = vadd.f32 %v2385_v36, %v2384_v18  ;;  %v182_v59 = vld [vmem:[%s8493_s0 + $0x520] sm:$0xff]  ;;  %v347_v13 = vld [vmem:[%s8493_s0 + $0xa48] sm:$0xff]  ;;  %v452_v18 = vld [vmem:[%s8493_s0 + $0xd90] sm:$0xff] }
 0x1da   :  { %v1805_v62 = vadd.f32 %v1804_v6, %v1803_v35  ;;  %v1999_v55 = vrot.slane %v1998_v2, 2  ;;  %v1417_v60 = vadd.f32 %v1416_v3, %v1415_v45  ;;  %v2432_v51 = vmul.f32 0.020408163, %v1027_v17  ;;  %v92_v17 = vld [vmem:[%s8493_s0 + $0x250] sm:$0xff]  ;;  %v467_v3 = vld [vmem:[%s8493_s0 + $0xe08] sm:$0xff] }
 0x1db   :  { %v1611_v20 = vrot.slane %v1610_v30, 1  ;;  %v2193_v32 = vadd.f32 %v2192_v16, %v2191_v54  ;;  %v2387_v53 = vrot.slane %v2386_v28, 4  ;;  %v2447_v24 = vmul.f32 0.020408163, %v1222_v21  ;;  %v272_v45 = vld [vmem:[%s8493_s0 + $0x7f0] sm:$0xff]  ;;  %v362_v54 = vld [vmem:[%s8493_s0 + $0xac0] sm:$0xff] }
 0x1dc   :  { %v1806_v38 = vrot.slane %v1805_v62, 1  ;;  %v2000_v52 = vadd.f32 %v1999_v55, %v1998_v2  ;;  %v2462_v50 = vmul.f32 0.020408163, %v1417_v60  ;;  %v4182_v42 = vpack.c.bf16 %v3041_v34, %v3040_v31  ;;  %v437_v2 = vld [vmem:[%s8493_s0 + $0xd18] sm:$0x1]  ;;  %v107_v55 = vld [vmem:[%s8493_s0 + $0x2c8] sm:$0xff] }
 0x1dd   :  { %v1612_v14 = vadd.f32 %v1611_v20, %v1610_v30  ;;  %v2194_v40 = vrot.slane %v2193_v32, 2  ;;  %v2388_v49 = vadd.f32 %v2387_v53, %v2386_v28  ;;  %v2751_v33 = vsel %vm2660_vm1, %v2447_v24, %v2432_v51  ;;  %v197_v28 = vld [vmem:[%s8493_s0 + $0x598] sm:$0xff]  ;;  %v287_v31 = vld [vmem:[%s8493_s0 + $0x868] sm:$0xff]  ;;  %v212_v51 = vld [vmem:[%s8493_s0 + $0x610] sm:$0xff] }
 0x1de   :  { %v1807_v41 = vadd.f32 %v1806_v38, %v1805_v62  ;;  %v2001_v61 = vrot.slane %v2000_v52, 1  ;;  %v2752_v43 = vsel %vm2662_vm2, %v2462_v50, %v2751_v33  ;;  %4183 = vmatpush3.bf16.msra.mxu1 %v4182_v42  ;;  %v4239_v22 = vmov 0.0   ;;  %v377_v34 = vld [vmem:[%s8493_s0 + $0xb38] sm:$0xff]  ;;  %v302_v38 = vld [vmem:[%s8493_s0 + $0x8e0] sm:$0xff]  ;;  %v392_v42 = vld [vmem:[%s8493_s0 + $0xbb0] sm:$0xff] }
 0x1df   :  { %v2195_v9 = vadd.f32 %v2194_v40, %v2193_v32  ;;  %v2477_v57 = vmul.f32 0.020408163, %v1612_v14  ;;  %v2389_v58 = vrot.slane %v2388_v49, 2  ;;  %3933 = vmatprep.mubr.msk.f32.mxu1 %vm4238_vm8, %v4239_v22  ;;  %v1041_v26 = vadd.f32 %v47_v29, %v32_v56  ;;  %v542_v53 = vld [vmem:[%s8493_s0 + $0x1060] sm:$0x1]  ;;  %v557_v56 = vld [vmem:[%s8493_s0 + $0x10d8] sm:$0xff] }
 0x1e0   :  { %v2002_v1 = vadd.f32 %v2001_v61, %v2000_v52  ;;  %v2492_v25 = vmul.f32 0.020408163, %v1807_v41  ;;  %v8307_v11 = vsel %vm863_vm0, %v122_v4, 0.0  ;;  %v1236_v39 = vadd.f32 %v152_v46, %v137_v23  ;;  %v482_v52 = vld [vmem:[%s8493_s0 + $0xe80] sm:$0xff]  ;;  %v572_v29 = vld [vmem:[%s8493_s0 + $0x1150] sm:$0xff]  ;;  %v497_v4 = vld [vmem:[%s8493_s0 + $0xef8] sm:$0xff] }
 0x1e1   :  { %v2196_v63 = vrot.slane %v2195_v9, 1  ;;  %v2753_v8 = vsel %vm2664_vm3, %v2477_v57, %v2752_v43  ;;  %v2390_v35 = vadd.f32 %v2389_v58, %v2388_v49  ;;  %v1042_v30 = vadd.f32 %v1041_v26, %v62_v12  ;;  %v317_v12 = vld [vmem:[%s8493_s0 + $0x958] sm:$0xff]  ;;  %v647_v23 = vld [vmem:[%s8493_s0 + $0x13a8] sm:$0x1] }
 0x1e2   :  { %v2507_v7 = vmul.f32 0.020408163, %v2002_v1  ;;  %v2754_v27 = vsel %vm2666_vm4, %v2492_v25, %v2753_v8  ;;  %v8332_v16 = vsel %vm863_vm0, %v227_v19, 0.0  ;;  %v1431_v36 = vadd.f32 %v257_v47, %v242_v5  ;;  %v407_v19 = vld [vmem:[%s8493_s0 + $0xc28] sm:$0xff]  ;;  %v512_v1 = vld [vmem:[%s8493_s0 + $0xf70] sm:$0xff]  ;;  %v662_v47 = vld [vmem:[%s8493_s0 + $0x1420] sm:$0xff] }
 0x1e3   :  { %v2197_v6 = vadd.f32 %v2196_v63, %v2195_v9  ;;  %v2391_v21 = vrot.slane %v2390_v35, 1  ;;  %v1237_v60 = vadd.f32 %v1236_v39, %v167_v37  ;;  %v1436_v20 = vsel %vm863_vm0, %v332_v15, 0.0  ;;  %v587_v58 = vld [vmem:[%s8493_s0 + $0x11c8] sm:$0xff]  ;;  %v677_v63 = vld [vmem:[%s8493_s0 + $0x1498] sm:$0xff]  ;;  %v752_v8 = vld [vmem:[%s8493_s0 + $0x16f0] sm:$0x1] }
 0x1e4   :  { %v2755_v62 = vsel %vm2668_vm5, %v2507_v7, %v2754_v27  ;;  %v1043_v24 = vadd.f32 %v1042_v30, %v77_v48  ;;  %v1432_v14 = vadd.f32 %v1431_v36, %v272_v45  ;;  %v1626_v40 = vadd.f32 %v362_v54, %v347_v13  ;;  %v527_v7 = vld [vmem:[%s8493_s0 + $0xfe8] sm:$0xff]  ;;  %v602_v27 = vld [vmem:[%s8493_s0 + $0x1240] sm:$0xff]  ;;  %v692_v54 = vld [vmem:[%s8493_s0 + $0x1510] sm:$0xff] }
 0x1e5   :  { %v2522_v32 = vmul.f32 0.020408163, %v2197_v6  ;;  %v2392_v50 = vadd.f32 %v2391_v21, %v2390_v35  ;;  %v1238_v41 = vadd.f32 %v1237_v60, %v182_v59  ;;  %v1631_v61 = vsel %vm863_vm0, %v437_v2, 0.0  ;;  %v422_v35 = vld [vmem:[%s8493_s0 + $0xca0] sm:$0xff]  ;;  %v767_v39 = vld [vmem:[%s8493_s0 + $0x1768] sm:$0xff]  ;;  %v617_v36 = vld [vmem:[%s8493_s0 + $0x12b8] sm:$0xff] }
 0x1e6   :  { %v1821_v49 = vadd.f32 %v467_v3, %v452_v18  ;;  %v1044_v9 = vadd.f32 %v1043_v24, %v92_v17  ;;  %v1433_v57 = vadd.f32 %v1432_v14, %v287_v31  ;;  %v1627_v43 = vadd.f32 %v1626_v40, %v377_v34  ;;  %v782_v6 = vld [vmem:[%s8493_s0 + $0x17e0] sm:$0xff]  ;;  %v707_v31 = vld [vmem:[%s8493_s0 + $0x1588] sm:$0xff]  ;;  %v812_v40 = vld [vmem:[%s8493_s0 + $0x18d0] sm:$0xff] }
 0x1e7   :  { %v2756_v33 = vsel %vm2670_vm6, %v2522_v32, %v2755_v62  ;;  %v2537_v46 = vmul.f32 0.020408163, %v2392_v50  ;;  %v1239_v25 = vadd.f32 %v1238_v41, %v197_v28  ;;  %v1826_v5 = vsel %vm863_vm0, %v542_v53, 0.0  ;;  %v722_v14 = vld [vmem:[%s8493_s0 + $0x1600] sm:$0xff] }
 0x1e8   :  { %v1822_v48 = vadd.f32 %v1821_v49, %v482_v52  ;;  %v1045_v22 = vadd.f32 %v1044_v9, %v107_v55  ;;  %v1434_v37 = vadd.f32 %v1433_v57, %v302_v38  ;;  %v1628_v59 = vadd.f32 %v1627_v43, %v392_v42 }
 0x1e9   :  { %v2016_v15 = vadd.f32 %v572_v29, %v557_v56  ;;  %v2757_v26 = vsel %vm2672_vm7, %v2537_v46, %v2756_v33  ;;  %v1240_v17 = vadd.f32 %v1239_v25, %v212_v51  ;;  %v2021_v13 = vsel %vm863_vm0, %v647_v23, 0.0 }
 0x1ea   :  { %v1823_v45 = vadd.f32 %v1822_v48, %v497_v4  ;;  %2799 = vst [vmem:[#allocation2 + $0x60] sm:$0xff] %v2757_v26  ;;  %3534 = vmatmul.mubr.f32.vlgmr.msra.gmra.mrb[6].mxu0 %v2757_v26  ;;  %v1047_v2 = vadd.f32 %v8307_v11, %v1045_v22  ;;  %v1435_v18 = vadd.f32 %v1434_v37, %v317_v12  ;;  %v2216_v28 = vsel %vm863_vm0, %v752_v8, 0.0  ;;  %v797_v11 = vld [vmem:[%s8493_s0 + $0x1858] sm:$0xff]  ;;  %v827_v4 = vld [vmem:[%s8493_s0 + $0x1948] sm:$0xff] }
 0x1eb   :  { %v1629_v3 = vadd.f32 %v1628_v59, %v407_v19  ;;  %v2017_v30 = vadd.f32 %v2016_v15, %v587_v58  ;;  %v1242_v21 = vadd.f32 %v8332_v16, %v1240_v17  ;;  %v2211_v55 = vadd.f32 %v677_v63, %v662_v47  ;;  %v632_v16 = vld [vmem:[%s8493_s0 + $0x1330] sm:$0xff]  ;;  %v737_v12 = vld [vmem:[%s8493_s0 + $0x1678] sm:$0xff]  ;;  %v842_v58 = vld [vmem:[%s8493_s0 + $0x19c0] sm:$0xff] }
 0x1ec   :  { %v1824_v62 = vadd.f32 %v1823_v45, %v512_v1  ;;  %v1048_v34 = vrot.slane %v1047_v2, 4  ;;  %v1437_v60 = vadd.f32 %v1436_v20, %v1435_v18  ;;  %v2406_v24 = vadd.f32 %v782_v6, %v767_v39  ;;  %v857_v59 = vld [vmem:[%s8493_s0 + $0x1a38] sm:$0x1] }
 0x1ed   :  { %v1630_v32 = vadd.f32 %v1629_v3, %v422_v35  ;;  %v2018_v51 = vadd.f32 %v2017_v30, %v602_v27  ;;  %v1243_v38 = vrot.slane %v1242_v21, 4  ;;  %v2212_v53 = vadd.f32 %v2211_v55, %v692_v54 }
 0x1ee   :  { %v1825_v52 = vadd.f32 %v1824_v62, %v527_v7  ;;  %v1049_v50 = vadd.f32 %v1048_v34, %v1047_v2  ;;  %v1438_v20 = vrot.slane %v1437_v60, 4  ;;  %v2407_v33 = vadd.f32 %v2406_v24, %v797_v11 }
 0x1ef   :  { %v1632_v42 = vadd.f32 %v1631_v61, %v1630_v32  ;;  %v2019_v56 = vadd.f32 %v2018_v51, %v617_v36  ;;  %v1244_v29 = vadd.f32 %v1243_v38, %v1242_v21  ;;  %v2213_v49 = vadd.f32 %v2212_v53, %v707_v31 }
 0x1f0   :  { %v1827_v41 = vadd.f32 %v1826_v5, %v1825_v52  ;;  %v1050_v23 = vrot.slane %v1049_v50, 2  ;;  %v1439_v9 = vadd.f32 %v1438_v20, %v1437_v60  ;;  %v2408_v1 = vadd.f32 %v2407_v33, %v812_v40  ;;  %v3638_v52 = vld [vmem:[%s8495_s2] ss:$0 sm:$0xff]  ;;  %v8632_v40 = vld [vmem:[#allocation19_spill] sm:$0xff]  ;;  %s4240_s2 = smov [#allocation2]  }
 0x1f1   :  { %v1633_v57 = vrot.slane %v1632_v42, 4  ;;  %v2020_v43 = vadd.f32 %v2019_v56, %v632_v16  ;;  %v1245_v46 = vrot.slane %v1244_v29, 2  ;;  %v2214_v61 = vadd.f32 %v2213_v49, %v722_v14  ;;  %s3616_s13 = sshll.u32 %s4240_s2, 4  ;;  %s3617_s13 = int_to_ptr.vmem [resolvable:$true] %s3616_s13 }
 0x1f2   :  { %v1828_v19 = vrot.slane %v1827_v41, 4  ;;  %v1051_v25 = vadd.f32 %v1050_v23, %v1049_v50  ;;  %v1440_v48 = vrot.slane %v1439_v9, 2  ;;  %v2409_v37 = vadd.f32 %v2408_v1, %v827_v4  ;;  %v8634_v4 = vld [vmem:[#allocation18_spill] sm:$0xff]  ;;  %s4189_s14 = scalar_lea.vmem %s3617_s13, 1920  ;;  %p4194_p1 = scmp.lt.s32.totalorder %s3617_s13, %s3617_s13 }
 0x1f3   :  { %v1634_v5 = vadd.f32 %v1633_v57, %v1632_v42  ;;  %v2022_v47 = vadd.f32 %v2021_v13, %v2020_v43  ;;  %v1246_v63 = vadd.f32 %v1245_v46, %v1244_v29  ;;  %v2215_v22 = vadd.f32 %v2214_v61, %v737_v12  ;;  %v8633_v12 = vld [vmem:[#allocation20_spill] sm:$0xff]  ;;  %p4190_p0 = scmp.ne.s32.totalorder %s3617_s13, %s4189_s14  ;;  %p4195_p2 = scmp.lt.s32.totalorder %s4189_s14, %s4189_s14 }
 0x1f4   :  { %v1829_v8 = vadd.f32 %v1828_v19, %v1827_v41  ;;  %v1052_v15 = vrot.slane %v1051_v25, 1  ;;  %v1441_v26 = vadd.f32 %v1440_v48, %v1439_v9  ;;  %v2410_v54 = vadd.f32 %v2409_v37, %v842_v58 }
 0x1f5   :  { %v1635_v35 = vrot.slane %v1634_v5, 2  ;;  %v2023_v7 = vrot.slane %v2022_v47, 4  ;;  %v1247_v27 = vrot.slane %v1246_v63, 1  ;;  %v2217_v45 = vadd.f32 %v2216_v28, %v2215_v22  ;;  %v3776_v9 = vpop.f32.mrb[2].mxu1  ;;  %p4196_p3 = por %p4195_p2, %p4194_p1 }
 0x1f6   :  { %v1830_v17 = vrot.slane %v1829_v8, 2  ;;  %v1053_v39 = vadd.f32 %v1052_v15, %v1051_v25  ;;  %v1442_v6 = vrot.slane %v1441_v26, 1  ;;  %v2411_v36 = vsel %vm863_vm0, %v857_v59, 0.0 }
 0x1f7   :  { %v1636_v2 = vadd.f32 %v1635_v35, %v1634_v5  ;;  %v2024_v13 = vadd.f32 %v2023_v7, %v2022_v47  ;;  %v1248_v18 = vadd.f32 %v1247_v27, %v1246_v63  ;;  %v2218_v30 = vrot.slane %v2217_v45, 4  ;;  %p4197_p4 = pnand %p4196_p3, %p4190_p0 }
 0x1f8   :  { %v1831_v3 = vadd.f32 %v1830_v17, %v1829_v8  ;;  %v1443_v21 = vadd.f32 %v1442_v6, %v1441_v26  ;;  %v2412_v31 = vadd.f32 %v2411_v36, %v2410_v54  ;;  %v2434_v60 = vmul.f32 0.020408163, %v1053_v39 }
 0x1f9   :  { %v1637_v62 = vrot.slane %v1636_v2, 1  ;;  %v2025_v55 = vrot.slane %v2024_v13, 2  ;;  %v2219_v34 = vadd.f32 %v2218_v30, %v2217_v45  ;;  %v2449_v32 = vmul.f32 0.020408163, %v1248_v18 }
 0x1fa   :  { %v1832_v11 = vrot.slane %v1831_v3, 1  ;;  %v2413_v16 = vrot.slane %v2412_v31, 4  ;;  %v2464_v38 = vmul.f32 0.020408163, %v1443_v21  ;;  %v3673_v50 = vadd.f32 %v8632_v40, %v7511_v44  ;;  %v3777_v44 = vpop.f32.mrb[3].mxu1 }
 0x1fb   :  { %v1638_v51 = vadd.f32 %v1637_v62, %v1636_v2  ;;  %v2026_v28 = vadd.f32 %v2025_v55, %v2024_v13  ;;  %v2220_v24 = vrot.slane %v2219_v34, 2  ;;  %v2765_v14 = vsel %vm2660_vm1, %v2449_v32, %v2434_v60 }
 0x1fc   :  { %v1833_v53 = vadd.f32 %v1832_v11, %v1831_v3  ;;  %v2414_v42 = vadd.f32 %v2413_v16, %v2412_v31  ;;  %v2766_v29 = vsel %vm2662_vm2, %v2464_v38, %v2765_v14  ;;  %v3116_v33 = vadd.f32 %v3673_v50, %v3638_v52 }
 0x1fd   :  { %v2027_v20 = vrot.slane %v2026_v28, 1  ;;  %v2479_v56 = vmul.f32 0.020408163, %v1638_v51  ;;  %v2221_v41 = vadd.f32 %v2220_v24, %v2219_v34  ;;  %v3708_v23 = vadd.f32 %v8634_v4, %v8633_v12 }
 0x1fe   :  { %v2494_v49 = vmul.f32 0.020408163, %v1833_v53  ;;  %v2415_v43 = vrot.slane %v2414_v42, 2  ;;  %v3743_v19 = vadd.f32 %v8113_v0, %v8101_v10  ;;  %v3778_v25 = vadd.f32 %v3777_v44, %v3776_v9 }
 0x1ff   :  { %v2028_v57 = vadd.f32 %v2027_v20, %v2026_v28  ;;  %v2767_v46 = vsel %vm2664_vm3, %v2479_v56, %v2766_v29  ;;  %v2222_v61 = vrot.slane %v2221_v41, 1  ;;  %v3186_v58 = vadd.f32 %v3708_v23, %v3116_v33 }
 0x200   :  { %v2768_v1 = vsel %vm2666_vm4, %v2494_v49, %v2767_v46  ;;  %v2416_v48 = vadd.f32 %v2415_v43, %v2414_v42 }
 0x201   :  { %v2509_v5 = vmul.f32 0.020408163, %v2028_v57  ;;  %v2223_v47 = vadd.f32 %v2222_v61, %v2221_v41  ;;  %v3256_v63 = vadd.f32 %v3743_v19, %v3186_v58 }
 0x202   :  { %v2417_v8 = vrot.slane %v2416_v48, 1 }
 0x203   :  { %v2769_v22 = vsel %vm2668_vm5, %v2509_v5, %v2768_v1  ;;  %v2524_v37 = vmul.f32 0.020408163, %v2223_v47  ;;  %v3326_v59 = vadd.f32 %v3778_v25, %v3256_v63 }
 0x204   :  { %v2418_v15 = vadd.f32 %v2417_v8, %v2416_v48 }
 0x205   :  { %v2770_v26 = vsel %vm2670_vm6, %v2524_v37, %v2769_v22 }
 0x206   :  { %v2539_v35 = vmul.f32 0.020408163, %v2418_v15 }
 0x208   :  { %v2771_v10 = vsel %vm2672_vm7, %v2539_v35, %v2770_v26 }
 0x209   :  { %2801 = vst [vmem:[#allocation2 + $0x70] sm:$0xff] %v2771_v10  ;;  %3934 = vmatmul.mubr.f32.vlgmr.msra.gmra.mrb[6].mxu1 %v2771_v10 }
 0x23d   :  { %v3811_v0 = vpop.f32.mrb[4].mxu0 }
 0x23e   :  { %v3812_v7 = vpop.f32.mrb[5].mxu0 }
 0x23f   :  { %v3813_v27 = vadd.f32 %v3812_v7, %v3811_v0 }
 0x241   :  { %v3396_v17 = vadd.f32 %v3813_v27, %v3326_v59 }
 0x242   :  { %4200 = shalt.err (!%p4197_p4)
}
 0x243   :  { %s4201_s17 = scalar_lea.hbm %s8496_s3, 1920 }
 0x244   :  { %p4202_p5 = scmp.ne.s32.totalorder %s8496_s3, %s4201_s17  ;;  %p4205_p6 = scmp.lt.u32.totalorder %s4201_s17, %s8496_s3 }
 0x246   :  { %p4207_p7 = pnand %p4205_p6, %p4202_p5 }
 0x248   :  { %4210 = shalt.err (!%p4207_p7)
}
 0x249   :  { %3619 = dma.vmem_to_hbm [thread:$0]  %s3617_s13, 1920, %s8496_s3, [#allocation3]  }
 0x24a   :  { %s4241_s24 = smov [#allocation4]  }
 0x24b   :  { %s3626_s25 = sshll.u32 %s4241_s24, 4  ;;  %s3627_s25 = int_to_ptr.vmem [resolvable:$true] %s3626_s25 }
 0x24c   :  { %s4211_s26 = scalar_lea.vmem %s3627_s25, 128  ;;  %p4216_p9 = scmp.lt.s32.totalorder %s3627_s25, %s3627_s25 }
 0x24d   :  { %p4212_p8 = scmp.ne.s32.totalorder %s3627_s25, %s4211_s26  ;;  %p4217_p10 = scmp.lt.s32.totalorder %s4211_s26, %s4211_s26 }
 0x24f   :  { %p4218_p11 = por %p4217_p10, %p4216_p9 }
 0x251   :  { %p4219_p12 = pnand %p4218_p11, %p4212_p8 }
 0x279   :  { %v3846_v45 = vpop.f32.mrb[4].mxu1 }
 0x27a   :  { %v3847_v54 = vpop.f32.mrb[5].mxu1 }
 0x27b   :  { %v3848_v39 = vadd.f32 %v3847_v54, %v3846_v45 }
 0x27d   :  { %v3466_v6 = vadd.f32 %v3848_v39, %v3396_v17 }
 0x2bd   :  { %v3881_v2 = vpop.f32.mrb[6].mxu0 }
 0x2be   :  { %v3882_v13 = vpop.f32.mrb[7].mxu0 }
 0x2bf   :  { %v3883_v18 = vadd.f32 %v3882_v13, %v3881_v2 }
 0x2c1   :  { %v3536_v3 = vadd.f32 %v3883_v18, %v3466_v6 }
 0x2dc   :  { %v3605_v30 = vpop.f32.mrb[6].mxu1 }
 0x2dd   :  { %v3606_v36 = vadd.f32 %v3605_v30, %v3536_v3  ;;  %v3935_v21 = vpop.f32.mrb[7].mxu1 }
 0x2df   :  { %3609 = vst [vmem:[#allocation4] sm:$0xff] %v3606_v36 }
 0x2e0   :  { %4222 = shalt.err (!%p4219_p12)
}
 0x2e1   :  { %s4223_s28 = scalar_lea.hbm %s8497_s4, 128 }
 0x2e2   :  { %p4224_p13 = scmp.ne.s32.totalorder %s8497_s4, %s4223_s28  ;;  %p4227_p0 = scmp.lt.u32.totalorder %s4223_s28, %s8497_s4 }
 0x2e4   :  { %p4229_p1 = pnand %p4227_p0, %p4224_p13 }
 0x2e6   :  { %4232 = shalt.err (!%p4229_p1)
}
 0x2e7   :  { %3629 = dma.vmem_to_hbm [thread:$0]  %s3627_s25, 128, %s8497_s4, [#allocation5]  }
 0x2e8   :  { %4233 = dma.done.wait [#allocation3], 1920  }
 0x2e9   :  { %4234 = vsyncadd [#allocation3], 4294965376 }
 0x2ea   :  { %4235 = dma.done.wait [#allocation5], 128  }
 0x2eb   :  { %4236 = vsyncadd [#allocation5], 4294967168 }
 0x2ec   :  { %3636 = vsyncpa [#allocation3], 1 }
 0x2ed   :  { %3637 = vsyncpa [#allocation5], 1 }

</bundles_post_ra>
